<compile_context>
chip_gen: v6e
topology: v6e:2x2x1
jax: 0.10.0
libtpu: 0.0.40
codegen_flags: <defaults>
</compile_context>

<pallas_src>
import functools

import jax
import jax.numpy as jnp
from jax import lax
from jax.experimental import pallas as pl
from jax.experimental.pallas import tpu as pltpu


def _round_up(x, m):
    return -(-x // m) * m


def _pick_tm(M, tm_max=1024):
    """Tile the M axis into equal-ish multiples of 8, each <= tm_max."""
    m8 = _round_up(M, 8)
    if m8 <= tm_max:
        return m8
    nt = pl.cdiv(m8, tm_max)
    return _round_up(pl.cdiv(M, nt), 8)


# ----------------------------------------------------------------------------
# Pallas kernels: one MXU matmul per M tile, f32 accumulate.
#   x : (tm, K) bf16      w : (K, Npad) bf16 (VMEM-resident, constant index)
#   scale/shift : (1, Npad) f32 (affine variant only)
#   out : (tm, Npad)      (Npad multiple of 128 -> unmasked lane-dense stores)
# ----------------------------------------------------------------------------
def _matmul_kernel(x_ref, w_ref, o_ref):
    o_ref[...] = jnp.dot(
        x_ref[...], w_ref[...], preferred_element_type=jnp.float32
    ).astype(o_ref.dtype)


def _matmul_affine_kernel(x_ref, w_ref, scale_ref, shift_ref, o_ref, *, relu):
    y = jnp.dot(x_ref[...], w_ref[...], preferred_element_type=jnp.float32)
    y = y * scale_ref[...] + shift_ref[...]
    if relu:
        y = jnp.maximum(y, 0.0)
    o_ref[...] = y.astype(o_ref.dtype)


def _pallas_matmul(x, w, *, scale=None, shift=None, relu=False,
                   tm_max=1024, out_dtype=jnp.float32):
    """Returns act((x @ w) [* scale + shift]), sliced back to (M, Nc)."""
    M, K = x.shape
    Kw, Nc = w.shape
    assert K == Kw
    Npad = _round_up(Nc, 128)                 # lane-dense output
    tm = _pick_tm(M, tm_max)
    Mpad = _round_up(M, tm)

    x = x.astype(jnp.bfloat16)
    w = w.astype(jnp.bfloat16)
    if Mpad != M:
        x = jnp.pad(x, ((0, Mpad - M), (0, 0)))
    if Npad != Nc:
        w = jnp.pad(w, ((0, 0), (0, Npad - Nc)))

    x_spec = pl.BlockSpec((tm, K), lambda i: (i, 0))
    w_spec = pl.BlockSpec((K, Npad), lambda i: (0, 0))    # stays in VMEM
    o_spec = pl.BlockSpec((tm, Npad), lambda i: (i, 0))
    cparams = pltpu.CompilerParams(
        dimension_semantics=("parallel",),
        vmem_limit_bytes=32 * 1024 * 1024)

    if scale is None:
        out = pl.pallas_call(
            _matmul_kernel,
            out_shape=jax.ShapeDtypeStruct((Mpad, Npad), out_dtype),
            grid_spec=pltpu.PrefetchScalarGridSpec(
                num_scalar_prefetch=0, grid=(Mpad // tm,),
                in_specs=[x_spec, w_spec],
                out_specs=o_spec),
            compiler_params=cparams,
        )(x, w)
    else:
        if Npad != Nc:
            scale = jnp.pad(scale, (0, Npad - Nc))
            shift = jnp.pad(shift, (0, Npad - Nc))
        scale2 = scale.reshape(1, Npad).astype(jnp.float32)
        shift2 = shift.reshape(1, Npad).astype(jnp.float32)
        out = pl.pallas_call(
            functools.partial(_matmul_affine_kernel, relu=relu),
            out_shape=jax.ShapeDtypeStruct((Mpad, Npad), out_dtype),
            grid_spec=pltpu.PrefetchScalarGridSpec(
                num_scalar_prefetch=0, grid=(Mpad // tm,),
                in_specs=[x_spec, w_spec,
                          pl.BlockSpec((1, Npad), lambda i: (0, 0)),
                          pl.BlockSpec((1, Npad), lambda i: (0, 0))],
                out_specs=o_spec),
            compiler_params=cparams,
        )(x, w, scale2, shift2)
    return out[:M, :Nc]


# ----------------------------------------------------------------------------
# ConvTranspose2d + BatchNorm2d(eval) [+ ReLU] via a single taps-in-N matmul.
#   x_nhwc : (N, Hin, Win, Cin)
#   w      : (Cin, Cout, kh, kw)   (PyTorch ConvTranspose2d layout)
# ----------------------------------------------------------------------------
def fused_conv_transpose_bn(x_nhwc, w, bias, gamma, beta, mean, var,
                            *, stride, relu, eps=1e-5,
                            out_dtype=jnp.float32, tm_max=1024):
    N, Hin, Win, Cin = x_nhwc.shape
    _, Cout, kh, kw = w.shape
    Hout = (Hin - 1) * stride + kh
    Wout = (Win - 1) * stride + kw
    T = kh * kw
    M = N * Hin * Win

    # fold conv bias + eval-mode batchnorm into a single scale/shift
    scale = gamma / jnp.sqrt(var + eps)                      # (Cout,)
    shift = (bias - mean) * scale + beta                     # (Cout,)

    x2 = x_nhwc.reshape(M, Cin)
    # taps-in-N weight: column (a*kw+b)*Cout + co == w[:, co, a, b]
    w2 = jnp.transpose(w, (0, 2, 3, 1)).reshape(Cin, T * Cout)

    if kh == stride and kw == stride:
        # No tap overlap: scale/shift/ReLU fused into the kernel epilogue,
        # then an exact pixel-shuffle (sub-pixel decomposition).
        out2 = _pallas_matmul(
            x2, w2, scale=jnp.tile(scale, T), shift=jnp.tile(shift, T),
            relu=relu, tm_max=tm_max, out_dtype=out_dtype)   # (M, T*Cout)
        out = out2.reshape(N, Hin, Win, kh, kw, Cout)
        out = jnp.transpose(out, (0, 1, 3, 2, 4, 5)).reshape(N, Hout, Wout, Cout)
        return out

    # Overlapping taps: fold BN scale into the weight columns, matmul on the
    # UNdilated input, then col2im overlap-add (+shift, +ReLU) on the small
    # output activation in XLA (f32 accumulation).
    w2s = w2 * jnp.tile(scale, T)[None, :]
    out2 = _pallas_matmul(x2, w2s, tm_max=tm_max,
                          out_dtype=jnp.float32)             # (M, T*Cout) f32
    contrib = out2.reshape(N, Hin, Win, kh, kw, Cout)

    y = jnp.zeros((N, Hout, Wout, Cout), jnp.float32)
    for a in range(kh):
        for b in range(kw):
            y = y.at[:, a:a + stride * Hin:stride,
                        b:b + stride * Win:stride, :].add(contrib[:, :, :, a, b, :])
    y = y + shift[None, None, None, :]
    if relu:
        y = jnp.maximum(y, 0.0)
    return y.astype(out_dtype)


# ----------------------------------------------------------------------------
# Parameter construction (deterministic, shapes from BasicAE.__init__)
# ----------------------------------------------------------------------------
def init_params(key):
    def convt(key, cin, cout, k):
        kw_, kb_ = jax.random.split(key)
        fan = cin * k * k
        w = jax.random.normal(kw_, (cin, cout, k, k), jnp.float32) / jnp.sqrt(fan)
        b = jax.random.normal(kb_, (cout,), jnp.float32) * 0.01
        return w, b

    def bn(key, c):
        kg, kb, km, kv = jax.random.split(key, 4)
        gamma = 1.0 + 0.1 * jax.random.normal(kg, (c,), jnp.float32)
        beta = 0.1 * jax.random.normal(kb, (c,), jnp.float32)
        mean = 0.1 * jax.random.normal(km, (c,), jnp.float32)
        var = 1.0 + 0.1 * jax.random.uniform(kv, (c,), jnp.float32)
        return gamma, beta, mean, var

    ks = jax.random.split(key, 6)
    return {
        "deconv1": convt(ks[0], 128, 64, 3),
        "bn1": bn(ks[1], 64),
        "deconv2": convt(ks[2], 64, 32, 4),
        "bn2": bn(ks[3], 32),
        "deconv3": convt(ks[4], 32, 3, 5),
        "bn3": bn(ks[5], 3),
    }


# ----------------------------------------------------------------------------
# BasicAE.forward  (== decoder path), NCHW in / NCHW out like PyTorch.
# ----------------------------------------------------------------------------
def basic_ae_forward(x_nchw, params):
    x = jnp.transpose(x_nchw, (0, 2, 3, 1))            # NCHW -> NHWC

    # nn.Upsample(scale_factor=2), default mode='nearest'
    x = jnp.repeat(jnp.repeat(x, 2, axis=1), 2, axis=2)

    w, b = params["deconv1"]
    g, be, m, v = params["bn1"]
    x = fused_conv_transpose_bn(x, w, b, g, be, m, v, stride=3, relu=True,
                                out_dtype=jnp.bfloat16)

    w, b = params["deconv2"]
    g, be, m, v = params["bn2"]
    x = fused_conv_transpose_bn(x, w, b, g, be, m, v, stride=3, relu=True,
                                out_dtype=jnp.bfloat16)

    w, b = params["deconv3"]
    g, be, m, v = params["bn3"]
    x = fused_conv_transpose_bn(x, w, b, g, be, m, v, stride=1, relu=False,
                                out_dtype=jnp.float32)

    return jnp.transpose(x, (0, 3, 1, 2))               # NHWC -> NCHW


# ----------------------------------------------------------------------------
# Pure-JAX (f32, lax.conv) reference of the same decoder, for a sanity check.
# ----------------------------------------------------------------------------
def _ref_conv_transpose_bn(x_nhwc, w, bias, gamma, beta, mean, var,
                           *, stride, relu, eps=1e-5):
    _, _, kh, kw = w.shape
    scale = gamma / jnp.sqrt(var + eps)
    shift = (bias - mean) * scale + beta
    w_hwio = jnp.transpose(w[:, :, ::-1, ::-1], (2, 3, 0, 1))  # (kh,kw,Cin,Cout)
    y = lax.conv_general_dilated(
        x_nhwc.astype(jnp.float32), w_hwio.astype(jnp.float32),
        window_strides=(1, 1),
        padding=[(kh - 1, kh - 1), (kw - 1, kw - 1)],
        lhs_dilation=(stride, stride),
        dimension_numbers=("NHWC", "HWIO", "NHWC"))
    y = y * scale + shift
    if relu:
        y = jnp.maximum(y, 0.0)
    return y


def reference_forward(x_nchw, params):
    x = jnp.transpose(x_nchw, (0, 2, 3, 1))
    x = jnp.repeat(jnp.repeat(x, 2, axis=1), 2, axis=2)
    w, b = params["deconv1"]
    g, be, m, v = params["bn1"]
    x = _ref_conv_transpose_bn(x, w, b, g, be, m, v, stride=3, relu=True)
    w, b = params["deconv2"]
    g, be, m, v = params["bn2"]
    x = _ref_conv_transpose_bn(x, w, b, g, be, m, v, stride=3, relu=True)
    w, b = params["deconv3"]
    g, be, m, v = params["bn3"]
    x = _ref_conv_transpose_bn(x, w, b, g, be, m, v, stride=1, relu=False)
    return jnp.transpose(x, (0, 3, 1, 2))


if __name__ == "__main__":
    key = jax.random.PRNGKey(0)
    kx, kp = jax.random.split(key)

    # decoder input: latent feature map (batch=2, channels=128, spatial=4x4)
    x = jax.random.normal(kx, (2, 128, 4, 4), jnp.float32)
    params = init_params(kp)

    fwd = jax.jit(basic_ae_forward)
    out = fwd(x, params)
    jax.block_until_ready(out)

    # shapes: 4 ->up-> 8 ->(k3,s3)-> 24 ->(k4,s3)-> 73 ->(k5,s1)-> 77
    assert out.shape == (2, 3, 77, 77), out.shape
    assert bool(jnp.all(jnp.isfinite(out)))

    # correctness vs an f32 pure-JAX reference (tolerance covers bf16 operands)
    ref = jax.jit(reference_forward)(x, params)
    jax.block_until_ready(ref)
    err = float(jnp.max(jnp.abs(out.astype(jnp.float32) - ref)))
    tol = 6e-2 * (float(jnp.max(jnp.abs(ref))) + 1.0)
    assert err <= tol, (err, tol)

    print("KERNEL_OK")
</pallas_src>

<mosaic_0001>
module attributes {stable_mosaic.version = 11 : i64} {
  func.func @_matmul_affine_kernel(%arg0: i32, %arg1: memref<128x128xbf16, #tpu.memory_space<vmem>>, %arg2: memref<128x640xbf16, #tpu.memory_space<vmem>>, %arg3: memref<1x640xf32, #tpu.memory_space<vmem>>, %arg4: memref<1x640xf32, #tpu.memory_space<vmem>>, %arg5: memref<128x640xbf16, #tpu.memory_space<vmem>>) attributes {dimension_semantics = [#tpu.dimension_semantics<parallel>], iteration_bounds = array<i64: 1>, scalar_prefetch = 0 : i64, scratch_operands = 0 : i64, tpu.core_type = #tpu.core_type<tc>, window_params = [{transform_indices = @transform_0, window_bounds = array<i64: 128, 128>}, {pipeline_mode = #tpu.pipeline_mode<synchronous>, transform_indices = @transform_1, window_bounds = array<i64: 128, 640>}, {pipeline_mode = #tpu.pipeline_mode<synchronous>, transform_indices = @transform_2, window_bounds = array<i64: 1, 640>}, {pipeline_mode = #tpu.pipeline_mode<synchronous>, transform_indices = @transform_3, window_bounds = array<i64: 1, 640>}, {transform_indices = @transform_4, window_bounds = array<i64: 128, 640>}]} {
    %c0 = arith.constant 0 : index
    %c0_0 = arith.constant 0 : index
    %0 = vector.load %arg1[%c0, %c0_0] : memref<128x128xbf16, #tpu.memory_space<vmem>>, vector<128x128xbf16>
    %c0_1 = arith.constant 0 : index
    %c0_2 = arith.constant 0 : index
    %1 = vector.load %arg2[%c0_1, %c0_2] : memref<128x640xbf16, #tpu.memory_space<vmem>>, vector<128x640xbf16>
    %cst = arith.constant dense<0.000000e+00> : vector<128x640xf32>
    %2 = tpu.matmul %0, %1, %cst {dimension_numbers = #tpu.dot_dimension_numbers<[1], [0], [0], [1], [0, 0, 1, 1], [], []>} : vector<128x128xbf16>, vector<128x640xbf16>, vector<128x640xf32> -> vector<128x640xf32>
    %c0_3 = arith.constant 0 : index
    %c0_4 = arith.constant 0 : index
    %3 = vector.load %arg3[%c0_3, %c0_4] : memref<1x640xf32, #tpu.memory_space<vmem>>, vector<1x640xf32>
    %4 = vector.broadcast %3 : vector<1x640xf32> to vector<128x640xf32>
    %5 = arith.mulf %2, %4 : vector<128x640xf32>
    %c0_5 = arith.constant 0 : index
    %c0_6 = arith.constant 0 : index
    %6 = vector.load %arg4[%c0_5, %c0_6] : memref<1x640xf32, #tpu.memory_space<vmem>>, vector<1x640xf32>
    %7 = vector.broadcast %6 : vector<1x640xf32> to vector<128x640xf32>
    %8 = arith.addf %5, %7 : vector<128x640xf32>
    %cst_7 = arith.constant 0.000000e+00 : f32
    %9 = vector.broadcast %cst_7 : f32 to vector<128x640xf32>
    %10 = arith.maximumf %8, %9 : vector<128x640xf32>
    %11 = arith.truncf %10 : vector<128x640xf32> to vector<128x640xbf16>
    %c0_8 = arith.constant 0 : index
    %c0_9 = arith.constant 0 : index
    %12 = vector.load %arg5[%c0_8, %c0_9] : memref<128x640xbf16, #tpu.memory_space<vmem>>, vector<128x640xbf16>
    tpu.vector_store %arg5[%c0_8, %c0_9], %11 {strides = array<i32>} : memref<128x640xbf16, #tpu.memory_space<vmem>>, vector<128x640xbf16>,
    return
  }
  func.func @transform_0(%arg0: i32) -> (i32, i32) {
    %c0_i32 = arith.constant 0 : i32
    %c0_i32_0 = arith.constant 0 : i32
    return %arg0, %c0_i32 : i32, i32
  }
  func.func @transform_1(%arg0: i32) -> (i32, i32) {
    %c0_i32 = arith.constant 0 : i32
    %c0_i32_0 = arith.constant 0 : i32
    %c0_i32_1 = arith.constant 0 : i32
    return %c0_i32, %c0_i32_0 : i32, i32
  }
  func.func @transform_2(%arg0: i32) -> (i32, i32) {
    %c0_i32 = arith.constant 0 : i32
    %c0_i32_0 = arith.constant 0 : i32
    %c0_i32_1 = arith.constant 0 : i32
    return %c0_i32, %c0_i32_0 : i32, i32
  }
  func.func @transform_3(%arg0: i32) -> (i32, i32) {
    %c0_i32 = arith.constant 0 : i32
    %c0_i32_0 = arith.constant 0 : i32
    %c0_i32_1 = arith.constant 0 : i32
    return %c0_i32, %c0_i32_0 : i32, i32
  }
  func.func @transform_4(%arg0: i32) -> (i32, i32) {
    %c0_i32 = arith.constant 0 : i32
    %c0_i32_0 = arith.constant 0 : i32
    return %arg0, %c0_i32 : i32, i32
  }
}

module attributes {stable_mosaic.version = 11 : i64} {
  func.func @_matmul_kernel(%arg0: i32, %arg1: memref<576x64xbf16, #tpu.memory_space<vmem>>, %arg2: memref<64x512xbf16, #tpu.memory_space<vmem>>, %arg3: memref<576x512xf32, #tpu.memory_space<vmem>>) attributes {dimension_semantics = [#tpu.dimension_semantics<parallel>], iteration_bounds = array<i64: 2>, scalar_prefetch = 0 : i64, scratch_operands = 0 : i64, tpu.core_type = #tpu.core_type<tc>, window_params = [{transform_indices = @transform_0, window_bounds = array<i64: 576, 64>}, {pipeline_mode = #tpu.pipeline_mode<synchronous>, transform_indices = @transform_1, window_bounds = array<i64: 64, 512>}, {transform_indices = @transform_2, window_bounds = array<i64: 576, 512>}]} {
    %c0 = arith.constant 0 : index
    %c0_0 = arith.constant 0 : index
    %0 = vector.load %arg1[%c0, %c0_0] : memref<576x64xbf16, #tpu.memory_space<vmem>>, vector<576x64xbf16>
    %c0_1 = arith.constant 0 : index
    %c0_2 = arith.constant 0 : index
    %1 = vector.load %arg2[%c0_1, %c0_2] : memref<64x512xbf16, #tpu.memory_space<vmem>>, vector<64x512xbf16>
    %cst = arith.constant dense<0.000000e+00> : vector<576x512xf32>
    %2 = tpu.matmul %0, %1, %cst {dimension_numbers = #tpu.dot_dimension_numbers<[1], [0], [0], [1], [0, 0, 1, 1], [], []>} : vector<576x64xbf16>, vector<64x512xbf16>, vector<576x512xf32> -> vector<576x512xf32>
    %c0_3 = arith.constant 0 : index
    %c0_4 = arith.constant 0 : index
    %3 = vector.load %arg3[%c0_3, %c0_4] : memref<576x512xf32, #tpu.memory_space<vmem>>, vector<576x512xf32>
    tpu.vector_store %arg3[%c0_3, %c0_4], %2 {strides = array<i32>} : memref<576x512xf32, #tpu.memory_space<vmem>>, vector<576x512xf32>,
    return
  }
  func.func @transform_0(%arg0: i32) -> (i32, i32) {
    %c0_i32 = arith.constant 0 : i32
    %c0_i32_0 = arith.constant 0 : i32
    return %arg0, %c0_i32 : i32, i32
  }
  func.func @transform_1(%arg0: i32) -> (i32, i32) {
    %c0_i32 = arith.constant 0 : i32
    %c0_i32_0 = arith.constant 0 : i32
    %c0_i32_1 = arith.constant 0 : i32
    return %c0_i32, %c0_i32_0 : i32, i32
  }
  func.func @transform_2(%arg0: i32) -> (i32, i32) {
    %c0_i32 = arith.constant 0 : i32
    %c0_i32_0 = arith.constant 0 : i32
    return %arg0, %c0_i32 : i32, i32
  }
}

module attributes {stable_mosaic.version = 11 : i64} {
  func.func @_matmul_kernel(%arg0: i32, %arg1: memref<976x32xbf16, #tpu.memory_space<vmem>>, %arg2: memref<32x128xbf16, #tpu.memory_space<vmem>>, %arg3: memref<976x128xf32, #tpu.memory_space<vmem>>) attributes {dimension_semantics = [#tpu.dimension_semantics<parallel>], iteration_bounds = array<i64: 11>, scalar_prefetch = 0 : i64, scratch_operands = 0 : i64, tpu.core_type = #tpu.core_type<tc>, window_params = [{transform_indices = @transform_0, window_bounds = array<i64: 976, 32>}, {pipeline_mode = #tpu.pipeline_mode<synchronous>, transform_indices = @transform_1, window_bounds = array<i64: 32, 128>}, {transform_indices = @transform_2, window_bounds = array<i64: 976, 128>}]} {
    %c0 = arith.constant 0 : index
    %c0_0 = arith.constant 0 : index
    %0 = vector.load %arg1[%c0, %c0_0] : memref<976x32xbf16, #tpu.memory_space<vmem>>, vector<976x32xbf16>
    %c0_1 = arith.constant 0 : index
    %c0_2 = arith.constant 0 : index
    %1 = vector.load %arg2[%c0_1, %c0_2] : memref<32x128xbf16, #tpu.memory_space<vmem>>, vector<32x128xbf16>
    %cst = arith.constant dense<0.000000e+00> : vector<976x128xf32>
    %2 = tpu.matmul %0, %1, %cst {dimension_numbers = #tpu.dot_dimension_numbers<[1], [0], [0], [1], [0, 0, 1, 1], [], []>} : vector<976x32xbf16>, vector<32x128xbf16>, vector<976x128xf32> -> vector<976x128xf32>
    %c0_3 = arith.constant 0 : index
    %c0_4 = arith.constant 0 : index
    %3 = vector.load %arg3[%c0_3, %c0_4] : memref<976x128xf32, #tpu.memory_space<vmem>>, vector<976x128xf32>
    tpu.vector_store %arg3[%c0_3, %c0_4], %2 {strides = array<i32>} : memref<976x128xf32, #tpu.memory_space<vmem>>, vector<976x128xf32>,
    return
  }
  func.func @transform_0(%arg0: i32) -> (i32, i32) {
    %c0_i32 = arith.constant 0 : i32
    %c0_i32_0 = arith.constant 0 : i32
    return %arg0, %c0_i32 : i32, i32
  }
  func.func @transform_1(%arg0: i32) -> (i32, i32) {
    %c0_i32 = arith.constant 0 : i32
    %c0_i32_0 = arith.constant 0 : i32
    %c0_i32_1 = arith.constant 0 : i32
    return %c0_i32, %c0_i32_0 : i32, i32
  }
  func.func @transform_2(%arg0: i32) -> (i32, i32) {
    %c0_i32 = arith.constant 0 : i32
    %c0_i32_0 = arith.constant 0 : i32
    return %arg0, %c0_i32 : i32, i32
  }
}

</mosaic_0001>

<bundles_post_ra>
// kernel: tile.23
= control target key start
LH: loop header
LB: loop body
LE: loop exit
PB: predicated region body
PF: predicated region fallthrough
CT: control target
= control target key end

     0   :  { %s28_s0 = inlined_call_operand.vmem [shape: f32[64], index: 0, kind: input, shape index: {}]   ;;  %s29_s1 = inlined_call_operand.vmem [shape: f32[9,64], index: 1, kind: output, shape index: {}]  }
   0x1   :  { %v4_v0 = vld [vmem:[%s28_s0] ss:$0 sm:$0xff] }
   0x2   :  { %5 = vst [vmem:[%s29_s1] sm:$0xff] %v4_v0  ;;  %8 = vst [vmem:[%s29_s1 + $0x8] sm:$0xff] %v4_v0 }

// kernel: tile.24
= control target key start
LH: loop header
LB: loop body
LE: loop exit
PB: predicated region body
PF: predicated region fallthrough
CT: control target
= control target key end

     0   :  { %vm3_vm0 = vcmask 523264   ;;  %s13_s11 = smov 64   ;;  %vm9_vm1 = vcmask 1048064   ;;  %s36_s0 = inlined_call_operand.vmem [shape: f32[9,64], index: 0, kind: input, shape index: {}]   ;;  %s37_s1 = inlined_call_operand.vmem [shape: f32[576], index: 1, kind: output, shape index: {}]  }
   0x1   :  { %v2_v0 = vld [vmem:[%s36_s0] ss:$2 sm:$0x1f]   ;;  %v11_v1 = vld [vmem:[%s36_s0 + $0x1] ss:$2 sm:$0xf]  }
   0x2   :  { %4 = vst.msk [vmem:[%s37_s1] sm:$0x1f] %vm3_vm0, %v2_v0   ;;  %7 = vrot.lane.b32.xlu0 %v11_v1, %s13_s11 }
  0x74   :  { %v8_v2 = vpop.permute.xlu0 %7  }
  0x75   :  { %10 = vst.msk [vmem:[%s37_s1] sm:$0xf] %vm9_vm1, %v8_v2  }

// kernel: tile.33
= control target key start
LH: loop header
LB: loop body
LE: loop exit
PB: predicated region body
PF: predicated region fallthrough
CT: control target
= control target key end

     0   :  { %s28_s0 = inlined_call_operand.vmem [shape: f32[32], index: 0, kind: input, shape index: {}]   ;;  %s29_s1 = inlined_call_operand.vmem [shape: f32[16,32], index: 1, kind: output, shape index: {}]  }
   0x1   :  { %v4_v0 = vld [vmem:[%s28_s0] ss:$0 sm:$0xff] }
   0x2   :  { %5 = vst [vmem:[%s29_s1] sm:$0xff] %v4_v0  ;;  %8 = vst [vmem:[%s29_s1 + $0x8] sm:$0xff] %v4_v0 }

// kernel: mul.46
= control target key start
LH: loop header
LB: loop body
LE: loop exit
PB: predicated region body
PF: predicated region fallthrough
CT: control target
= control target key end

     0   :  { %s37_s8 = smov 96   ;;  %vm3_vm0 = vcmask 261120   ;;  %s39_s15 = smov 64   ;;  %vm9_vm1 = vcmask 1048320   ;;  %vm15_vm2 = vcmask 785920   ;;  %vm21_vm3 = vcmask 523520   ;;  %s65_s0 = inlined_call_operand.vmem [shape: f32[16,32], index: 0, kind: input, shape index: {}]   ;;  %s66_s1 = inlined_call_operand.vmem [shape: f32[512], index: 1, kind: output, shape index: {}]  }
   0x1   :  { %v31_v0 = vld [vmem:[%s65_s0 + $0x3] ss:$4 sm:$0xf]   ;;  %v32_v1 = vld [vmem:[%s65_s0 + $0x2] ss:$4 sm:$0xf]  }
   0x2   :  { %7 = vrot.lane.b32.xlu0 %v31_v0, %s37_s8  ;;  %v33_v2 = vld [vmem:[%s65_s0 + $0x1] ss:$4 sm:$0xf]   ;;  %v2_v3 = vld [vmem:[%s65_s0] ss:$4 sm:$0xf]  }
   0x3   :  { %s38_s0 = smov 32   ;;  %4 = vst.msk [vmem:[#allocation0] sm:$0xf] %vm3_vm0, %v2_v3  }
   0x4   :  { %19 = vrot.lane.b32.xlu1 %v33_v2, %s38_s0 }
   0x6   :  { %13 = vrot.lane.b32.xlu0 %v32_v1, %s39_s15 }
  0x74   :  { %v8_v4 = vpop.permute.xlu0 %7  }
  0x75   :  { %10 = vst.msk [vmem:[#allocation0] sm:$0xf] %vm9_vm1, %v8_v4  }
  0x76   :  { %v20_v5 = vpop.permute.xlu1 %19  }
  0x78   :  { %v14_v6 = vpop.permute.xlu0 %13  }
  0x79   :  { %16 = vst.msk [vmem:[#allocation0] sm:$0xf] %vm15_vm2, %v14_v6  }
  0x7a   :  { %22 = vst.msk [vmem:[#allocation0] sm:$0xf] %vm21_vm3, %v20_v5  }
  0x81   :  { %v27_v7 = vld [vmem:[#allocation0] sm:$0xf] }
  0x82   :  { %30 = vst [vmem:[%s66_s1] sm:$0xf] %v27_v7 }

// kernel: basic_ae_forward.3
= control target key start
LH: loop header
LB: loop body
LE: loop exit
PB: predicated region body
PF: predicated region fallthrough
CT: control target
= control target key end

     0   :  { %v1536_v1 = vmov 0   ;;  %v663_v49 = vlaneseq  ;;  %s2083_s1 = inlined_call_operand.vmem [shape: bf16[128,640], index: 1, kind: input, shape index: {}]   ;;  %s2084_s0 = inlined_call_operand.vmem [shape: bf16[128,128], index: 0, kind: input, shape index: {}]   ;;  %s2085_s2 = inlined_call_operand.vmem [shape: f32[1,640], index: 2, kind: input, shape index: {}]   ;;  %s2086_s3 = inlined_call_operand.vmem [shape: f32[1,640], index: 3, kind: input, shape index: {}]   ;;  %s2087_s4 = inlined_call_operand.vmem [shape: bf16[128,640], index: 4, kind: output, shape index: {}]  }
   0x1   :  { %v1472_v0 = vld [vmem:[%s2083_s1 + $0x11c] ss:$20 sps:$4 sm:$0xff]   ;;  %370 = vmatprep.mubr.bf16.mxu0 %v1536_v1  ;;  %483 = vmatprep.mubr.bf16.mxu1 %v1536_v1  ;;  %v1474_v2 = vld [vmem:[%s2083_s1 + $0x124] ss:$20 sps:$4 sm:$0xff]   ;;  %v1477_v4 = vld [vmem:[%s2083_s1 + $0x120] ss:$20 sps:$4 sm:$0xff]  }
   0x2   :  { %338 = vmatprep.subr.bf16.mxu0 %v1472_v0  ;;  %v1476_v3 = vld [vmem:[%s2083_s1 + $0x118] ss:$20 sps:$4 sm:$0xff]   ;;  %451 = vmatprep.subr.bf16.mxu1 %v1474_v2  ;;  %v1478_v5 = vld [vmem:[%s2083_s1 + $0xf4] ss:$20 sps:$4 sm:$0xff]   ;;  %v1480_v6 = vld [vmem:[%s2083_s1 + $0xfc] ss:$20 sps:$4 sm:$0xff]  }
   0x3   :  { %339 = vmatpush1.bf16.msra.mxu0 %v1476_v3  ;;  %452 = vmatpush1.bf16.msra.mxu1 %v1477_v4  ;;  %v1482_v7 = vld [vmem:[%s2083_s1 + $0xf0] ss:$20 sps:$4 sm:$0xff]   ;;  %v1483_v8 = vld [vmem:[%s2083_s1 + $0xf8] ss:$20 sps:$4 sm:$0xff]   ;;  %v1486_v10 = vld [vmem:[%s2083_s1 + $0xd4] ss:$20 sps:$4 sm:$0xff]  }
   0x4   :  { %340 = vmatprep.subr.bf16.mxu0 %v1478_v5  ;;  %453 = vmatprep.subr.bf16.mxu1 %v1480_v6  ;;  %v1484_v9 = vld [vmem:[%s2083_s1 + $0xcc] ss:$20 sps:$4 sm:$0xff]   ;;  %v1488_v11 = vld [vmem:[%s2083_s1 + $0xc8] ss:$20 sps:$4 sm:$0xff]   ;;  %v1489_v12 = vld [vmem:[%s2083_s1 + $0xd0] ss:$20 sps:$4 sm:$0xff]  }
   0x5   :  { %v1490_v13 = vld [vmem:[%s2083_s1 + $0xa4] ss:$20 sps:$4 sm:$0xff]   ;;  %v1492_v14 = vld [vmem:[%s2083_s1 + $0xac] ss:$20 sps:$4 sm:$0xff]   ;;  %v1495_v16 = vld [vmem:[%s2083_s1 + $0xa8] ss:$20 sps:$4 sm:$0xff]  }
   0x6   :  { %v1494_v15 = vld [vmem:[%s2083_s1 + $0xa0] ss:$20 sps:$4 sm:$0xff]   ;;  %v1496_v17 = vld [vmem:[%s2083_s1 + $0x7c] ss:$20 sps:$4 sm:$0xff]   ;;  %v1498_v18 = vld [vmem:[%s2083_s1 + $0x84] ss:$20 sps:$4 sm:$0xff]  }
   0x7   :  { %341 = vmatpush1.bf16.msra.mxu0 %v1482_v7  ;;  %454 = vmatpush1.bf16.msra.mxu1 %v1483_v8  ;;  %v1500_v19 = vld [vmem:[%s2083_s1 + $0x78] ss:$20 sps:$4 sm:$0xff]   ;;  %v1501_v20 = vld [vmem:[%s2083_s1 + $0x80] ss:$20 sps:$4 sm:$0xff]   ;;  %v1504_v22 = vld [vmem:[%s2083_s1 + $0x5c] ss:$20 sps:$4 sm:$0xff]  }
   0x8   :  { %342 = vmatprep.subr.bf16.mxu0 %v1484_v9  ;;  %455 = vmatprep.subr.bf16.mxu1 %v1486_v10  ;;  %v1502_v21 = vld [vmem:[%s2083_s1 + $0x54] ss:$20 sps:$4 sm:$0xff]   ;;  %v1506_v23 = vld [vmem:[%s2083_s1 + $0x50] ss:$20 sps:$4 sm:$0xff]   ;;  %v1507_v24 = vld [vmem:[%s2083_s1 + $0x58] ss:$20 sps:$4 sm:$0xff]  }
   0x9   :  { %v1508_v25 = vld [vmem:[%s2083_s1 + $0x2c] ss:$20 sps:$4 sm:$0xff]   ;;  %v1510_v26 = vld [vmem:[%s2083_s1 + $0x34] ss:$20 sps:$4 sm:$0xff]   ;;  %v1513_v28 = vld [vmem:[%s2083_s1 + $0x30] ss:$20 sps:$4 sm:$0xff]  }
   0xa   :  { %v1512_v27 = vld [vmem:[%s2083_s1 + $0x28] ss:$20 sps:$4 sm:$0xff]   ;;  %v1514_v29 = vld [vmem:[%s2083_s1 + $0x4] ss:$20 sps:$4 sm:$0xff]   ;;  %v1516_v30 = vld [vmem:[%s2083_s1 + $0xc] ss:$20 sps:$4 sm:$0xff]  }
   0xb   :  { %343 = vmatpush1.bf16.msra.mxu0 %v1488_v11  ;;  %456 = vmatpush1.bf16.msra.mxu1 %v1489_v12  ;;  %v1518_v31 = vld [vmem:[%s2083_s1] ss:$20 sps:$4 sm:$0xff]   ;;  %v1519_v32 = vld [vmem:[%s2083_s1 + $0x8] ss:$20 sps:$4 sm:$0xff]   ;;  %v1525_v36 = vld [vmem:[%s2083_s1 + $0xd8] ss:$20 sps:$4 sm:$0xff]  }
   0xc   :  { %344 = vmatprep.subr.bf16.mxu0 %v1490_v13  ;;  %457 = vmatprep.subr.bf16.mxu1 %v1492_v14  ;;  %v1521_v33 = vld [vmem:[%s2083_s1 + $0x128] ss:$20 sps:$4 sm:$0xff]   ;;  %v1666_v34 = vld [vmem:[%s2084_s0] sm:$0xff]   ;;  %v1524_v40 = vld [vmem:[%s2084_s0 + $0x10] sm:$0xff]   ;;  %v1732_v50 = vshrl.u32 %v663_v49, 7 }
   0xd   :  { %v1523_v35 = vld [vmem:[%s2083_s1 + $0x100] ss:$20 sps:$4 sm:$0xff]   ;;  %v1681_v37 = vld [vmem:[%s2084_s0 + $0x8] sm:$0xff]   ;;  %v1527_v38 = vld [vmem:[%s2083_s1 + $0xb0] ss:$20 sps:$4 sm:$0xff]  }
   0xe   :  { %v1529_v39 = vld [vmem:[%s2083_s1 + $0x88] ss:$20 sps:$4 sm:$0xff]   ;;  %v1531_v41 = vld [vmem:[%s2083_s1 + $0x60] ss:$20 sps:$4 sm:$0xff]   ;;  %v1533_v42 = vld [vmem:[%s2083_s1 + $0x38] ss:$20 sps:$4 sm:$0xff]  }
   0xf   :  { %345 = vmatpush1.bf16.msra.mxu0 %v1494_v15  ;;  %458 = vmatpush1.bf16.msra.mxu1 %v1495_v16  ;;  %v1526_v43 = vld [vmem:[%s2084_s0 + $0x18] sm:$0xff]   ;;  %v1535_v44 = vld [vmem:[%s2083_s1 + $0x10] ss:$20 sps:$4 sm:$0xff]   ;;  %v1530_v46 = vld [vmem:[%s2084_s0 + $0x28] sm:$0xff]   ;;  %v665_v51 = vsub.s32 0, %v1732_v50  ;;  %v673_v52 = vsub.s32 2, %v1732_v50 }
  0x10   :  { %346 = vmatprep.subr.bf16.mxu0 %v1496_v17  ;;  %459 = vmatprep.subr.bf16.mxu1 %v1498_v18  ;;  %v1528_v45 = vld [vmem:[%s2084_s0 + $0x20] sm:$0xff]   ;;  %v1532_v47 = vld [vmem:[%s2084_s0 + $0x30] sm:$0xff]   ;;  %v1534_v48 = vld [vmem:[%s2084_s0 + $0x38] sm:$0xff]   ;;  %v669_v54 = vsub.s32 1, %v1732_v50  ;;  %v677_v55 = vsub.s32 3, %v1732_v50 }
  0x11   :  { %v1739_v53 = vld [vmem:[%s2085_s2] sm:$0x1f] }
  0x12   :  { %v1746_v56 = vld [vmem:[%s2086_s3] sm:$0x1f]  ;;  %v1749_v57 = vrot.slane %v1739_v53, %v665_v51  ;;  %v1752_v58 = vrot.slane %v1739_v53, %v673_v52  ;;  %v1761_v61 = vrot.slane %v1739_v53, %v669_v54  ;;  %v1764_v62 = vrot.slane %v1739_v53, %v677_v55 }
  0x13   :  { %347 = vmatpush1.bf16.msra.mxu0 %v1500_v19  ;;  %460 = vmatpush1.bf16.msra.mxu1 %v1501_v20  ;;  %v1755_v59 = vrot.slane %v1746_v56, %v665_v51  ;;  %v1758_v60 = vrot.slane %v1746_v56, %v673_v52  ;;  %v1769_v3 = vrot.slane %v1746_v56, %v669_v54 }
  0x14   :  { %348 = vmatprep.subr.bf16.mxu0 %v1502_v21  ;;  %461 = vmatprep.subr.bf16.mxu1 %v1504_v22  ;;  %v1772_v4 = vrot.slane %v1746_v56, %v677_v55 }
  0x17   :  { %349 = vmatpush1.bf16.msra.mxu0 %v1506_v23  ;;  %462 = vmatpush1.bf16.msra.mxu1 %v1507_v24 }
  0x18   :  { %350 = vmatprep.subr.bf16.mxu0 %v1508_v25  ;;  %463 = vmatprep.subr.bf16.mxu1 %v1510_v26 }
  0x1b   :  { %351 = vmatpush1.bf16.msra.mxu0 %v1512_v27  ;;  %464 = vmatpush1.bf16.msra.mxu1 %v1513_v28 }
  0x1c   :  { %352 = vmatprep.subr.bf16.mxu0 %v1514_v29  ;;  %465 = vmatprep.subr.bf16.mxu1 %v1516_v30 }
  0x1f   :  { %353 = vmatpush1.bf16.msra.mxu0 %v1518_v31  ;;  %466 = vmatpush1.bf16.msra.mxu1 %v1519_v32 }
  0x20   :  { %1423 = vmatprep.subr.bf16.mxu0 %v1521_v33  ;;  %1455 = vmatprep.subr.bf16.mxu1 %v1521_v33 }
  0x22   :  { %371 = vmatmul.mubr.bf16.vlgmr.msra.gmra.mxu0 %v1666_v34  ;;  %484 = vmatmul.mubr.bf16.vlgmr.msra.gmra.mxu1 %v1666_v34 }
  0x23   :  { %1424 = vmatpush3.bf16.msra.mxu0 %v1521_v33  ;;  %1463 = vmatpush3.bf16.msra.mxu1 %v1521_v33 }
  0x24   :  { %380 = vmatprep.mubr.bf16.mxu0 %v1536_v1  ;;  %493 = vmatprep.mubr.bf16.mxu1 %v1536_v1 }
  0x25   :  { %1425 = vmatprep.subr.bf16.mxu0 %v1523_v35  ;;  %1456 = vmatprep.subr.bf16.mxu1 %v1523_v35 }
  0x27   :  { %1426 = vmatpush3.bf16.msra.mxu0 %v1523_v35  ;;  %1464 = vmatpush3.bf16.msra.mxu1 %v1523_v35 }
  0x28   :  { %1427 = vmatprep.subr.bf16.mxu0 %v1525_v36  ;;  %1457 = vmatprep.subr.bf16.mxu1 %v1525_v36 }
  0x2a   :  { %381 = vmatmul.mubr.bf16.gmra.mxu0 %v1681_v37  ;;  %494 = vmatmul.mubr.bf16.gmra.mxu1 %v1681_v37 }
  0x2b   :  { %390 = vmatprep.mubr.bf16.mxu0 %v1536_v1  ;;  %503 = vmatprep.mubr.bf16.mxu1 %v1536_v1 }
  0x2c   :  { %1428 = vmatpush3.bf16.msra.mxu0 %v1525_v36  ;;  %1465 = vmatpush3.bf16.msra.mxu1 %v1525_v36 }
  0x2d   :  { %1429 = vmatprep.subr.bf16.mxu0 %v1527_v38  ;;  %1458 = vmatprep.subr.bf16.mxu1 %v1527_v38 }
  0x30   :  { %1430 = vmatpush3.bf16.msra.mxu0 %v1527_v38  ;;  %1466 = vmatpush3.bf16.msra.mxu1 %v1527_v38 }
  0x31   :  { %1431 = vmatprep.subr.bf16.mxu0 %v1529_v39  ;;  %1459 = vmatprep.subr.bf16.mxu1 %v1529_v39 }
  0x32   :  { %391 = vmatmul.mubr.bf16.gmra.mxu0 %v1524_v40  ;;  %504 = vmatmul.mubr.bf16.gmra.mxu1 %v1524_v40 }
  0x33   :  { %400 = vmatprep.mubr.bf16.mxu0 %v1536_v1  ;;  %513 = vmatprep.mubr.bf16.mxu1 %v1536_v1 }
  0x34   :  { %1432 = vmatpush3.bf16.msra.mxu0 %v1529_v39  ;;  %1467 = vmatpush3.bf16.msra.mxu1 %v1529_v39 }
  0x35   :  { %1433 = vmatprep.subr.bf16.mxu0 %v1531_v41  ;;  %1460 = vmatprep.subr.bf16.mxu1 %v1531_v41 }
  0x38   :  { %1434 = vmatpush3.bf16.msra.mxu0 %v1531_v41  ;;  %1468 = vmatpush3.bf16.msra.mxu1 %v1531_v41 }
  0x39   :  { %1435 = vmatprep.subr.bf16.mxu0 %v1533_v42  ;;  %1461 = vmatprep.subr.bf16.mxu1 %v1533_v42 }
  0x3a   :  { %401 = vmatmul.mubr.bf16.gmra.mxu0 %v1526_v43  ;;  %514 = vmatmul.mubr.bf16.gmra.mxu1 %v1526_v43 }
  0x3b   :  { %410 = vmatprep.mubr.bf16.mxu0 %v1536_v1  ;;  %523 = vmatprep.mubr.bf16.mxu1 %v1536_v1 }
  0x3c   :  { %1436 = vmatpush3.bf16.msra.mxu0 %v1533_v42  ;;  %1469 = vmatpush3.bf16.msra.mxu1 %v1533_v42 }
  0x3d   :  { %1437 = vmatprep.subr.bf16.mxu0 %v1535_v44  ;;  %1462 = vmatprep.subr.bf16.mxu1 %v1535_v44 }
  0x40   :  { %1438 = vmatpush3.bf16.msra.mxu0 %v1535_v44  ;;  %1470 = vmatpush3.bf16.msra.mxu1 %v1535_v44 }
  0x42   :  { %411 = vmatmul.mubr.bf16.gmra.mxu0 %v1528_v45  ;;  %524 = vmatmul.mubr.bf16.gmra.mxu1 %v1528_v45 }
  0x43   :  { %420 = vmatprep.mubr.bf16.mxu0 %v1536_v1  ;;  %533 = vmatprep.mubr.bf16.mxu1 %v1536_v1 }
  0x4a   :  { %421 = vmatmul.mubr.bf16.gmra.mxu0 %v1530_v46  ;;  %534 = vmatmul.mubr.bf16.gmra.mxu1 %v1530_v46 }
  0x4b   :  { %430 = vmatprep.mubr.bf16.mxu0 %v1536_v1  ;;  %543 = vmatprep.mubr.bf16.mxu1 %v1536_v1 }
  0x52   :  { %431 = vmatmul.mubr.bf16.gmra.mxu0 %v1532_v47  ;;  %544 = vmatmul.mubr.bf16.gmra.mxu1 %v1532_v47 }
  0x53   :  { %440 = vmatprep.mubr.bf16.mxu0 %v1536_v1  ;;  %553 = vmatprep.mubr.bf16.mxu1 %v1536_v1 }
  0x5a   :  { %441 = vmatmul.mubr.bf16.gmra.mxu0 %v1534_v48  ;;  %554 = vmatmul.mubr.bf16.gmra.mxu1 %v1534_v48 }
  0x5b   :  { %1439 = vmatprep.mubr.bf16.mxu0 %v1666_v34  ;;  %1447 = vmatprep.mubr.bf16.mxu1 %v1528_v45 }
  0x62   :  { %1440 = vmatmul.mubr.bf16.vlgmr.msra.gmra.mxu0 %v1681_v37  ;;  %1448 = vmatmul.mubr.bf16.vlgmr.msra.gmra.mxu1 %v1530_v46 }
  0x63   :  { %1443 = vmatprep.mubr.bf16.mxu0 %v1524_v40  ;;  %1451 = vmatprep.mubr.bf16.mxu1 %v1532_v47 }
  0x6a   :  { %1444 = vmatmul.mubr.bf16.gmra.mxu0 %v1526_v43  ;;  %1452 = vmatmul.mubr.bf16.gmra.mxu1 %v1534_v48 }
  0xe2   :  { %v372_v63 = vpop.f32.mrf.mxu0  ;;  %v485_v0 = vpop.f32.mrf.mxu1 }
  0xe3   :  { %v688_v1 = vmul.f32 %v1749_v57, %v372_v63  ;;  %v690_v2 = vmul.f32 %v1752_v58, %v485_v0 }
  0xe4   :  { %v374_v5 = vpop.f32.mrf.mxu0  ;;  %v487_v6 = vpop.f32.mrf.mxu1 }
  0xe5   :  { %v795_v7 = vadd.f32 %v1755_v59, %v688_v1  ;;  %v797_v8 = vadd.f32 %v1758_v60, %v690_v2  ;;  %v689_v9 = vmul.f32 %v1761_v61, %v374_v5  ;;  %v691_v10 = vmul.f32 %v1764_v62, %v487_v6 }
  0xe6   :  { %v376_v11 = vpop.f32.mrf.mxu0  ;;  %v489_v12 = vpop.f32.mrf.mxu1 }
  0xe7   :  { %v796_v13 = vadd.f32 %v1769_v3, %v689_v9  ;;  %v798_v14 = vadd.f32 %v1772_v4, %v691_v10  ;;  %v875_v15 = vmax.f32 %v795_v7, 0.0  ;;  %v877_v16 = vmax.f32 %v797_v8, 0.0 }
  0xe8   :  { %v693_v17 = vmul.f32 %v1749_v57, %v376_v11  ;;  %v695_v18 = vmul.f32 %v1752_v58, %v489_v12  ;;  %v378_v19 = vpop.f32.mrf.mxu0  ;;  %v491_v20 = vpop.f32.mrf.mxu1 }
  0xe9   :  { %v876_v21 = vmax.f32 %v796_v13, 0.0  ;;  %v878_v22 = vmax.f32 %v798_v14, 0.0  ;;  %v694_v23 = vmul.f32 %v1761_v61, %v378_v19  ;;  %v696_v24 = vmul.f32 %v1764_v62, %v491_v20 }
  0xea   :  { %v800_v25 = vadd.f32 %v1755_v59, %v693_v17  ;;  %v802_v26 = vadd.f32 %v1758_v60, %v695_v18  ;;  %v382_v27 = vpop.f32.mrf.mxu0  ;;  %v495_v28 = vpop.f32.mrf.mxu1 }
  0xeb   :  { %v1359_v29 = vpack.c.bf16 %v876_v21, %v875_v15  ;;  %v1360_v30 = vpack.c.bf16 %v878_v22, %v877_v16  ;;  %v801_v31 = vadd.f32 %v1769_v3, %v694_v23  ;;  %v803_v32 = vadd.f32 %v1772_v4, %v696_v24 }
  0xec   :  { %v880_v33 = vmax.f32 %v800_v25, 0.0  ;;  %v882_v34 = vmax.f32 %v802_v26, 0.0  ;;  %v698_v35 = vmul.f32 %v1749_v57, %v382_v27  ;;  %v700_v36 = vmul.f32 %v1752_v58, %v495_v28  ;;  %v384_v37 = vpop.f32.mrf.mxu0  ;;  %v497_v38 = vpop.f32.mrf.mxu1 }
  0xed   :  { %1211 = vst [vmem:[%s2087_s4] sm:$0xff] %v1359_v29  ;;  %1212 = vst [vmem:[%s2087_s4 + $0x8] sm:$0xff] %v1360_v30  ;;  %v881_v39 = vmax.f32 %v801_v31, 0.0  ;;  %v883_v40 = vmax.f32 %v803_v32, 0.0  ;;  %v699_v41 = vmul.f32 %v1761_v61, %v384_v37  ;;  %v701_v42 = vmul.f32 %v1764_v62, %v497_v38 }
  0xee   :  { %v805_v43 = vadd.f32 %v1755_v59, %v698_v35  ;;  %v807_v44 = vadd.f32 %v1758_v60, %v700_v36  ;;  %v386_v45 = vpop.f32.mrf.mxu0  ;;  %v499_v46 = vpop.f32.mrf.mxu1 }
  0xef   :  { %v1362_v47 = vpack.c.bf16 %v881_v39, %v880_v33  ;;  %v1363_v48 = vpack.c.bf16 %v883_v40, %v882_v34  ;;  %v806_v49 = vadd.f32 %v1769_v3, %v699_v41  ;;  %v808_v51 = vadd.f32 %v1772_v4, %v701_v42 }
  0xf0   :  { %v885_v52 = vmax.f32 %v805_v43, 0.0  ;;  %v887_v54 = vmax.f32 %v807_v44, 0.0  ;;  %v703_v55 = vmul.f32 %v1749_v57, %v386_v45  ;;  %v705_v63 = vmul.f32 %v1752_v58, %v499_v46  ;;  %v388_v0 = vpop.f32.mrf.mxu0  ;;  %v501_v1 = vpop.f32.mrf.mxu1 }
  0xf1   :  { %1214 = vst [vmem:[%s2087_s4 + $0x14] sm:$0xff] %v1362_v47  ;;  %1215 = vst [vmem:[%s2087_s4 + $0x1c] sm:$0xff] %v1363_v48  ;;  %v886_v2 = vmax.f32 %v806_v49, 0.0  ;;  %v888_v5 = vmax.f32 %v808_v51, 0.0  ;;  %v704_v6 = vmul.f32 %v1761_v61, %v388_v0  ;;  %v706_v7 = vmul.f32 %v1764_v62, %v501_v1 }
  0xf2   :  { %v810_v8 = vadd.f32 %v1755_v59, %v703_v55  ;;  %v812_v9 = vadd.f32 %v1758_v60, %v705_v63  ;;  %v392_v10 = vpop.f32.mrf.mxu0  ;;  %v505_v11 = vpop.f32.mrf.mxu1 }
  0xf3   :  { %v1365_v12 = vpack.c.bf16 %v886_v2, %v885_v52  ;;  %v1366_v13 = vpack.c.bf16 %v888_v5, %v887_v54  ;;  %v811_v14 = vadd.f32 %v1769_v3, %v704_v6  ;;  %v813_v15 = vadd.f32 %v1772_v4, %v706_v7 }
  0xf4   :  { %v890_v16 = vmax.f32 %v810_v8, 0.0  ;;  %v892_v17 = vmax.f32 %v812_v9, 0.0  ;;  %v708_v18 = vmul.f32 %v1749_v57, %v392_v10  ;;  %v710_v19 = vmul.f32 %v1752_v58, %v505_v11  ;;  %v394_v20 = vpop.f32.mrf.mxu0  ;;  %v507_v21 = vpop.f32.mrf.mxu1 }
  0xf5   :  { %1217 = vst [vmem:[%s2087_s4 + $0x28] sm:$0xff] %v1365_v12  ;;  %1218 = vst [vmem:[%s2087_s4 + $0x30] sm:$0xff] %v1366_v13  ;;  %v891_v22 = vmax.f32 %v811_v14, 0.0  ;;  %v893_v23 = vmax.f32 %v813_v15, 0.0  ;;  %v709_v24 = vmul.f32 %v1761_v61, %v394_v20  ;;  %v711_v25 = vmul.f32 %v1764_v62, %v507_v21 }
  0xf6   :  { %v815_v26 = vadd.f32 %v1755_v59, %v708_v18  ;;  %v817_v27 = vadd.f32 %v1758_v60, %v710_v19  ;;  %v396_v28 = vpop.f32.mrf.mxu0  ;;  %v509_v29 = vpop.f32.mrf.mxu1 }
  0xf7   :  { %v1368_v30 = vpack.c.bf16 %v891_v22, %v890_v16  ;;  %v1369_v31 = vpack.c.bf16 %v893_v23, %v892_v17  ;;  %v816_v32 = vadd.f32 %v1769_v3, %v709_v24  ;;  %v818_v33 = vadd.f32 %v1772_v4, %v711_v25 }
  0xf8   :  { %v895_v34 = vmax.f32 %v815_v26, 0.0  ;;  %v897_v35 = vmax.f32 %v817_v27, 0.0  ;;  %v713_v36 = vmul.f32 %v1749_v57, %v396_v28  ;;  %v715_v37 = vmul.f32 %v1752_v58, %v509_v29  ;;  %v398_v38 = vpop.f32.mrf.mxu0  ;;  %v511_v39 = vpop.f32.mrf.mxu1 }
  0xf9   :  { %1220 = vst [vmem:[%s2087_s4 + $0x3c] sm:$0xff] %v1368_v30  ;;  %1221 = vst [vmem:[%s2087_s4 + $0x44] sm:$0xff] %v1369_v31  ;;  %v896_v40 = vmax.f32 %v816_v32, 0.0  ;;  %v898_v41 = vmax.f32 %v818_v33, 0.0  ;;  %v714_v42 = vmul.f32 %v1761_v61, %v398_v38  ;;  %v716_v43 = vmul.f32 %v1764_v62, %v511_v39 }
  0xfa   :  { %v820_v44 = vadd.f32 %v1755_v59, %v713_v36  ;;  %v822_v45 = vadd.f32 %v1758_v60, %v715_v37  ;;  %v402_v46 = vpop.f32.mrf.mxu0  ;;  %v515_v47 = vpop.f32.mrf.mxu1 }
  0xfb   :  { %v1371_v48 = vpack.c.bf16 %v896_v40, %v895_v34  ;;  %v1372_v49 = vpack.c.bf16 %v898_v41, %v897_v35  ;;  %v821_v51 = vadd.f32 %v1769_v3, %v714_v42  ;;  %v823_v52 = vadd.f32 %v1772_v4, %v716_v43 }
  0xfc   :  { %v900_v54 = vmax.f32 %v820_v44, 0.0  ;;  %v902_v55 = vmax.f32 %v822_v45, 0.0  ;;  %v718_v63 = vmul.f32 %v1749_v57, %v402_v46  ;;  %v720_v0 = vmul.f32 %v1752_v58, %v515_v47  ;;  %v404_v1 = vpop.f32.mrf.mxu0  ;;  %v517_v2 = vpop.f32.mrf.mxu1 }
  0xfd   :  { %1223 = vst [vmem:[%s2087_s4 + $0x50] sm:$0xff] %v1371_v48  ;;  %1224 = vst [vmem:[%s2087_s4 + $0x58] sm:$0xff] %v1372_v49  ;;  %v901_v5 = vmax.f32 %v821_v51, 0.0  ;;  %v903_v6 = vmax.f32 %v823_v52, 0.0  ;;  %v719_v7 = vmul.f32 %v1761_v61, %v404_v1  ;;  %v721_v8 = vmul.f32 %v1764_v62, %v517_v2 }
  0xfe   :  { %v825_v9 = vadd.f32 %v1755_v59, %v718_v63  ;;  %v827_v10 = vadd.f32 %v1758_v60, %v720_v0  ;;  %v406_v11 = vpop.f32.mrf.mxu0  ;;  %v519_v12 = vpop.f32.mrf.mxu1 }
  0xff   :  { %v1374_v13 = vpack.c.bf16 %v901_v5, %v900_v54  ;;  %v1375_v14 = vpack.c.bf16 %v903_v6, %v902_v55  ;;  %v826_v15 = vadd.f32 %v1769_v3, %v719_v7  ;;  %v828_v16 = vadd.f32 %v1772_v4, %v721_v8 }
 0x100   :  { %v905_v17 = vmax.f32 %v825_v9, 0.0  ;;  %v907_v18 = vmax.f32 %v827_v10, 0.0  ;;  %v723_v19 = vmul.f32 %v1749_v57, %v406_v11  ;;  %v725_v20 = vmul.f32 %v1752_v58, %v519_v12  ;;  %v408_v21 = vpop.f32.mrf.mxu0  ;;  %v521_v22 = vpop.f32.mrf.mxu1 }
 0x101   :  { %1226 = vst [vmem:[%s2087_s4 + $0x64] sm:$0xff] %v1374_v13  ;;  %1227 = vst [vmem:[%s2087_s4 + $0x6c] sm:$0xff] %v1375_v14  ;;  %v906_v23 = vmax.f32 %v826_v15, 0.0  ;;  %v908_v24 = vmax.f32 %v828_v16, 0.0  ;;  %v724_v25 = vmul.f32 %v1761_v61, %v408_v21  ;;  %v726_v26 = vmul.f32 %v1764_v62, %v521_v22 }
 0x102   :  { %v830_v27 = vadd.f32 %v1755_v59, %v723_v19  ;;  %v832_v28 = vadd.f32 %v1758_v60, %v725_v20  ;;  %v412_v29 = vpop.f32.mrf.mxu0  ;;  %v525_v30 = vpop.f32.mrf.mxu1 }
 0x103   :  { %v1377_v31 = vpack.c.bf16 %v906_v23, %v905_v17  ;;  %v1378_v32 = vpack.c.bf16 %v908_v24, %v907_v18  ;;  %v831_v33 = vadd.f32 %v1769_v3, %v724_v25  ;;  %v833_v34 = vadd.f32 %v1772_v4, %v726_v26 }
 0x104   :  { %v910_v35 = vmax.f32 %v830_v27, 0.0  ;;  %v912_v36 = vmax.f32 %v832_v28, 0.0  ;;  %v728_v37 = vmul.f32 %v1749_v57, %v412_v29  ;;  %v730_v38 = vmul.f32 %v1752_v58, %v525_v30  ;;  %v414_v39 = vpop.f32.mrf.mxu0  ;;  %v527_v40 = vpop.f32.mrf.mxu1 }
 0x105   :  { %1229 = vst [vmem:[%s2087_s4 + $0x78] sm:$0xff] %v1377_v31  ;;  %1230 = vst [vmem:[%s2087_s4 + $0x80] sm:$0xff] %v1378_v32  ;;  %v911_v41 = vmax.f32 %v831_v33, 0.0  ;;  %v913_v42 = vmax.f32 %v833_v34, 0.0  ;;  %v729_v43 = vmul.f32 %v1761_v61, %v414_v39  ;;  %v731_v44 = vmul.f32 %v1764_v62, %v527_v40 }
 0x106   :  { %v835_v45 = vadd.f32 %v1755_v59, %v728_v37  ;;  %v837_v46 = vadd.f32 %v1758_v60, %v730_v38  ;;  %v416_v47 = vpop.f32.mrf.mxu0  ;;  %v529_v48 = vpop.f32.mrf.mxu1 }
 0x107   :  { %v1380_v49 = vpack.c.bf16 %v911_v41, %v910_v35  ;;  %v1381_v51 = vpack.c.bf16 %v913_v42, %v912_v36  ;;  %v836_v52 = vadd.f32 %v1769_v3, %v729_v43  ;;  %v838_v54 = vadd.f32 %v1772_v4, %v731_v44 }
 0x108   :  { %v915_v55 = vmax.f32 %v835_v45, 0.0  ;;  %v917_v63 = vmax.f32 %v837_v46, 0.0  ;;  %v733_v0 = vmul.f32 %v1749_v57, %v416_v47  ;;  %v735_v1 = vmul.f32 %v1752_v58, %v529_v48  ;;  %v418_v2 = vpop.f32.mrf.mxu0  ;;  %v531_v5 = vpop.f32.mrf.mxu1 }
 0x109   :  { %1232 = vst [vmem:[%s2087_s4 + $0x8c] sm:$0xff] %v1380_v49  ;;  %1233 = vst [vmem:[%s2087_s4 + $0x94] sm:$0xff] %v1381_v51  ;;  %v916_v6 = vmax.f32 %v836_v52, 0.0  ;;  %v918_v7 = vmax.f32 %v838_v54, 0.0  ;;  %v734_v8 = vmul.f32 %v1761_v61, %v418_v2  ;;  %v736_v9 = vmul.f32 %v1764_v62, %v531_v5 }
 0x10a   :  { %v840_v10 = vadd.f32 %v1755_v59, %v733_v0  ;;  %v842_v11 = vadd.f32 %v1758_v60, %v735_v1  ;;  %v422_v12 = vpop.f32.mrf.mxu0  ;;  %v535_v13 = vpop.f32.mrf.mxu1 }
 0x10b   :  { %v1383_v14 = vpack.c.bf16 %v916_v6, %v915_v55  ;;  %v1384_v15 = vpack.c.bf16 %v918_v7, %v917_v63  ;;  %v841_v16 = vadd.f32 %v1769_v3, %v734_v8  ;;  %v843_v17 = vadd.f32 %v1772_v4, %v736_v9 }
 0x10c   :  { %v920_v18 = vmax.f32 %v840_v10, 0.0  ;;  %v922_v19 = vmax.f32 %v842_v11, 0.0  ;;  %v738_v20 = vmul.f32 %v1749_v57, %v422_v12  ;;  %v740_v21 = vmul.f32 %v1752_v58, %v535_v13  ;;  %v424_v22 = vpop.f32.mrf.mxu0  ;;  %v537_v23 = vpop.f32.mrf.mxu1 }
 0x10d   :  { %1235 = vst [vmem:[%s2087_s4 + $0xa0] sm:$0xff] %v1383_v14  ;;  %1236 = vst [vmem:[%s2087_s4 + $0xa8] sm:$0xff] %v1384_v15  ;;  %v921_v24 = vmax.f32 %v841_v16, 0.0  ;;  %v923_v25 = vmax.f32 %v843_v17, 0.0  ;;  %v739_v26 = vmul.f32 %v1761_v61, %v424_v22  ;;  %v741_v27 = vmul.f32 %v1764_v62, %v537_v23 }
 0x10e   :  { %v845_v28 = vadd.f32 %v1755_v59, %v738_v20  ;;  %v847_v29 = vadd.f32 %v1758_v60, %v740_v21  ;;  %v426_v30 = vpop.f32.mrf.mxu0  ;;  %v539_v31 = vpop.f32.mrf.mxu1 }
 0x10f   :  { %v1386_v32 = vpack.c.bf16 %v921_v24, %v920_v18  ;;  %v1387_v33 = vpack.c.bf16 %v923_v25, %v922_v19  ;;  %v846_v34 = vadd.f32 %v1769_v3, %v739_v26  ;;  %v848_v35 = vadd.f32 %v1772_v4, %v741_v27 }
 0x110   :  { %v925_v36 = vmax.f32 %v845_v28, 0.0  ;;  %v927_v37 = vmax.f32 %v847_v29, 0.0  ;;  %v743_v38 = vmul.f32 %v1749_v57, %v426_v30  ;;  %v745_v39 = vmul.f32 %v1752_v58, %v539_v31  ;;  %v428_v40 = vpop.f32.mrf.mxu0  ;;  %v541_v41 = vpop.f32.mrf.mxu1 }
 0x111   :  { %1238 = vst [vmem:[%s2087_s4 + $0xb4] sm:$0xff] %v1386_v32  ;;  %1239 = vst [vmem:[%s2087_s4 + $0xbc] sm:$0xff] %v1387_v33  ;;  %v926_v42 = vmax.f32 %v846_v34, 0.0  ;;  %v928_v43 = vmax.f32 %v848_v35, 0.0  ;;  %v744_v44 = vmul.f32 %v1761_v61, %v428_v40  ;;  %v746_v45 = vmul.f32 %v1764_v62, %v541_v41 }
 0x112   :  { %v850_v46 = vadd.f32 %v1755_v59, %v743_v38  ;;  %v852_v47 = vadd.f32 %v1758_v60, %v745_v39  ;;  %v432_v48 = vpop.f32.mrf.mxu0  ;;  %v545_v49 = vpop.f32.mrf.mxu1  ;;  %v681_v33 = vsub.s32 4, %v1732_v50 }
 0x113   :  { %v1389_v51 = vpack.c.bf16 %v926_v42, %v925_v36  ;;  %v1390_v52 = vpack.c.bf16 %v928_v43, %v927_v37  ;;  %v851_v54 = vadd.f32 %v1769_v3, %v744_v44  ;;  %v853_v55 = vadd.f32 %v1772_v4, %v746_v45 }
 0x114   :  { %v930_v63 = vmax.f32 %v850_v46, 0.0  ;;  %v932_v0 = vmax.f32 %v852_v47, 0.0  ;;  %v748_v1 = vmul.f32 %v1749_v57, %v432_v48  ;;  %v750_v2 = vmul.f32 %v1752_v58, %v545_v49  ;;  %v434_v5 = vpop.f32.mrf.mxu0  ;;  %v547_v6 = vpop.f32.mrf.mxu1 }
 0x115   :  { %1241 = vst [vmem:[%s2087_s4 + $0xc8] sm:$0xff] %v1389_v51  ;;  %1242 = vst [vmem:[%s2087_s4 + $0xd0] sm:$0xff] %v1390_v52  ;;  %v931_v7 = vmax.f32 %v851_v54, 0.0  ;;  %v933_v8 = vmax.f32 %v853_v55, 0.0  ;;  %v749_v9 = vmul.f32 %v1761_v61, %v434_v5  ;;  %v751_v10 = vmul.f32 %v1764_v62, %v547_v6 }
 0x116   :  { %v855_v11 = vadd.f32 %v1755_v59, %v748_v1  ;;  %v857_v12 = vadd.f32 %v1758_v60, %v750_v2  ;;  %v436_v13 = vpop.f32.mrf.mxu0  ;;  %v549_v14 = vpop.f32.mrf.mxu1  ;;  %v1970_v52 = vrot.slane %v1739_v53, %v681_v33 }
 0x117   :  { %v1392_v15 = vpack.c.bf16 %v931_v7, %v930_v63  ;;  %v1393_v16 = vpack.c.bf16 %v933_v8, %v932_v0  ;;  %v856_v17 = vadd.f32 %v1769_v3, %v749_v9  ;;  %v858_v18 = vadd.f32 %v1772_v4, %v751_v10 }
 0x118   :  { %v935_v19 = vmax.f32 %v855_v11, 0.0  ;;  %v937_v20 = vmax.f32 %v857_v12, 0.0  ;;  %v753_v21 = vmul.f32 %v1749_v57, %v436_v13  ;;  %v755_v22 = vmul.f32 %v1752_v58, %v549_v14  ;;  %v438_v23 = vpop.f32.mrf.mxu0  ;;  %v551_v24 = vpop.f32.mrf.mxu1 }
 0x119   :  { %1244 = vst [vmem:[%s2087_s4 + $0xdc] sm:$0xff] %v1392_v15  ;;  %1245 = vst [vmem:[%s2087_s4 + $0xe4] sm:$0xff] %v1393_v16  ;;  %v936_v25 = vmax.f32 %v856_v17, 0.0  ;;  %v938_v26 = vmax.f32 %v858_v18, 0.0  ;;  %v754_v27 = vmul.f32 %v1761_v61, %v438_v23  ;;  %v756_v28 = vmul.f32 %v1764_v62, %v551_v24 }
 0x11a   :  { %v860_v29 = vadd.f32 %v1755_v59, %v753_v21  ;;  %v862_v30 = vadd.f32 %v1758_v60, %v755_v22  ;;  %v442_v31 = vpop.f32.mrf.mxu0  ;;  %v555_v32 = vpop.f32.mrf.mxu1  ;;  %v1987_v13 = vrot.slane %v1746_v56, %v681_v33 }
 0x11b   :  { %v1395_v34 = vpack.c.bf16 %v936_v25, %v935_v19  ;;  %v1396_v35 = vpack.c.bf16 %v938_v26, %v937_v20  ;;  %v861_v36 = vadd.f32 %v1769_v3, %v754_v27  ;;  %v863_v37 = vadd.f32 %v1772_v4, %v756_v28 }
 0x11c   :  { %v940_v38 = vmax.f32 %v860_v29, 0.0  ;;  %v942_v39 = vmax.f32 %v862_v30, 0.0  ;;  %v758_v40 = vmul.f32 %v1749_v57, %v442_v31  ;;  %v760_v41 = vmul.f32 %v1752_v58, %v555_v32  ;;  %v444_v42 = vpop.f32.mrf.mxu0  ;;  %v557_v43 = vpop.f32.mrf.mxu1 }
 0x11d   :  { %1247 = vst [vmem:[%s2087_s4 + $0xf0] sm:$0xff] %v1395_v34  ;;  %1248 = vst [vmem:[%s2087_s4 + $0xf8] sm:$0xff] %v1396_v35  ;;  %v941_v50 = vmax.f32 %v861_v36, 0.0  ;;  %v943_v44 = vmax.f32 %v863_v37, 0.0  ;;  %v759_v45 = vmul.f32 %v1761_v61, %v444_v42  ;;  %v761_v46 = vmul.f32 %v1764_v62, %v557_v43 }
 0x11e   :  { %v865_v47 = vadd.f32 %v1755_v59, %v758_v40  ;;  %v867_v48 = vadd.f32 %v1758_v60, %v760_v41  ;;  %v446_v49 = vpop.f32.mrf.mxu0  ;;  %v559_v51 = vpop.f32.mrf.mxu1 }
 0x11f   :  { %v1398_v54 = vpack.c.bf16 %v941_v50, %v940_v38  ;;  %v1399_v55 = vpack.c.bf16 %v943_v44, %v942_v39  ;;  %v866_v63 = vadd.f32 %v1769_v3, %v759_v45  ;;  %v868_v0 = vadd.f32 %v1772_v4, %v761_v46 }
 0x120   :  { %v945_v1 = vmax.f32 %v865_v47, 0.0  ;;  %v947_v2 = vmax.f32 %v867_v48, 0.0  ;;  %v763_v5 = vmul.f32 %v1749_v57, %v446_v49  ;;  %v765_v6 = vmul.f32 %v1752_v58, %v559_v51  ;;  %v448_v7 = vpop.f32.mrf.mxu0  ;;  %v561_v8 = vpop.f32.mrf.mxu1 }
 0x121   :  { %1250 = vst [vmem:[%s2087_s4 + $0x104] sm:$0xff] %v1398_v54  ;;  %1251 = vst [vmem:[%s2087_s4 + $0x10c] sm:$0xff] %v1399_v55  ;;  %v946_v53 = vmax.f32 %v866_v63, 0.0  ;;  %v948_v9 = vmax.f32 %v868_v0, 0.0  ;;  %v764_v10 = vmul.f32 %v1761_v61, %v448_v7  ;;  %v766_v11 = vmul.f32 %v1764_v62, %v561_v8 }
 0x122   :  { %v870_v57 = vadd.f32 %v1755_v59, %v763_v5  ;;  %v872_v58 = vadd.f32 %v1758_v60, %v765_v6  ;;  %v1441_v12 = vpop.f32.mrf.mxu0  ;;  %v1449_v14 = vpop.f32.mrf.mxu1 }
 0x123   :  { %v1401_v15 = vpack.c.bf16 %v946_v53, %v945_v1  ;;  %v1402_v16 = vpack.c.bf16 %v948_v9, %v947_v2  ;;  %v871_v17 = vadd.f32 %v1769_v3, %v764_v10  ;;  %v873_v18 = vadd.f32 %v1772_v4, %v766_v11 }
 0x124   :  { %v950_v19 = vmax.f32 %v870_v57, 0.0  ;;  %v952_v20 = vmax.f32 %v872_v58, 0.0  ;;  %v702_v61 = vmul.f32 %v1441_v12, %v1970_v52  ;;  %v742_v62 = vmul.f32 %v1449_v14, %v1970_v52  ;;  %v598_v59 = vpop.f32.mrf.mxu0  ;;  %v630_v21 = vpop.f32.mrf.mxu1 }
 0x125   :  { %1253 = vst [vmem:[%s2087_s4 + $0x118] sm:$0xff] %v1401_v15  ;;  %1254 = vst [vmem:[%s2087_s4 + $0x120] sm:$0xff] %v1402_v16  ;;  %v951_v56 = vmax.f32 %v871_v17, 0.0  ;;  %v953_v60 = vmax.f32 %v873_v18, 0.0  ;;  %v692_v3 = vmul.f32 %v1970_v52, %v598_v59  ;;  %v732_v4 = vmul.f32 %v1970_v52, %v630_v21 }
 0x126   :  { %v809_v22 = vadd.f32 %v1987_v13, %v702_v61  ;;  %v849_v23 = vadd.f32 %v1987_v13, %v742_v62  ;;  %v1442_v24 = vpop.f32.mrf.mxu0  ;;  %v1450_v25 = vpop.f32.mrf.mxu1 }
 0x127   :  { %v1404_v26 = vpack.c.bf16 %v951_v56, %v950_v19  ;;  %v1405_v27 = vpack.c.bf16 %v953_v60, %v952_v20  ;;  %v799_v28 = vadd.f32 %v1987_v13, %v692_v3  ;;  %v839_v29 = vadd.f32 %v1987_v13, %v732_v4 }
 0x128   :  { %v889_v30 = vmax.f32 %v809_v22, 0.0  ;;  %v929_v31 = vmax.f32 %v849_v23, 0.0  ;;  %v707_v32 = vmul.f32 %v1442_v24, %v1970_v52  ;;  %v747_v33 = vmul.f32 %v1450_v25, %v1970_v52  ;;  %v601_v34 = vpop.f32.mrf.mxu0  ;;  %v633_v35 = vpop.f32.mrf.mxu1 }
 0x129   :  { %1256 = vst [vmem:[%s2087_s4 + $0x12c] sm:$0xff] %v1404_v26  ;;  %1257 = vst [vmem:[%s2087_s4 + $0x134] sm:$0xff] %v1405_v27  ;;  %v879_v36 = vmax.f32 %v799_v28, 0.0  ;;  %v919_v37 = vmax.f32 %v839_v29, 0.0  ;;  %v697_v38 = vmul.f32 %v1970_v52, %v601_v34  ;;  %v737_v39 = vmul.f32 %v1970_v52, %v633_v35 }
 0x12a   :  { %v1367_v40 = vpack.c.bf16 %v889_v30, %v889_v30  ;;  %v1391_v41 = vpack.c.bf16 %v929_v31, %v929_v31  ;;  %v814_v42 = vadd.f32 %v1987_v13, %v707_v32  ;;  %v854_v43 = vadd.f32 %v1987_v13, %v747_v33  ;;  %v1445_v50 = vpop.f32.mrf.mxu0  ;;  %v1453_v44 = vpop.f32.mrf.mxu1 }
 0x12b   :  { %v1361_v45 = vpack.c.bf16 %v879_v36, %v879_v36  ;;  %v1385_v46 = vpack.c.bf16 %v919_v37, %v919_v37  ;;  %v804_v47 = vadd.f32 %v1987_v13, %v697_v38  ;;  %v844_v48 = vadd.f32 %v1987_v13, %v737_v39 }
 0x12c   :  { %1219 = vst [vmem:[%s2087_s4 + $0x38] sm:$0xf] %v1367_v40  ;;  %1243 = vst [vmem:[%s2087_s4 + $0xd8] sm:$0xf] %v1391_v41  ;;  %v894_v49 = vmax.f32 %v814_v42, 0.0  ;;  %v934_v51 = vmax.f32 %v854_v43, 0.0  ;;  %v722_v54 = vmul.f32 %v1445_v50, %v1970_v52  ;;  %v762_v55 = vmul.f32 %v1453_v44, %v1970_v52  ;;  %v614_v63 = vpop.f32.mrf.mxu0  ;;  %v646_v0 = vpop.f32.mrf.mxu1 }
 0x12d   :  { %1213 = vst [vmem:[%s2087_s4 + $0x10] sm:$0xf] %v1361_v45  ;;  %1237 = vst [vmem:[%s2087_s4 + $0xb0] sm:$0xf] %v1385_v46  ;;  %v884_v1 = vmax.f32 %v804_v47, 0.0  ;;  %v924_v2 = vmax.f32 %v844_v48, 0.0  ;;  %v712_v5 = vmul.f32 %v1970_v52, %v614_v63  ;;  %v752_v6 = vmul.f32 %v1970_v52, %v646_v0 }
 0x12e   :  { %v1370_v7 = vpack.c.bf16 %v894_v49, %v894_v49  ;;  %v1394_v8 = vpack.c.bf16 %v934_v51, %v934_v51  ;;  %v829_v53 = vadd.f32 %v1987_v13, %v722_v54  ;;  %v869_v9 = vadd.f32 %v1987_v13, %v762_v55  ;;  %v1446_v10 = vpop.f32.mrf.mxu0  ;;  %v1454_v11 = vpop.f32.mrf.mxu1 }
 0x12f   :  { %v1364_v57 = vpack.c.bf16 %v884_v1, %v884_v1  ;;  %v1388_v58 = vpack.c.bf16 %v924_v2, %v924_v2  ;;  %v819_v12 = vadd.f32 %v1987_v13, %v712_v5  ;;  %v859_v14 = vadd.f32 %v1987_v13, %v752_v6 }
 0x130   :  { %1222 = vst [vmem:[%s2087_s4 + $0x4c] sm:$0xf] %v1370_v7  ;;  %1246 = vst [vmem:[%s2087_s4 + $0xec] sm:$0xf] %v1394_v8  ;;  %v909_v15 = vmax.f32 %v829_v53, 0.0  ;;  %v949_v16 = vmax.f32 %v869_v9, 0.0  ;;  %v727_v17 = vmul.f32 %v1446_v10, %v1970_v52  ;;  %v767_v18 = vmul.f32 %v1454_v11, %v1970_v52  ;;  %v617_v19 = vpop.f32.mrf.mxu0  ;;  %v649_v20 = vpop.f32.mrf.mxu1 }
 0x131   :  { %1216 = vst [vmem:[%s2087_s4 + $0x24] sm:$0xf] %v1364_v57  ;;  %1240 = vst [vmem:[%s2087_s4 + $0xc4] sm:$0xf] %v1388_v58  ;;  %v899_v61 = vmax.f32 %v819_v12, 0.0  ;;  %v939_v62 = vmax.f32 %v859_v14, 0.0  ;;  %v717_v59 = vmul.f32 %v1970_v52, %v617_v19  ;;  %v757_v21 = vmul.f32 %v1970_v52, %v649_v20 }
 0x132   :  { %v1379_v56 = vpack.c.bf16 %v909_v15, %v909_v15  ;;  %v1403_v60 = vpack.c.bf16 %v949_v16, %v949_v16  ;;  %v834_v3 = vadd.f32 %v1987_v13, %v727_v17  ;;  %v874_v4 = vadd.f32 %v1987_v13, %v767_v18 }
 0x133   :  { %v1373_v22 = vpack.c.bf16 %v899_v61, %v899_v61  ;;  %v1397_v23 = vpack.c.bf16 %v939_v62, %v939_v62  ;;  %v824_v24 = vadd.f32 %v1987_v13, %v717_v59  ;;  %v864_v25 = vadd.f32 %v1987_v13, %v757_v21 }
 0x134   :  { %1231 = vst [vmem:[%s2087_s4 + $0x88] sm:$0xf] %v1379_v56  ;;  %1255 = vst [vmem:[%s2087_s4 + $0x128] sm:$0xf] %v1403_v60  ;;  %v914_v52 = vmax.f32 %v834_v3, 0.0  ;;  %v954_v26 = vmax.f32 %v874_v4, 0.0 }
 0x135   :  { %1225 = vst [vmem:[%s2087_s4 + $0x60] sm:$0xf] %v1373_v22  ;;  %1249 = vst [vmem:[%s2087_s4 + $0x100] sm:$0xf] %v1397_v23  ;;  %v904_v27 = vmax.f32 %v824_v24, 0.0  ;;  %v944_v13 = vmax.f32 %v864_v25, 0.0 }
 0x136   :  { %v1382_v28 = vpack.c.bf16 %v914_v52, %v914_v52  ;;  %v1406_v29 = vpack.c.bf16 %v954_v26, %v954_v26 }
 0x137   :  { %v1376_v30 = vpack.c.bf16 %v904_v27, %v904_v27  ;;  %v1400_v31 = vpack.c.bf16 %v944_v13, %v944_v13 }
 0x138   :  { %1234 = vst [vmem:[%s2087_s4 + $0x9c] sm:$0xf] %v1382_v28  ;;  %1258 = vst [vmem:[%s2087_s4 + $0x13c] sm:$0xf] %v1406_v29 }
 0x139   :  { %1228 = vst [vmem:[%s2087_s4 + $0x74] sm:$0xf] %v1376_v30  ;;  %1252 = vst [vmem:[%s2087_s4 + $0x114] sm:$0xf] %v1400_v31 }

// kernel: basic_ae_forward.4
= control target key start
LH: loop header
LB: loop body
LE: loop exit
PB: predicated region body
PF: predicated region fallthrough
CT: control target
= control target key end

     0   :  { %s1967_s9 = smov 0   ;;  %s2508_s0 = inlined_call_operand.vmem [shape: bf16[1152,64], index: 0, kind: input, shape index: {}]   ;;  %s2509_s1 = inlined_call_operand.vmem [shape: bf16[64,512], index: 1, kind: input, shape index: {}]   ;;  %s2510_s2 = inlined_call_operand.vmem [shape: f32[1152,512], index: 2, kind: output, shape index: {}]  }
   0x1 LB: > { %s1739_s10 = sadd.s32 4294967295, %s1949_s9   ;;  %p1743_p0 = scmp.ge.s32.totalorder %s1949_s9, 1  ;;  %s1949_s9 = sphi %s1967_s9, %s12_s9  }
   0x2   : > { %p113_p1 = scmp.lt.s32.totalorder %s1949_s9, 3 }
   0x4   : > { %p114_p2 = pnand %p1743_p0, %p113_p1 }
   0x5   : > { %s136_s13 = smul.u32 (!%p114_p2), 72, %s1739_s10 }
   0x6   : > { %117 = sbr.rel (%p114_p2) target bundleno = 509 (0x1fd), region = 28 }
   0x7   : > { %p137_p3 = scmp.lt.s32.totalorder (!%p114_p2), %s136_s13, 143 }
   0xb   : > { %v1883_v0 = vld [vmem:[%s2509_s1 + $0x64] ss:$16 sps:$4 sm:$0xff]   ;;  %v1885_v1 = vld [vmem:[%s2509_s1 + $0x6c] ss:$16 sps:$4 sm:$0xff]   ;;  %v1951_v2 = vmov 0   ;;  %s2512_s13 = smov (!%p137_p3, %s136_s13), 143 }
   0xc   : > { %639 = vmatprep.mubr.bf16.mxu0 %v1951_v2  ;;  %1032 = vmatprep.mubr.bf16.mxu1 %v1951_v2  ;;  %v1887_v3 = vld [vmem:[%s2509_s1 + $0x60] ss:$16 sps:$4 sm:$0xff]   ;;  %v1888_v4 = vld [vmem:[%s2509_s1 + $0x68] ss:$16 sps:$4 sm:$0xff]   ;;  %v1889_v5 = vld [vmem:[%s2509_s1 + $0x44] ss:$16 sps:$4 sm:$0xff]  }
   0xd   : > { %615 = vmatprep.subr.bf16.mxu0 %v1883_v0  ;;  %1008 = vmatprep.subr.bf16.mxu1 %v1885_v1  ;;  %v1891_v6 = vld [vmem:[%s2509_s1 + $0x4c] ss:$16 sps:$4 sm:$0xff]   ;;  %v1893_v7 = vld [vmem:[%s2509_s1 + $0x40] ss:$16 sps:$4 sm:$0xff]   ;;  %v1894_v8 = vld [vmem:[%s2509_s1 + $0x48] ss:$16 sps:$4 sm:$0xff]  }
   0xe   : > { %616 = vmatpush1.bf16.msra.mxu0 %v1887_v3  ;;  %1009 = vmatpush1.bf16.msra.mxu1 %v1888_v4  ;;  %v1895_v9 = vld [vmem:[%s2509_s1 + $0x24] ss:$16 sps:$4 sm:$0xff]   ;;  %s1744_s30 = sshll.u32 %s2512_s13, 2  ;;  %v1897_v10 = vld [vmem:[%s2509_s1 + $0x2c] ss:$16 sps:$4 sm:$0xff]   ;;  %vm498_vm0 = vcmask 523264  }
   0xf   : > { %617 = vmatprep.subr.bf16.mxu0 %v1889_v5  ;;  %1010 = vmatprep.subr.bf16.mxu1 %v1891_v6  ;;  %v1899_v11 = vld [vmem:[%s2509_s1 + $0x20] ss:$16 sps:$4 sm:$0xff]   ;;  %v1900_v12 = vld [vmem:[%s2509_s1 + $0x28] ss:$16 sps:$4 sm:$0xff]   ;;  %v1901_v13 = vld [vmem:[%s2509_s1 + $0x4] ss:$16 sps:$4 sm:$0xff]   ;;  %s2025_s17 = scalar_lea.vmem %s2508_s0, %s1744_s30 }
  0x10   : > { %v1903_v14 = vld [vmem:[%s2509_s1 + $0xc] ss:$16 sps:$4 sm:$0xff]   ;;  %v1905_v15 = vld [vmem:[%s2509_s1] ss:$16 sps:$4 sm:$0xff]   ;;  %v1906_v16 = vld [vmem:[%s2509_s1 + $0x8] ss:$16 sps:$4 sm:$0xff]  }
  0x11   : > { %v1907_v17 = vld [vmem:[%s2025_s17] sm:$0xff]   ;;  %v1908_v18 = vld [vmem:[%s2025_s17 + $0x8] sm:$0xff]   ;;  %v1909_v19 = vld [vmem:[%s2025_s17 + $0x10] sm:$0xff]   ;;  %s1873_s22 = sshll.u32 %s2512_s13, 5 }
  0x12   : > { %618 = vmatpush1.bf16.msra.mxu0 %v1893_v7  ;;  %1011 = vmatpush1.bf16.msra.mxu1 %v1894_v8  ;;  %v1910_v20 = vld [vmem:[%s2025_s17 + $0x18] sm:$0xff]   ;;  %v1911_v21 = vld [vmem:[%s2025_s17 + $0x20] sm:$0xff]   ;;  %v1912_v22 = vld [vmem:[%s2025_s17 + $0x28] sm:$0xff]   ;;  %s2158_s25 = scalar_lea.vmem %s2510_s2, %s1873_s22 }
  0x13   : > { %619 = vmatprep.subr.bf16.mxu0 %v1895_v9  ;;  %1012 = vmatprep.subr.bf16.mxu1 %v1897_v10  ;;  %v1913_v23 = vld [vmem:[%s2025_s17 + $0x30] sm:$0xff]   ;;  %v1914_v24 = vld [vmem:[%s2025_s17 + $0x38] sm:$0xff]   ;;  %v1915_v25 = vld [vmem:[%s2025_s17 + $0x40] sm:$0xff]  }
  0x14   : > { %v1916_v26 = vld [vmem:[%s2025_s17 + $0x48] sm:$0xff]   ;;  %v1917_v27 = vld [vmem:[%s2025_s17 + $0x50] sm:$0xff]   ;;  %v1918_v28 = vld [vmem:[%s2025_s17 + $0x58] sm:$0xff]  }
  0x15   : > { %v1919_v29 = vld [vmem:[%s2025_s17 + $0x60] sm:$0xff]   ;;  %v1920_v30 = vld [vmem:[%s2025_s17 + $0x68] sm:$0xff]   ;;  %v1921_v31 = vld [vmem:[%s2025_s17 + $0x70] sm:$0xff]  }
  0x16   : > { %620 = vmatpush1.bf16.msra.mxu0 %v1899_v11  ;;  %1013 = vmatpush1.bf16.msra.mxu1 %v1900_v12  ;;  %v1922_v32 = vld [vmem:[%s2025_s17 + $0x78] sm:$0xff]   ;;  %v1923_v33 = vld [vmem:[%s2025_s17 + $0x80] sm:$0xff]   ;;  %v1924_v34 = vld [vmem:[%s2025_s17 + $0x88] sm:$0xff]  }
  0x17   : > { %621 = vmatprep.subr.bf16.mxu0 %v1901_v13  ;;  %1014 = vmatprep.subr.bf16.mxu1 %v1903_v14  ;;  %v1925_v35 = vld [vmem:[%s2025_s17 + $0x90] sm:$0xff]   ;;  %v1926_v36 = vld [vmem:[%s2025_s17 + $0x98] sm:$0xff]   ;;  %v1927_v37 = vld [vmem:[%s2025_s17 + $0xa0] sm:$0xff]  }
  0x18   : > { %v1928_v38 = vld [vmem:[%s2025_s17 + $0xa8] sm:$0xff]   ;;  %v1929_v39 = vld [vmem:[%s2025_s17 + $0xb0] sm:$0xff]   ;;  %v1930_v40 = vld [vmem:[%s2025_s17 + $0xb8] sm:$0xff]  }
  0x19   : > { %v1931_v41 = vld [vmem:[%s2025_s17 + $0xc0] sm:$0xff]   ;;  %v1932_v48 = vld [vmem:[%s2025_s17 + $0xc8] sm:$0xff]   ;;  %v1933_v57 = vld [vmem:[%s2025_s17 + $0xd0] sm:$0xff]  }
  0x1a   : > { %622 = vmatpush1.bf16.msra.mxu0 %v1905_v15  ;;  %1015 = vmatpush1.bf16.msra.mxu1 %v1906_v16  ;;  %v1934_v3 = vld [vmem:[%s2025_s17 + $0xd8] sm:$0xff]   ;;  %v1935_v12 = vld [vmem:[%s2025_s17 + $0xe0] sm:$0xff]  }
  0x1d   : > { %1799 = vmatmul.mubr.msk.bf16.vlgmr.msra.gmra.mxu0 %vm498_vm0, %v1907_v17  ;;  %1835 = vmatmul.mubr.msk.bf16.vlgmr.msra.gmra.mxu1 %vm498_vm0, %v1907_v17 }
  0x1e   : > { %649 = vmatprep.mubr.bf16.mxu0 %v1951_v2  ;;  %1042 = vmatprep.mubr.bf16.mxu1 %v1951_v2 }
  0x25   : > { %1800 = vmatmul.mubr.msk.bf16.gmra.mxu0 %vm498_vm0, %v1908_v18  ;;  %1836 = vmatmul.mubr.msk.bf16.gmra.mxu1 %vm498_vm0, %v1908_v18 }
  0x26   : > { %659 = vmatprep.mubr.bf16.mxu0 %v1951_v2  ;;  %1052 = vmatprep.mubr.bf16.mxu1 %v1951_v2 }
  0x2d   : > { %1801 = vmatmul.mubr.msk.bf16.gmra.mxu0 %vm498_vm0, %v1909_v19  ;;  %1837 = vmatmul.mubr.msk.bf16.gmra.mxu1 %vm498_vm0, %v1909_v19 }
  0x2e   : > { %669 = vmatprep.mubr.bf16.mxu0 %v1951_v2  ;;  %1062 = vmatprep.mubr.bf16.mxu1 %v1951_v2 }
  0x35   : > { %1802 = vmatmul.mubr.msk.bf16.gmra.mxu0 %vm498_vm0, %v1910_v20  ;;  %1838 = vmatmul.mubr.msk.bf16.gmra.mxu1 %vm498_vm0, %v1910_v20 }
  0x36   : > { %679 = vmatprep.mubr.bf16.mxu0 %v1951_v2  ;;  %1072 = vmatprep.mubr.bf16.mxu1 %v1951_v2 }
  0x3d   : > { %1803 = vmatmul.mubr.msk.bf16.gmra.mxu0 %vm498_vm0, %v1911_v21  ;;  %1839 = vmatmul.mubr.msk.bf16.gmra.mxu1 %vm498_vm0, %v1911_v21  ;;  %v1936_v21 = vld [vmem:[%s2025_s17 + $0xe8] sm:$0xff]  }
  0x3e   : > { %689 = vmatprep.mubr.bf16.mxu0 %v1951_v2  ;;  %1082 = vmatprep.mubr.bf16.mxu1 %v1951_v2 }
  0x45   : > { %1804 = vmatmul.mubr.msk.bf16.gmra.mxu0 %vm498_vm0, %v1912_v22  ;;  %1840 = vmatmul.mubr.msk.bf16.gmra.mxu1 %vm498_vm0, %v1912_v22 }
  0x46   : > { %699 = vmatprep.mubr.bf16.mxu0 %v1951_v2  ;;  %1092 = vmatprep.mubr.bf16.mxu1 %v1951_v2 }
  0x4d   : > { %1805 = vmatmul.mubr.msk.bf16.gmra.mxu0 %vm498_vm0, %v1913_v23  ;;  %1841 = vmatmul.mubr.msk.bf16.gmra.mxu1 %vm498_vm0, %v1913_v23 }
  0x4e   : > { %709 = vmatprep.mubr.bf16.mxu0 %v1951_v2  ;;  %1102 = vmatprep.mubr.bf16.mxu1 %v1951_v2 }
  0x55   : > { %1806 = vmatmul.mubr.msk.bf16.gmra.mxu0 %vm498_vm0, %v1914_v24  ;;  %1842 = vmatmul.mubr.msk.bf16.gmra.mxu1 %vm498_vm0, %v1914_v24 }
  0x56   : > { %719 = vmatprep.mubr.bf16.mxu0 %v1951_v2  ;;  %1112 = vmatprep.mubr.bf16.mxu1 %v1951_v2 }
  0x5d   : > { %1807 = vmatmul.mubr.msk.bf16.gmra.mxu0 %vm498_vm0, %v1915_v25  ;;  %1843 = vmatmul.mubr.msk.bf16.gmra.mxu1 %vm498_vm0, %v1915_v25 }
  0x5e   : > { %729 = vmatprep.mubr.bf16.mxu0 %v1951_v2  ;;  %1122 = vmatprep.mubr.bf16.mxu1 %v1951_v2 }
  0x65   : > { %1808 = vmatmul.mubr.msk.bf16.gmra.mxu0 %vm498_vm0, %v1916_v26  ;;  %1844 = vmatmul.mubr.msk.bf16.gmra.mxu1 %vm498_vm0, %v1916_v26 }
  0x66   : > { %739 = vmatprep.mubr.bf16.mxu0 %v1951_v2  ;;  %1132 = vmatprep.mubr.bf16.mxu1 %v1951_v2 }
  0x6d   : > { %1809 = vmatmul.mubr.msk.bf16.gmra.mxu0 %vm498_vm0, %v1917_v27  ;;  %1845 = vmatmul.mubr.msk.bf16.gmra.mxu1 %vm498_vm0, %v1917_v27 }
  0x6e   : > { %749 = vmatprep.mubr.bf16.mxu0 %v1951_v2  ;;  %1142 = vmatprep.mubr.bf16.mxu1 %v1951_v2 }
  0x75   : > { %1810 = vmatmul.mubr.msk.bf16.gmra.mxu0 %vm498_vm0, %v1918_v28  ;;  %1846 = vmatmul.mubr.msk.bf16.gmra.mxu1 %vm498_vm0, %v1918_v28 }
  0x76   : > { %759 = vmatprep.mubr.bf16.mxu0 %v1951_v2  ;;  %1152 = vmatprep.mubr.bf16.mxu1 %v1951_v2 }
  0x7d   : > { %1811 = vmatmul.mubr.msk.bf16.gmra.mxu0 %vm498_vm0, %v1919_v29  ;;  %1847 = vmatmul.mubr.msk.bf16.gmra.mxu1 %vm498_vm0, %v1919_v29 }
  0x7e   : > { %769 = vmatprep.mubr.bf16.mxu0 %v1951_v2  ;;  %1162 = vmatprep.mubr.bf16.mxu1 %v1951_v2 }
  0x85   : > { %1812 = vmatmul.mubr.msk.bf16.gmra.mxu0 %vm498_vm0, %v1920_v30  ;;  %1848 = vmatmul.mubr.msk.bf16.gmra.mxu1 %vm498_vm0, %v1920_v30  ;;  %v1937_v30 = vld [vmem:[%s2025_s17 + $0xf0] sm:$0xff]  }
  0x86   : > { %779 = vmatprep.mubr.bf16.mxu0 %v1951_v2  ;;  %1172 = vmatprep.mubr.bf16.mxu1 %v1951_v2 }
  0x8d   : > { %1813 = vmatmul.mubr.msk.bf16.gmra.mxu0 %vm498_vm0, %v1921_v31  ;;  %1849 = vmatmul.mubr.msk.bf16.gmra.mxu1 %vm498_vm0, %v1921_v31 }
  0x8e   : > { %789 = vmatprep.mubr.bf16.mxu0 %v1951_v2  ;;  %1182 = vmatprep.mubr.bf16.mxu1 %v1951_v2 }
  0x95   : > { %1814 = vmatmul.mubr.msk.bf16.gmra.mxu0 %vm498_vm0, %v1922_v32  ;;  %1850 = vmatmul.mubr.msk.bf16.gmra.mxu1 %vm498_vm0, %v1922_v32 }
  0x96   : > { %799 = vmatprep.mubr.bf16.mxu0 %v1951_v2  ;;  %1192 = vmatprep.mubr.bf16.mxu1 %v1951_v2 }
  0x9d   : > { %1815 = vmatmul.mubr.msk.bf16.gmra.mxu0 %vm498_vm0, %v1923_v33  ;;  %1851 = vmatmul.mubr.msk.bf16.gmra.mxu1 %vm498_vm0, %v1923_v33 }
  0x9e   : > { %809 = vmatprep.mubr.bf16.mxu0 %v1951_v2  ;;  %1202 = vmatprep.mubr.bf16.mxu1 %v1951_v2 }
  0xa5   : > { %1816 = vmatmul.mubr.msk.bf16.gmra.mxu0 %vm498_vm0, %v1924_v34  ;;  %1852 = vmatmul.mubr.msk.bf16.gmra.mxu1 %vm498_vm0, %v1924_v34 }
  0xa6   : > { %819 = vmatprep.mubr.bf16.mxu0 %v1951_v2  ;;  %1212 = vmatprep.mubr.bf16.mxu1 %v1951_v2 }
  0xad   : > { %1817 = vmatmul.mubr.msk.bf16.gmra.mxu0 %vm498_vm0, %v1925_v35  ;;  %1853 = vmatmul.mubr.msk.bf16.gmra.mxu1 %vm498_vm0, %v1925_v35 }
  0xae   : > { %829 = vmatprep.mubr.bf16.mxu0 %v1951_v2  ;;  %1222 = vmatprep.mubr.bf16.mxu1 %v1951_v2 }
  0xb5   : > { %1818 = vmatmul.mubr.msk.bf16.gmra.mxu0 %vm498_vm0, %v1926_v36  ;;  %1854 = vmatmul.mubr.msk.bf16.gmra.mxu1 %vm498_vm0, %v1926_v36 }
  0xb6   : > { %839 = vmatprep.mubr.bf16.mxu0 %v1951_v2  ;;  %1232 = vmatprep.mubr.bf16.mxu1 %v1951_v2 }
  0xbd   : > { %1819 = vmatmul.mubr.msk.bf16.gmra.mxu0 %vm498_vm0, %v1927_v37  ;;  %1855 = vmatmul.mubr.msk.bf16.gmra.mxu1 %vm498_vm0, %v1927_v37 }
  0xbe   : > { %849 = vmatprep.mubr.bf16.mxu0 %v1951_v2  ;;  %1242 = vmatprep.mubr.bf16.mxu1 %v1951_v2 }
  0xc5   : > { %1820 = vmatmul.mubr.msk.bf16.gmra.mxu0 %vm498_vm0, %v1928_v38  ;;  %1856 = vmatmul.mubr.msk.bf16.gmra.mxu1 %vm498_vm0, %v1928_v38 }
  0xc6   : > { %859 = vmatprep.mubr.bf16.mxu0 %v1951_v2  ;;  %1252 = vmatprep.mubr.bf16.mxu1 %v1951_v2 }
  0xcd   : > { %1821 = vmatmul.mubr.msk.bf16.gmra.mxu0 %vm498_vm0, %v1929_v39  ;;  %1857 = vmatmul.mubr.msk.bf16.gmra.mxu1 %vm498_vm0, %v1929_v39  ;;  %v1938_v39 = vld [vmem:[%s2025_s17 + $0xf8] sm:$0xff]  }
  0xce   : > { %869 = vmatprep.mubr.bf16.mxu0 %v1951_v2  ;;  %1262 = vmatprep.mubr.bf16.mxu1 %v1951_v2 }
  0xd5   : > { %1822 = vmatmul.mubr.msk.bf16.gmra.mxu0 %vm498_vm0, %v1930_v40  ;;  %1858 = vmatmul.mubr.msk.bf16.gmra.mxu1 %vm498_vm0, %v1930_v40 }
  0xd6   : > { %879 = vmatprep.mubr.bf16.mxu0 %v1951_v2  ;;  %1272 = vmatprep.mubr.bf16.mxu1 %v1951_v2 }
  0xdd   : > { %v641_v42 = vpop.f32.mrf.mxu0  ;;  %1823 = vmatmul.mubr.msk.bf16.gmra.mxu0 %vm498_vm0, %v1931_v41  ;;  %v1034_v43 = vpop.f32.mrf.mxu1  ;;  %1859 = vmatmul.mubr.msk.bf16.gmra.mxu1 %vm498_vm0, %v1931_v41 }
  0xde   : > { %1393 = vst [vmem:[%s2158_s25] sm:$0xff] %v641_v42  ;;  %1395 = vst [vmem:[%s2158_s25 + $0x10] sm:$0xff] %v1034_v43  ;;  %889 = vmatprep.mubr.bf16.mxu0 %v1951_v2  ;;  %1282 = vmatprep.mubr.bf16.mxu1 %v1951_v2 }
  0xdf   : > { %v643_v44 = vpop.f32.mrf.mxu0  ;;  %v1036_v45 = vpop.f32.mrf.mxu1 }
  0xe0   : > { %1394 = vst [vmem:[%s2158_s25 + $0x8] sm:$0xff] %v643_v44  ;;  %1396 = vst [vmem:[%s2158_s25 + $0x18] sm:$0xff] %v1036_v45 }
  0xe1   : > { %v645_v46 = vpop.f32.mrf.mxu0  ;;  %v1038_v47 = vpop.f32.mrf.mxu1 }
  0xe2   : > { %1397 = vst [vmem:[%s2158_s25 + $0x20] sm:$0xff] %v645_v46  ;;  %1399 = vst [vmem:[%s2158_s25 + $0x30] sm:$0xff] %v1038_v47 }
  0xe3   : > { %v647_v49 = vpop.f32.mrf.mxu0  ;;  %v1040_v50 = vpop.f32.mrf.mxu1 }
  0xe4   : > { %1398 = vst [vmem:[%s2158_s25 + $0x28] sm:$0xff] %v647_v49  ;;  %1400 = vst [vmem:[%s2158_s25 + $0x38] sm:$0xff] %v1040_v50 }
  0xe5   : > { %v651_v51 = vpop.f32.mrf.mxu0  ;;  %1824 = vmatmul.mubr.msk.bf16.gmra.mxu0 %vm498_vm0, %v1932_v48  ;;  %v1044_v52 = vpop.f32.mrf.mxu1  ;;  %1860 = vmatmul.mubr.msk.bf16.gmra.mxu1 %vm498_vm0, %v1932_v48  ;;  %v1939_v48 = vld [vmem:[%s2025_s17 + $0x100] sm:$0xff]  }
  0xe6   : > { %1401 = vst [vmem:[%s2158_s25 + $0x40] sm:$0xff] %v651_v51  ;;  %1403 = vst [vmem:[%s2158_s25 + $0x50] sm:$0xff] %v1044_v52  ;;  %899 = vmatprep.mubr.bf16.mxu0 %v1951_v2  ;;  %1292 = vmatprep.mubr.bf16.mxu1 %v1951_v2 }
  0xe7   : > { %v653_v53 = vpop.f32.mrf.mxu0  ;;  %v1046_v54 = vpop.f32.mrf.mxu1 }
  0xe8   : > { %1402 = vst [vmem:[%s2158_s25 + $0x48] sm:$0xff] %v653_v53  ;;  %1404 = vst [vmem:[%s2158_s25 + $0x58] sm:$0xff] %v1046_v54 }
  0xe9   : > { %v655_v55 = vpop.f32.mrf.mxu0  ;;  %v1048_v56 = vpop.f32.mrf.mxu1 }
  0xea   : > { %1405 = vst [vmem:[%s2158_s25 + $0x60] sm:$0xff] %v655_v55  ;;  %1407 = vst [vmem:[%s2158_s25 + $0x70] sm:$0xff] %v1048_v56 }
  0xeb   : > { %v657_v58 = vpop.f32.mrf.mxu0  ;;  %v1050_v59 = vpop.f32.mrf.mxu1 }
  0xec   : > { %1406 = vst [vmem:[%s2158_s25 + $0x68] sm:$0xff] %v657_v58  ;;  %1408 = vst [vmem:[%s2158_s25 + $0x78] sm:$0xff] %v1050_v59 }
  0xed   : > { %v661_v60 = vpop.f32.mrf.mxu0  ;;  %1825 = vmatmul.mubr.msk.bf16.gmra.mxu0 %vm498_vm0, %v1933_v57  ;;  %v1054_v61 = vpop.f32.mrf.mxu1  ;;  %1861 = vmatmul.mubr.msk.bf16.gmra.mxu1 %vm498_vm0, %v1933_v57  ;;  %v1940_v57 = vld [vmem:[%s2025_s17 + $0x108] sm:$0xff]  }
  0xee   : > { %1409 = vst [vmem:[%s2158_s25 + $0x80] sm:$0xff] %v661_v60  ;;  %1411 = vst [vmem:[%s2158_s25 + $0x90] sm:$0xff] %v1054_v61  ;;  %909 = vmatprep.mubr.bf16.mxu0 %v1951_v2  ;;  %1302 = vmatprep.mubr.bf16.mxu1 %v1951_v2 }
  0xef   : > { %v663_v62 = vpop.f32.mrf.mxu0  ;;  %v1056_v63 = vpop.f32.mrf.mxu1 }
  0xf0   : > { %1410 = vst [vmem:[%s2158_s25 + $0x88] sm:$0xff] %v663_v62  ;;  %1412 = vst [vmem:[%s2158_s25 + $0x98] sm:$0xff] %v1056_v63 }
  0xf1   : > { %v665_v0 = vpop.f32.mrf.mxu0  ;;  %v1058_v1 = vpop.f32.mrf.mxu1 }
  0xf2   : > { %1413 = vst [vmem:[%s2158_s25 + $0xa0] sm:$0xff] %v665_v0  ;;  %1415 = vst [vmem:[%s2158_s25 + $0xb0] sm:$0xff] %v1058_v1 }
  0xf3   : > { %v667_v4 = vpop.f32.mrf.mxu0  ;;  %v1060_v5 = vpop.f32.mrf.mxu1 }
  0xf4   : > { %1414 = vst [vmem:[%s2158_s25 + $0xa8] sm:$0xff] %v667_v4  ;;  %1416 = vst [vmem:[%s2158_s25 + $0xb8] sm:$0xff] %v1060_v5 }
  0xf5   : > { %v671_v6 = vpop.f32.mrf.mxu0  ;;  %1826 = vmatmul.mubr.msk.bf16.gmra.mxu0 %vm498_vm0, %v1934_v3  ;;  %v1064_v7 = vpop.f32.mrf.mxu1  ;;  %1862 = vmatmul.mubr.msk.bf16.gmra.mxu1 %vm498_vm0, %v1934_v3  ;;  %v1941_v3 = vld [vmem:[%s2025_s17 + $0x110] sm:$0xff]  }
  0xf6   : > { %1417 = vst [vmem:[%s2158_s25 + $0xc0] sm:$0xff] %v671_v6  ;;  %1419 = vst [vmem:[%s2158_s25 + $0xd0] sm:$0xff] %v1064_v7  ;;  %919 = vmatprep.mubr.bf16.mxu0 %v1951_v2  ;;  %1312 = vmatprep.mubr.bf16.mxu1 %v1951_v2 }
  0xf7   : > { %v673_v8 = vpop.f32.mrf.mxu0  ;;  %v1066_v9 = vpop.f32.mrf.mxu1 }
  0xf8   : > { %1418 = vst [vmem:[%s2158_s25 + $0xc8] sm:$0xff] %v673_v8  ;;  %1420 = vst [vmem:[%s2158_s25 + $0xd8] sm:$0xff] %v1066_v9 }
  0xf9   : > { %v675_v10 = vpop.f32.mrf.mxu0  ;;  %v1068_v11 = vpop.f32.mrf.mxu1 }
  0xfa   : > { %1421 = vst [vmem:[%s2158_s25 + $0xe0] sm:$0xff] %v675_v10  ;;  %1423 = vst [vmem:[%s2158_s25 + $0xf0] sm:$0xff] %v1068_v11 }
  0xfb   : > { %v677_v13 = vpop.f32.mrf.mxu0  ;;  %v1070_v14 = vpop.f32.mrf.mxu1 }
  0xfc   : > { %1422 = vst [vmem:[%s2158_s25 + $0xe8] sm:$0xff] %v677_v13  ;;  %1424 = vst [vmem:[%s2158_s25 + $0xf8] sm:$0xff] %v1070_v14 }
  0xfd   : > { %v681_v15 = vpop.f32.mrf.mxu0  ;;  %1827 = vmatmul.mubr.msk.bf16.gmra.mxu0 %vm498_vm0, %v1935_v12  ;;  %v1074_v16 = vpop.f32.mrf.mxu1  ;;  %1863 = vmatmul.mubr.msk.bf16.gmra.mxu1 %vm498_vm0, %v1935_v12  ;;  %v1942_v12 = vld [vmem:[%s2025_s17 + $0x118] sm:$0xff]  }
  0xfe   : > { %1425 = vst [vmem:[%s2158_s25 + $0x100] sm:$0xff] %v681_v15  ;;  %1427 = vst [vmem:[%s2158_s25 + $0x110] sm:$0xff] %v1074_v16  ;;  %929 = vmatprep.mubr.bf16.mxu0 %v1951_v2  ;;  %1322 = vmatprep.mubr.bf16.mxu1 %v1951_v2 }
  0xff   : > { %v683_v17 = vpop.f32.mrf.mxu0  ;;  %v1076_v18 = vpop.f32.mrf.mxu1 }
 0x100   : > { %1426 = vst [vmem:[%s2158_s25 + $0x108] sm:$0xff] %v683_v17  ;;  %1428 = vst [vmem:[%s2158_s25 + $0x118] sm:$0xff] %v1076_v18 }
 0x101   : > { %v685_v19 = vpop.f32.mrf.mxu0  ;;  %v1078_v20 = vpop.f32.mrf.mxu1 }
 0x102   : > { %1429 = vst [vmem:[%s2158_s25 + $0x120] sm:$0xff] %v685_v19  ;;  %1431 = vst [vmem:[%s2158_s25 + $0x130] sm:$0xff] %v1078_v20 }
 0x103   : > { %v687_v22 = vpop.f32.mrf.mxu0  ;;  %v1080_v23 = vpop.f32.mrf.mxu1 }
 0x104   : > { %1430 = vst [vmem:[%s2158_s25 + $0x128] sm:$0xff] %v687_v22  ;;  %1432 = vst [vmem:[%s2158_s25 + $0x138] sm:$0xff] %v1080_v23 }
 0x105   : > { %v691_v24 = vpop.f32.mrf.mxu0  ;;  %1828 = vmatmul.mubr.msk.bf16.gmra.mxu0 %vm498_vm0, %v1936_v21  ;;  %v1084_v25 = vpop.f32.mrf.mxu1  ;;  %1864 = vmatmul.mubr.msk.bf16.gmra.mxu1 %vm498_vm0, %v1936_v21 }
 0x106   : > { %1433 = vst [vmem:[%s2158_s25 + $0x140] sm:$0xff] %v691_v24  ;;  %1435 = vst [vmem:[%s2158_s25 + $0x150] sm:$0xff] %v1084_v25  ;;  %939 = vmatprep.mubr.bf16.mxu0 %v1951_v2  ;;  %1332 = vmatprep.mubr.bf16.mxu1 %v1951_v2 }
 0x107   : > { %v693_v26 = vpop.f32.mrf.mxu0  ;;  %v1086_v27 = vpop.f32.mrf.mxu1 }
 0x108   : > { %1434 = vst [vmem:[%s2158_s25 + $0x148] sm:$0xff] %v693_v26  ;;  %1436 = vst [vmem:[%s2158_s25 + $0x158] sm:$0xff] %v1086_v27 }
 0x109   : > { %v695_v28 = vpop.f32.mrf.mxu0  ;;  %v1088_v29 = vpop.f32.mrf.mxu1 }
 0x10a   : > { %1437 = vst [vmem:[%s2158_s25 + $0x160] sm:$0xff] %v695_v28  ;;  %1439 = vst [vmem:[%s2158_s25 + $0x170] sm:$0xff] %v1088_v29 }
 0x10b   : > { %v697_v31 = vpop.f32.mrf.mxu0  ;;  %v1090_v32 = vpop.f32.mrf.mxu1 }
 0x10c   : > { %1438 = vst [vmem:[%s2158_s25 + $0x168] sm:$0xff] %v697_v31  ;;  %1440 = vst [vmem:[%s2158_s25 + $0x178] sm:$0xff] %v1090_v32 }
 0x10d   : > { %v701_v33 = vpop.f32.mrf.mxu0  ;;  %1829 = vmatmul.mubr.msk.bf16.gmra.mxu0 %vm498_vm0, %v1937_v30  ;;  %v1094_v34 = vpop.f32.mrf.mxu1  ;;  %1865 = vmatmul.mubr.msk.bf16.gmra.mxu1 %vm498_vm0, %v1937_v30 }
 0x10e   : > { %1441 = vst [vmem:[%s2158_s25 + $0x180] sm:$0xff] %v701_v33  ;;  %1443 = vst [vmem:[%s2158_s25 + $0x190] sm:$0xff] %v1094_v34  ;;  %949 = vmatprep.mubr.bf16.mxu0 %v1951_v2  ;;  %1342 = vmatprep.mubr.bf16.mxu1 %v1951_v2 }
 0x10f   : > { %v703_v35 = vpop.f32.mrf.mxu0  ;;  %v1096_v36 = vpop.f32.mrf.mxu1 }
 0x110   : > { %1442 = vst [vmem:[%s2158_s25 + $0x188] sm:$0xff] %v703_v35  ;;  %1444 = vst [vmem:[%s2158_s25 + $0x198] sm:$0xff] %v1096_v36 }
 0x111   : > { %v705_v37 = vpop.f32.mrf.mxu0  ;;  %v1098_v38 = vpop.f32.mrf.mxu1 }
 0x112   : > { %1445 = vst [vmem:[%s2158_s25 + $0x1a0] sm:$0xff] %v705_v37  ;;  %1447 = vst [vmem:[%s2158_s25 + $0x1b0] sm:$0xff] %v1098_v38 }
 0x113   : > { %v707_v40 = vpop.f32.mrf.mxu0  ;;  %v1100_v41 = vpop.f32.mrf.mxu1 }
 0x114   : > { %1446 = vst [vmem:[%s2158_s25 + $0x1a8] sm:$0xff] %v707_v40  ;;  %1448 = vst [vmem:[%s2158_s25 + $0x1b8] sm:$0xff] %v1100_v41 }
 0x115   : > { %v711_v42 = vpop.f32.mrf.mxu0  ;;  %1830 = vmatmul.mubr.msk.bf16.gmra.mxu0 %vm498_vm0, %v1938_v39  ;;  %v1104_v43 = vpop.f32.mrf.mxu1  ;;  %1866 = vmatmul.mubr.msk.bf16.gmra.mxu1 %vm498_vm0, %v1938_v39 }
 0x116   : > { %1449 = vst [vmem:[%s2158_s25 + $0x1c0] sm:$0xff] %v711_v42  ;;  %1451 = vst [vmem:[%s2158_s25 + $0x1d0] sm:$0xff] %v1104_v43  ;;  %959 = vmatprep.mubr.bf16.mxu0 %v1951_v2  ;;  %1352 = vmatprep.mubr.bf16.mxu1 %v1951_v2 }
 0x117   : > { %v713_v44 = vpop.f32.mrf.mxu0  ;;  %v1106_v45 = vpop.f32.mrf.mxu1 }
 0x118   : > { %1450 = vst [vmem:[%s2158_s25 + $0x1c8] sm:$0xff] %v713_v44  ;;  %1452 = vst [vmem:[%s2158_s25 + $0x1d8] sm:$0xff] %v1106_v45 }
 0x119   : > { %v715_v46 = vpop.f32.mrf.mxu0  ;;  %v1108_v47 = vpop.f32.mrf.mxu1 }
 0x11a   : > { %1453 = vst [vmem:[%s2158_s25 + $0x1e0] sm:$0xff] %v715_v46  ;;  %1455 = vst [vmem:[%s2158_s25 + $0x1f0] sm:$0xff] %v1108_v47 }
 0x11b   : > { %v717_v49 = vpop.f32.mrf.mxu0  ;;  %v1110_v50 = vpop.f32.mrf.mxu1 }
 0x11c   : > { %1454 = vst [vmem:[%s2158_s25 + $0x1e8] sm:$0xff] %v717_v49  ;;  %1456 = vst [vmem:[%s2158_s25 + $0x1f8] sm:$0xff] %v1110_v50 }
 0x11d   : > { %v721_v51 = vpop.f32.mrf.mxu0  ;;  %1831 = vmatmul.mubr.msk.bf16.gmra.mxu0 %vm498_vm0, %v1939_v48  ;;  %v1114_v52 = vpop.f32.mrf.mxu1  ;;  %1867 = vmatmul.mubr.msk.bf16.gmra.mxu1 %vm498_vm0, %v1939_v48 }
 0x11e   : > { %1457 = vst [vmem:[%s2158_s25 + $0x200] sm:$0xff] %v721_v51  ;;  %1459 = vst [vmem:[%s2158_s25 + $0x210] sm:$0xff] %v1114_v52  ;;  %969 = vmatprep.mubr.bf16.mxu0 %v1951_v2  ;;  %1362 = vmatprep.mubr.bf16.mxu1 %v1951_v2 }
 0x11f   : > { %v723_v53 = vpop.f32.mrf.mxu0  ;;  %v1116_v54 = vpop.f32.mrf.mxu1 }
 0x120   : > { %1458 = vst [vmem:[%s2158_s25 + $0x208] sm:$0xff] %v723_v53  ;;  %1460 = vst [vmem:[%s2158_s25 + $0x218] sm:$0xff] %v1116_v54 }
 0x121   : > { %v725_v55 = vpop.f32.mrf.mxu0  ;;  %v1118_v56 = vpop.f32.mrf.mxu1 }
 0x122   : > { %1461 = vst [vmem:[%s2158_s25 + $0x220] sm:$0xff] %v725_v55  ;;  %1463 = vst [vmem:[%s2158_s25 + $0x230] sm:$0xff] %v1118_v56 }
 0x123   : > { %v727_v58 = vpop.f32.mrf.mxu0  ;;  %v1120_v59 = vpop.f32.mrf.mxu1 }
 0x124   : > { %1462 = vst [vmem:[%s2158_s25 + $0x228] sm:$0xff] %v727_v58  ;;  %1464 = vst [vmem:[%s2158_s25 + $0x238] sm:$0xff] %v1120_v59 }
 0x125   : > { %v731_v60 = vpop.f32.mrf.mxu0  ;;  %1832 = vmatmul.mubr.msk.bf16.gmra.mxu0 %vm498_vm0, %v1940_v57  ;;  %v1124_v61 = vpop.f32.mrf.mxu1  ;;  %1868 = vmatmul.mubr.msk.bf16.gmra.mxu1 %vm498_vm0, %v1940_v57 }
 0x126   : > { %1465 = vst [vmem:[%s2158_s25 + $0x240] sm:$0xff] %v731_v60  ;;  %1467 = vst [vmem:[%s2158_s25 + $0x250] sm:$0xff] %v1124_v61  ;;  %979 = vmatprep.mubr.bf16.mxu0 %v1951_v2  ;;  %1372 = vmatprep.mubr.bf16.mxu1 %v1951_v2 }
 0x127   : > { %v733_v62 = vpop.f32.mrf.mxu0  ;;  %v1126_v63 = vpop.f32.mrf.mxu1 }
 0x128   : > { %1466 = vst [vmem:[%s2158_s25 + $0x248] sm:$0xff] %v733_v62  ;;  %1468 = vst [vmem:[%s2158_s25 + $0x258] sm:$0xff] %v1126_v63 }
 0x129   : > { %v735_v0 = vpop.f32.mrf.mxu0  ;;  %v1128_v1 = vpop.f32.mrf.mxu1 }
 0x12a   : > { %1469 = vst [vmem:[%s2158_s25 + $0x260] sm:$0xff] %v735_v0  ;;  %1471 = vst [vmem:[%s2158_s25 + $0x270] sm:$0xff] %v1128_v1 }
 0x12b   : > { %v737_v4 = vpop.f32.mrf.mxu0  ;;  %v1130_v5 = vpop.f32.mrf.mxu1 }
 0x12c   : > { %1470 = vst [vmem:[%s2158_s25 + $0x268] sm:$0xff] %v737_v4  ;;  %1472 = vst [vmem:[%s2158_s25 + $0x278] sm:$0xff] %v1130_v5 }
 0x12d   : > { %v741_v6 = vpop.f32.mrf.mxu0  ;;  %1833 = vmatmul.mubr.msk.bf16.gmra.mxu0 %vm498_vm0, %v1941_v3  ;;  %v1134_v7 = vpop.f32.mrf.mxu1  ;;  %1869 = vmatmul.mubr.msk.bf16.gmra.mxu1 %vm498_vm0, %v1941_v3 }
 0x12e   : > { %1473 = vst [vmem:[%s2158_s25 + $0x280] sm:$0xff] %v741_v6  ;;  %1475 = vst [vmem:[%s2158_s25 + $0x290] sm:$0xff] %v1134_v7  ;;  %989 = vmatprep.mubr.bf16.mxu0 %v1951_v2  ;;  %1382 = vmatprep.mubr.bf16.mxu1 %v1951_v2 }
 0x12f   : > { %v743_v8 = vpop.f32.mrf.mxu0  ;;  %v1136_v9 = vpop.f32.mrf.mxu1 }
 0x130   : > { %1474 = vst [vmem:[%s2158_s25 + $0x288] sm:$0xff] %v743_v8  ;;  %1476 = vst [vmem:[%s2158_s25 + $0x298] sm:$0xff] %v1136_v9 }
 0x131   : > { %v745_v10 = vpop.f32.mrf.mxu0  ;;  %v1138_v11 = vpop.f32.mrf.mxu1 }
 0x132   : > { %1477 = vst [vmem:[%s2158_s25 + $0x2a0] sm:$0xff] %v745_v10  ;;  %1479 = vst [vmem:[%s2158_s25 + $0x2b0] sm:$0xff] %v1138_v11 }
 0x133   : > { %v747_v13 = vpop.f32.mrf.mxu0  ;;  %v1140_v14 = vpop.f32.mrf.mxu1 }
 0x134   : > { %1478 = vst [vmem:[%s2158_s25 + $0x2a8] sm:$0xff] %v747_v13  ;;  %1480 = vst [vmem:[%s2158_s25 + $0x2b8] sm:$0xff] %v1140_v14 }
 0x135   : > { %v751_v2 = vpop.f32.mrf.mxu0  ;;  %1834 = vmatmul.mubr.msk.bf16.gmra.mxu0 %vm498_vm0, %v1942_v12  ;;  %v1144_v15 = vpop.f32.mrf.mxu1  ;;  %1870 = vmatmul.mubr.msk.bf16.gmra.mxu1 %vm498_vm0, %v1942_v12 }
 0x136   : > { %1481 = vst [vmem:[%s2158_s25 + $0x2c0] sm:$0xff] %v751_v2  ;;  %1483 = vst [vmem:[%s2158_s25 + $0x2d0] sm:$0xff] %v1144_v15 }
 0x137   : > { %v753_v16 = vpop.f32.mrf.mxu0  ;;  %v1146_v17 = vpop.f32.mrf.mxu1 }
 0x138   : > { %1482 = vst [vmem:[%s2158_s25 + $0x2c8] sm:$0xff] %v753_v16  ;;  %1484 = vst [vmem:[%s2158_s25 + $0x2d8] sm:$0xff] %v1146_v17 }
 0x139   : > { %v755_v18 = vpop.f32.mrf.mxu0  ;;  %v1148_v19 = vpop.f32.mrf.mxu1 }
 0x13a   : > { %1485 = vst [vmem:[%s2158_s25 + $0x2e0] sm:$0xff] %v755_v18  ;;  %1487 = vst [vmem:[%s2158_s25 + $0x2f0] sm:$0xff] %v1148_v19 }
 0x13b   : > { %v757_v20 = vpop.f32.mrf.mxu0  ;;  %v1150_v21 = vpop.f32.mrf.mxu1 }
 0x13c   : > { %1486 = vst [vmem:[%s2158_s25 + $0x2e8] sm:$0xff] %v757_v20  ;;  %1488 = vst [vmem:[%s2158_s25 + $0x2f8] sm:$0xff] %v1150_v21 }
 0x13d   : > { %v761_v22 = vpop.f32.mrf.mxu0  ;;  %v1154_v23 = vpop.f32.mrf.mxu1 }
 0x13e   : > { %1489 = vst [vmem:[%s2158_s25 + $0x300] sm:$0xff] %v761_v22  ;;  %1491 = vst [vmem:[%s2158_s25 + $0x310] sm:$0xff] %v1154_v23 }
 0x13f   : > { %v763_v24 = vpop.f32.mrf.mxu0  ;;  %v1156_v25 = vpop.f32.mrf.mxu1 }
 0x140   : > { %1490 = vst [vmem:[%s2158_s25 + $0x308] sm:$0xff] %v763_v24  ;;  %1492 = vst [vmem:[%s2158_s25 + $0x318] sm:$0xff] %v1156_v25 }
 0x141   : > { %v765_v26 = vpop.f32.mrf.mxu0  ;;  %v1158_v27 = vpop.f32.mrf.mxu1 }
 0x142   : > { %1493 = vst [vmem:[%s2158_s25 + $0x320] sm:$0xff] %v765_v26  ;;  %1495 = vst [vmem:[%s2158_s25 + $0x330] sm:$0xff] %v1158_v27 }
 0x143   : > { %v767_v28 = vpop.f32.mrf.mxu0  ;;  %v1160_v29 = vpop.f32.mrf.mxu1 }
 0x144   : > { %1494 = vst [vmem:[%s2158_s25 + $0x328] sm:$0xff] %v767_v28  ;;  %1496 = vst [vmem:[%s2158_s25 + $0x338] sm:$0xff] %v1160_v29 }
 0x145   : > { %v771_v30 = vpop.f32.mrf.mxu0  ;;  %v1164_v31 = vpop.f32.mrf.mxu1 }
 0x146   : > { %1497 = vst [vmem:[%s2158_s25 + $0x340] sm:$0xff] %v771_v30  ;;  %1499 = vst [vmem:[%s2158_s25 + $0x350] sm:$0xff] %v1164_v31 }
 0x147   : > { %v773_v32 = vpop.f32.mrf.mxu0  ;;  %v1166_v33 = vpop.f32.mrf.mxu1 }
 0x148   : > { %1498 = vst [vmem:[%s2158_s25 + $0x348] sm:$0xff] %v773_v32  ;;  %1500 = vst [vmem:[%s2158_s25 + $0x358] sm:$0xff] %v1166_v33 }
 0x149   : > { %v775_v34 = vpop.f32.mrf.mxu0  ;;  %v1168_v35 = vpop.f32.mrf.mxu1 }
 0x14a   : > { %1501 = vst [vmem:[%s2158_s25 + $0x360] sm:$0xff] %v775_v34  ;;  %1503 = vst [vmem:[%s2158_s25 + $0x370] sm:$0xff] %v1168_v35 }
 0x14b   : > { %v777_v36 = vpop.f32.mrf.mxu0  ;;  %v1170_v37 = vpop.f32.mrf.mxu1 }
 0x14c   : > { %1502 = vst [vmem:[%s2158_s25 + $0x368] sm:$0xff] %v777_v36  ;;  %1504 = vst [vmem:[%s2158_s25 + $0x378] sm:$0xff] %v1170_v37 }
 0x14d   : > { %v781_v38 = vpop.f32.mrf.mxu0  ;;  %v1174_v39 = vpop.f32.mrf.mxu1 }
 0x14e   : > { %1505 = vst [vmem:[%s2158_s25 + $0x380] sm:$0xff] %v781_v38  ;;  %1507 = vst [vmem:[%s2158_s25 + $0x390] sm:$0xff] %v1174_v39 }
 0x14f   : > { %v783_v40 = vpop.f32.mrf.mxu0  ;;  %v1176_v41 = vpop.f32.mrf.mxu1 }
 0x150   : > { %1506 = vst [vmem:[%s2158_s25 + $0x388] sm:$0xff] %v783_v40  ;;  %1508 = vst [vmem:[%s2158_s25 + $0x398] sm:$0xff] %v1176_v41 }
 0x151   : > { %v785_v42 = vpop.f32.mrf.mxu0  ;;  %v1178_v43 = vpop.f32.mrf.mxu1 }
 0x152   : > { %1509 = vst [vmem:[%s2158_s25 + $0x3a0] sm:$0xff] %v785_v42  ;;  %1511 = vst [vmem:[%s2158_s25 + $0x3b0] sm:$0xff] %v1178_v43 }
 0x153   : > { %v787_v44 = vpop.f32.mrf.mxu0  ;;  %v1180_v45 = vpop.f32.mrf.mxu1 }
 0x154   : > { %1510 = vst [vmem:[%s2158_s25 + $0x3a8] sm:$0xff] %v787_v44  ;;  %1512 = vst [vmem:[%s2158_s25 + $0x3b8] sm:$0xff] %v1180_v45 }
 0x155   : > { %v791_v46 = vpop.f32.mrf.mxu0  ;;  %v1184_v47 = vpop.f32.mrf.mxu1 }
 0x156   : > { %1513 = vst [vmem:[%s2158_s25 + $0x3c0] sm:$0xff] %v791_v46  ;;  %1515 = vst [vmem:[%s2158_s25 + $0x3d0] sm:$0xff] %v1184_v47 }
 0x157   : > { %v793_v48 = vpop.f32.mrf.mxu0  ;;  %v1186_v49 = vpop.f32.mrf.mxu1 }
 0x158   : > { %1514 = vst [vmem:[%s2158_s25 + $0x3c8] sm:$0xff] %v793_v48  ;;  %1516 = vst [vmem:[%s2158_s25 + $0x3d8] sm:$0xff] %v1186_v49 }
 0x159   : > { %v795_v50 = vpop.f32.mrf.mxu0  ;;  %v1188_v51 = vpop.f32.mrf.mxu1 }
 0x15a   : > { %1517 = vst [vmem:[%s2158_s25 + $0x3e0] sm:$0xff] %v795_v50  ;;  %1519 = vst [vmem:[%s2158_s25 + $0x3f0] sm:$0xff] %v1188_v51 }
 0x15b   : > { %v797_v52 = vpop.f32.mrf.mxu0  ;;  %v1190_v53 = vpop.f32.mrf.mxu1 }
 0x15c   : > { %1518 = vst [vmem:[%s2158_s25 + $0x3e8] sm:$0xff] %v797_v52  ;;  %1520 = vst [vmem:[%s2158_s25 + $0x3f8] sm:$0xff] %v1190_v53 }
 0x15d   : > { %v801_v54 = vpop.f32.mrf.mxu0  ;;  %v1194_v55 = vpop.f32.mrf.mxu1 }
 0x15e   : > { %1521 = vst [vmem:[%s2158_s25 + $0x400] sm:$0xff] %v801_v54  ;;  %1523 = vst [vmem:[%s2158_s25 + $0x410] sm:$0xff] %v1194_v55 }
 0x15f   : > { %v803_v56 = vpop.f32.mrf.mxu0  ;;  %v1196_v57 = vpop.f32.mrf.mxu1 }
 0x160   : > { %1522 = vst [vmem:[%s2158_s25 + $0x408] sm:$0xff] %v803_v56  ;;  %1524 = vst [vmem:[%s2158_s25 + $0x418] sm:$0xff] %v1196_v57 }
 0x161   : > { %v805_v58 = vpop.f32.mrf.mxu0  ;;  %v1198_v59 = vpop.f32.mrf.mxu1 }
 0x162   : > { %1525 = vst [vmem:[%s2158_s25 + $0x420] sm:$0xff] %v805_v58  ;;  %1527 = vst [vmem:[%s2158_s25 + $0x430] sm:$0xff] %v1198_v59 }
 0x163   : > { %v807_v60 = vpop.f32.mrf.mxu0  ;;  %v1200_v61 = vpop.f32.mrf.mxu1 }
 0x164   : > { %1526 = vst [vmem:[%s2158_s25 + $0x428] sm:$0xff] %v807_v60  ;;  %1528 = vst [vmem:[%s2158_s25 + $0x438] sm:$0xff] %v1200_v61 }
 0x165   : > { %v811_v62 = vpop.f32.mrf.mxu0  ;;  %v1204_v63 = vpop.f32.mrf.mxu1 }
 0x166   : > { %1529 = vst [vmem:[%s2158_s25 + $0x440] sm:$0xff] %v811_v62  ;;  %1531 = vst [vmem:[%s2158_s25 + $0x450] sm:$0xff] %v1204_v63 }
 0x167   : > { %v813_v0 = vpop.f32.mrf.mxu0  ;;  %v1206_v1 = vpop.f32.mrf.mxu1 }
 0x168   : > { %1530 = vst [vmem:[%s2158_s25 + $0x448] sm:$0xff] %v813_v0  ;;  %1532 = vst [vmem:[%s2158_s25 + $0x458] sm:$0xff] %v1206_v1 }
 0x169   : > { %v815_v3 = vpop.f32.mrf.mxu0  ;;  %v1208_v4 = vpop.f32.mrf.mxu1 }
 0x16a   : > { %1533 = vst [vmem:[%s2158_s25 + $0x460] sm:$0xff] %v815_v3  ;;  %1535 = vst [vmem:[%s2158_s25 + $0x470] sm:$0xff] %v1208_v4 }
 0x16b   : > { %v817_v5 = vpop.f32.mrf.mxu0  ;;  %v1210_v6 = vpop.f32.mrf.mxu1 }
 0x16c   : > { %1534 = vst [vmem:[%s2158_s25 + $0x468] sm:$0xff] %v817_v5  ;;  %1536 = vst [vmem:[%s2158_s25 + $0x478] sm:$0xff] %v1210_v6 }
 0x16d   : > { %v821_v7 = vpop.f32.mrf.mxu0  ;;  %v1214_v8 = vpop.f32.mrf.mxu1 }
 0x16e   : > { %1537 = vst [vmem:[%s2158_s25 + $0x480] sm:$0xff] %v821_v7  ;;  %1539 = vst [vmem:[%s2158_s25 + $0x490] sm:$0xff] %v1214_v8 }
 0x16f   : > { %v823_v9 = vpop.f32.mrf.mxu0  ;;  %v1216_v10 = vpop.f32.mrf.mxu1 }
 0x170   : > { %1538 = vst [vmem:[%s2158_s25 + $0x488] sm:$0xff] %v823_v9  ;;  %1540 = vst [vmem:[%s2158_s25 + $0x498] sm:$0xff] %v1216_v10 }
 0x171   : > { %v825_v11 = vpop.f32.mrf.mxu0  ;;  %v1218_v12 = vpop.f32.mrf.mxu1 }
 0x172   : > { %1541 = vst [vmem:[%s2158_s25 + $0x4a0] sm:$0xff] %v825_v11  ;;  %1543 = vst [vmem:[%s2158_s25 + $0x4b0] sm:$0xff] %v1218_v12 }
 0x173   : > { %v827_v13 = vpop.f32.mrf.mxu0  ;;  %v1220_v14 = vpop.f32.mrf.mxu1 }
 0x174   : > { %1542 = vst [vmem:[%s2158_s25 + $0x4a8] sm:$0xff] %v827_v13  ;;  %1544 = vst [vmem:[%s2158_s25 + $0x4b8] sm:$0xff] %v1220_v14 }
 0x175   : > { %v831_v2 = vpop.f32.mrf.mxu0  ;;  %v1224_v15 = vpop.f32.mrf.mxu1 }
 0x176   : > { %1545 = vst [vmem:[%s2158_s25 + $0x4c0] sm:$0xff] %v831_v2  ;;  %1547 = vst [vmem:[%s2158_s25 + $0x4d0] sm:$0xff] %v1224_v15 }
 0x177   : > { %v833_v16 = vpop.f32.mrf.mxu0  ;;  %v1226_v17 = vpop.f32.mrf.mxu1 }
 0x178   : > { %1546 = vst [vmem:[%s2158_s25 + $0x4c8] sm:$0xff] %v833_v16  ;;  %1548 = vst [vmem:[%s2158_s25 + $0x4d8] sm:$0xff] %v1226_v17 }
 0x179   : > { %v835_v18 = vpop.f32.mrf.mxu0  ;;  %v1228_v19 = vpop.f32.mrf.mxu1 }
 0x17a   : > { %1549 = vst [vmem:[%s2158_s25 + $0x4e0] sm:$0xff] %v835_v18  ;;  %1551 = vst [vmem:[%s2158_s25 + $0x4f0] sm:$0xff] %v1228_v19 }
 0x17b   : > { %v837_v20 = vpop.f32.mrf.mxu0  ;;  %v1230_v21 = vpop.f32.mrf.mxu1 }
 0x17c   : > { %1550 = vst [vmem:[%s2158_s25 + $0x4e8] sm:$0xff] %v837_v20  ;;  %1552 = vst [vmem:[%s2158_s25 + $0x4f8] sm:$0xff] %v1230_v21 }
 0x17d   : > { %v841_v22 = vpop.f32.mrf.mxu0  ;;  %v1234_v23 = vpop.f32.mrf.mxu1 }
 0x17e   : > { %1553 = vst [vmem:[%s2158_s25 + $0x500] sm:$0xff] %v841_v22  ;;  %1555 = vst [vmem:[%s2158_s25 + $0x510] sm:$0xff] %v1234_v23 }
 0x17f   : > { %v843_v24 = vpop.f32.mrf.mxu0  ;;  %v1236_v25 = vpop.f32.mrf.mxu1 }
 0x180   : > { %1554 = vst [vmem:[%s2158_s25 + $0x508] sm:$0xff] %v843_v24  ;;  %1556 = vst [vmem:[%s2158_s25 + $0x518] sm:$0xff] %v1236_v25 }
 0x181   : > { %v845_v26 = vpop.f32.mrf.mxu0  ;;  %v1238_v27 = vpop.f32.mrf.mxu1 }
 0x182   : > { %1557 = vst [vmem:[%s2158_s25 + $0x520] sm:$0xff] %v845_v26  ;;  %1559 = vst [vmem:[%s2158_s25 + $0x530] sm:$0xff] %v1238_v27 }
 0x183   : > { %v847_v28 = vpop.f32.mrf.mxu0  ;;  %v1240_v29 = vpop.f32.mrf.mxu1 }
 0x184   : > { %1558 = vst [vmem:[%s2158_s25 + $0x528] sm:$0xff] %v847_v28  ;;  %1560 = vst [vmem:[%s2158_s25 + $0x538] sm:$0xff] %v1240_v29 }
 0x185   : > { %v851_v30 = vpop.f32.mrf.mxu0  ;;  %v1244_v31 = vpop.f32.mrf.mxu1 }
 0x186   : > { %1561 = vst [vmem:[%s2158_s25 + $0x540] sm:$0xff] %v851_v30  ;;  %1563 = vst [vmem:[%s2158_s25 + $0x550] sm:$0xff] %v1244_v31 }
 0x187   : > { %v853_v32 = vpop.f32.mrf.mxu0  ;;  %v1246_v33 = vpop.f32.mrf.mxu1 }
 0x188   : > { %1562 = vst [vmem:[%s2158_s25 + $0x548] sm:$0xff] %v853_v32  ;;  %1564 = vst [vmem:[%s2158_s25 + $0x558] sm:$0xff] %v1246_v33 }
 0x189   : > { %v855_v34 = vpop.f32.mrf.mxu0  ;;  %v1248_v35 = vpop.f32.mrf.mxu1 }
 0x18a   : > { %1565 = vst [vmem:[%s2158_s25 + $0x560] sm:$0xff] %v855_v34  ;;  %1567 = vst [vmem:[%s2158_s25 + $0x570] sm:$0xff] %v1248_v35 }
 0x18b   : > { %v857_v36 = vpop.f32.mrf.mxu0  ;;  %v1250_v37 = vpop.f32.mrf.mxu1 }
 0x18c   : > { %1566 = vst [vmem:[%s2158_s25 + $0x568] sm:$0xff] %v857_v36  ;;  %1568 = vst [vmem:[%s2158_s25 + $0x578] sm:$0xff] %v1250_v37 }
 0x18d   : > { %v861_v38 = vpop.f32.mrf.mxu0  ;;  %v1254_v39 = vpop.f32.mrf.mxu1 }
 0x18e   : > { %1569 = vst [vmem:[%s2158_s25 + $0x580] sm:$0xff] %v861_v38  ;;  %1571 = vst [vmem:[%s2158_s25 + $0x590] sm:$0xff] %v1254_v39 }
 0x18f   : > { %v863_v40 = vpop.f32.mrf.mxu0  ;;  %v1256_v41 = vpop.f32.mrf.mxu1 }
 0x190   : > { %1570 = vst [vmem:[%s2158_s25 + $0x588] sm:$0xff] %v863_v40  ;;  %1572 = vst [vmem:[%s2158_s25 + $0x598] sm:$0xff] %v1256_v41 }
 0x191   : > { %v865_v42 = vpop.f32.mrf.mxu0  ;;  %v1258_v43 = vpop.f32.mrf.mxu1 }
 0x192   : > { %1573 = vst [vmem:[%s2158_s25 + $0x5a0] sm:$0xff] %v865_v42  ;;  %1575 = vst [vmem:[%s2158_s25 + $0x5b0] sm:$0xff] %v1258_v43 }
 0x193   : > { %v867_v44 = vpop.f32.mrf.mxu0  ;;  %v1260_v45 = vpop.f32.mrf.mxu1 }
 0x194   : > { %1574 = vst [vmem:[%s2158_s25 + $0x5a8] sm:$0xff] %v867_v44  ;;  %1576 = vst [vmem:[%s2158_s25 + $0x5b8] sm:$0xff] %v1260_v45 }
 0x195   : > { %v871_v46 = vpop.f32.mrf.mxu0  ;;  %v1264_v47 = vpop.f32.mrf.mxu1 }
 0x196   : > { %1577 = vst [vmem:[%s2158_s25 + $0x5c0] sm:$0xff] %v871_v46  ;;  %1579 = vst [vmem:[%s2158_s25 + $0x5d0] sm:$0xff] %v1264_v47 }
 0x197   : > { %v873_v48 = vpop.f32.mrf.mxu0  ;;  %v1266_v49 = vpop.f32.mrf.mxu1 }
 0x198   : > { %1578 = vst [vmem:[%s2158_s25 + $0x5c8] sm:$0xff] %v873_v48  ;;  %1580 = vst [vmem:[%s2158_s25 + $0x5d8] sm:$0xff] %v1266_v49 }
 0x199   : > { %v875_v50 = vpop.f32.mrf.mxu0  ;;  %v1268_v51 = vpop.f32.mrf.mxu1 }
 0x19a   : > { %1581 = vst [vmem:[%s2158_s25 + $0x5e0] sm:$0xff] %v875_v50  ;;  %1583 = vst [vmem:[%s2158_s25 + $0x5f0] sm:$0xff] %v1268_v51 }
 0x19b   : > { %v877_v52 = vpop.f32.mrf.mxu0  ;;  %v1270_v53 = vpop.f32.mrf.mxu1 }
 0x19c   : > { %1582 = vst [vmem:[%s2158_s25 + $0x5e8] sm:$0xff] %v877_v52  ;;  %1584 = vst [vmem:[%s2158_s25 + $0x5f8] sm:$0xff] %v1270_v53 }
 0x19d   : > { %v881_v54 = vpop.f32.mrf.mxu0  ;;  %v1274_v55 = vpop.f32.mrf.mxu1 }
 0x19e   : > { %1585 = vst [vmem:[%s2158_s25 + $0x600] sm:$0xff] %v881_v54  ;;  %1587 = vst [vmem:[%s2158_s25 + $0x610] sm:$0xff] %v1274_v55 }
 0x19f   : > { %v883_v56 = vpop.f32.mrf.mxu0  ;;  %v1276_v57 = vpop.f32.mrf.mxu1 }
 0x1a0   : > { %1586 = vst [vmem:[%s2158_s25 + $0x608] sm:$0xff] %v883_v56  ;;  %1588 = vst [vmem:[%s2158_s25 + $0x618] sm:$0xff] %v1276_v57 }
 0x1a1   : > { %v885_v58 = vpop.f32.mrf.mxu0  ;;  %v1278_v59 = vpop.f32.mrf.mxu1 }
 0x1a2   : > { %1589 = vst [vmem:[%s2158_s25 + $0x620] sm:$0xff] %v885_v58  ;;  %1591 = vst [vmem:[%s2158_s25 + $0x630] sm:$0xff] %v1278_v59 }
 0x1a3   : > { %v887_v60 = vpop.f32.mrf.mxu0  ;;  %v1280_v61 = vpop.f32.mrf.mxu1 }
 0x1a4   : > { %1590 = vst [vmem:[%s2158_s25 + $0x628] sm:$0xff] %v887_v60  ;;  %1592 = vst [vmem:[%s2158_s25 + $0x638] sm:$0xff] %v1280_v61 }
 0x1a5   : > { %v891_v62 = vpop.f32.mrf.mxu0  ;;  %v1284_v63 = vpop.f32.mrf.mxu1 }
 0x1a6   : > { %1593 = vst [vmem:[%s2158_s25 + $0x640] sm:$0xff] %v891_v62  ;;  %1595 = vst [vmem:[%s2158_s25 + $0x650] sm:$0xff] %v1284_v63 }
 0x1a7   : > { %v893_v0 = vpop.f32.mrf.mxu0  ;;  %v1286_v1 = vpop.f32.mrf.mxu1 }
 0x1a8   : > { %1594 = vst [vmem:[%s2158_s25 + $0x648] sm:$0xff] %v893_v0  ;;  %1596 = vst [vmem:[%s2158_s25 + $0x658] sm:$0xff] %v1286_v1 }
 0x1a9   : > { %v895_v3 = vpop.f32.mrf.mxu0  ;;  %v1288_v4 = vpop.f32.mrf.mxu1 }
 0x1aa   : > { %1597 = vst [vmem:[%s2158_s25 + $0x660] sm:$0xff] %v895_v3  ;;  %1599 = vst [vmem:[%s2158_s25 + $0x670] sm:$0xff] %v1288_v4 }
 0x1ab   : > { %v897_v5 = vpop.f32.mrf.mxu0  ;;  %v1290_v6 = vpop.f32.mrf.mxu1 }
 0x1ac   : > { %1598 = vst [vmem:[%s2158_s25 + $0x668] sm:$0xff] %v897_v5  ;;  %1600 = vst [vmem:[%s2158_s25 + $0x678] sm:$0xff] %v1290_v6 }
 0x1ad   : > { %v901_v7 = vpop.f32.mrf.mxu0  ;;  %v1294_v8 = vpop.f32.mrf.mxu1 }
 0x1ae   : > { %1601 = vst [vmem:[%s2158_s25 + $0x680] sm:$0xff] %v901_v7  ;;  %1603 = vst [vmem:[%s2158_s25 + $0x690] sm:$0xff] %v1294_v8 }
 0x1af   : > { %v903_v9 = vpop.f32.mrf.mxu0  ;;  %v1296_v10 = vpop.f32.mrf.mxu1 }
 0x1b0   : > { %1602 = vst [vmem:[%s2158_s25 + $0x688] sm:$0xff] %v903_v9  ;;  %1604 = vst [vmem:[%s2158_s25 + $0x698] sm:$0xff] %v1296_v10 }
 0x1b1   : > { %v905_v11 = vpop.f32.mrf.mxu0  ;;  %v1298_v12 = vpop.f32.mrf.mxu1 }
 0x1b2   : > { %1605 = vst [vmem:[%s2158_s25 + $0x6a0] sm:$0xff] %v905_v11  ;;  %1607 = vst [vmem:[%s2158_s25 + $0x6b0] sm:$0xff] %v1298_v12 }
 0x1b3   : > { %v907_v13 = vpop.f32.mrf.mxu0  ;;  %v1300_v14 = vpop.f32.mrf.mxu1 }
 0x1b4   : > { %1606 = vst [vmem:[%s2158_s25 + $0x6a8] sm:$0xff] %v907_v13  ;;  %1608 = vst [vmem:[%s2158_s25 + $0x6b8] sm:$0xff] %v1300_v14 }
 0x1b5   : > { %v911_v2 = vpop.f32.mrf.mxu0  ;;  %v1304_v15 = vpop.f32.mrf.mxu1 }
 0x1b6   : > { %1609 = vst [vmem:[%s2158_s25 + $0x6c0] sm:$0xff] %v911_v2  ;;  %1611 = vst [vmem:[%s2158_s25 + $0x6d0] sm:$0xff] %v1304_v15 }
 0x1b7   : > { %v913_v16 = vpop.f32.mrf.mxu0  ;;  %v1306_v17 = vpop.f32.mrf.mxu1 }
 0x1b8   : > { %1610 = vst [vmem:[%s2158_s25 + $0x6c8] sm:$0xff] %v913_v16  ;;  %1612 = vst [vmem:[%s2158_s25 + $0x6d8] sm:$0xff] %v1306_v17 }
 0x1b9   : > { %v915_v18 = vpop.f32.mrf.mxu0  ;;  %v1308_v19 = vpop.f32.mrf.mxu1 }
 0x1ba   : > { %1613 = vst [vmem:[%s2158_s25 + $0x6e0] sm:$0xff] %v915_v18  ;;  %1615 = vst [vmem:[%s2158_s25 + $0x6f0] sm:$0xff] %v1308_v19 }
 0x1bb   : > { %v917_v20 = vpop.f32.mrf.mxu0  ;;  %v1310_v21 = vpop.f32.mrf.mxu1 }
 0x1bc   : > { %1614 = vst [vmem:[%s2158_s25 + $0x6e8] sm:$0xff] %v917_v20  ;;  %1616 = vst [vmem:[%s2158_s25 + $0x6f8] sm:$0xff] %v1310_v21 }
 0x1bd   : > { %v921_v22 = vpop.f32.mrf.mxu0  ;;  %v1314_v23 = vpop.f32.mrf.mxu1 }
 0x1be   : > { %1617 = vst [vmem:[%s2158_s25 + $0x700] sm:$0xff] %v921_v22  ;;  %1619 = vst [vmem:[%s2158_s25 + $0x710] sm:$0xff] %v1314_v23 }
 0x1bf   : > { %v923_v24 = vpop.f32.mrf.mxu0  ;;  %v1316_v25 = vpop.f32.mrf.mxu1 }
 0x1c0   : > { %1618 = vst [vmem:[%s2158_s25 + $0x708] sm:$0xff] %v923_v24  ;;  %1620 = vst [vmem:[%s2158_s25 + $0x718] sm:$0xff] %v1316_v25 }
 0x1c1   : > { %v925_v26 = vpop.f32.mrf.mxu0  ;;  %v1318_v27 = vpop.f32.mrf.mxu1 }
 0x1c2   : > { %1621 = vst [vmem:[%s2158_s25 + $0x720] sm:$0xff] %v925_v26  ;;  %1623 = vst [vmem:[%s2158_s25 + $0x730] sm:$0xff] %v1318_v27 }
 0x1c3   : > { %v927_v28 = vpop.f32.mrf.mxu0  ;;  %v1320_v29 = vpop.f32.mrf.mxu1 }
 0x1c4   : > { %1622 = vst [vmem:[%s2158_s25 + $0x728] sm:$0xff] %v927_v28  ;;  %1624 = vst [vmem:[%s2158_s25 + $0x738] sm:$0xff] %v1320_v29 }
 0x1c5   : > { %v931_v30 = vpop.f32.mrf.mxu0  ;;  %v1324_v31 = vpop.f32.mrf.mxu1 }
 0x1c6   : > { %1625 = vst [vmem:[%s2158_s25 + $0x740] sm:$0xff] %v931_v30  ;;  %1627 = vst [vmem:[%s2158_s25 + $0x750] sm:$0xff] %v1324_v31 }
 0x1c7   : > { %v933_v32 = vpop.f32.mrf.mxu0  ;;  %v1326_v33 = vpop.f32.mrf.mxu1 }
 0x1c8   : > { %1626 = vst [vmem:[%s2158_s25 + $0x748] sm:$0xff] %v933_v32  ;;  %1628 = vst [vmem:[%s2158_s25 + $0x758] sm:$0xff] %v1326_v33 }
 0x1c9   : > { %v935_v34 = vpop.f32.mrf.mxu0  ;;  %v1328_v35 = vpop.f32.mrf.mxu1 }
 0x1ca   : > { %1629 = vst [vmem:[%s2158_s25 + $0x760] sm:$0xff] %v935_v34  ;;  %1631 = vst [vmem:[%s2158_s25 + $0x770] sm:$0xff] %v1328_v35 }
 0x1cb   : > { %v937_v36 = vpop.f32.mrf.mxu0  ;;  %v1330_v37 = vpop.f32.mrf.mxu1 }
 0x1cc   : > { %1630 = vst [vmem:[%s2158_s25 + $0x768] sm:$0xff] %v937_v36  ;;  %1632 = vst [vmem:[%s2158_s25 + $0x778] sm:$0xff] %v1330_v37 }
 0x1cd   : > { %v941_v38 = vpop.f32.mrf.mxu0  ;;  %v1334_v39 = vpop.f32.mrf.mxu1 }
 0x1ce   : > { %1633 = vst [vmem:[%s2158_s25 + $0x780] sm:$0xff] %v941_v38  ;;  %1635 = vst [vmem:[%s2158_s25 + $0x790] sm:$0xff] %v1334_v39 }
 0x1cf   : > { %v943_v40 = vpop.f32.mrf.mxu0  ;;  %v1336_v41 = vpop.f32.mrf.mxu1 }
 0x1d0   : > { %1634 = vst [vmem:[%s2158_s25 + $0x788] sm:$0xff] %v943_v40  ;;  %1636 = vst [vmem:[%s2158_s25 + $0x798] sm:$0xff] %v1336_v41 }
 0x1d1   : > { %v945_v42 = vpop.f32.mrf.mxu0  ;;  %v1338_v43 = vpop.f32.mrf.mxu1 }
 0x1d2   : > { %1637 = vst [vmem:[%s2158_s25 + $0x7a0] sm:$0xff] %v945_v42  ;;  %1639 = vst [vmem:[%s2158_s25 + $0x7b0] sm:$0xff] %v1338_v43 }
 0x1d3   : > { %v947_v44 = vpop.f32.mrf.mxu0  ;;  %v1340_v45 = vpop.f32.mrf.mxu1 }
 0x1d4   : > { %1638 = vst [vmem:[%s2158_s25 + $0x7a8] sm:$0xff] %v947_v44  ;;  %1640 = vst [vmem:[%s2158_s25 + $0x7b8] sm:$0xff] %v1340_v45 }
 0x1d5   : > { %v951_v46 = vpop.f32.mrf.mxu0  ;;  %v1344_v47 = vpop.f32.mrf.mxu1 }
 0x1d6   : > { %1641 = vst [vmem:[%s2158_s25 + $0x7c0] sm:$0xff] %v951_v46  ;;  %1643 = vst [vmem:[%s2158_s25 + $0x7d0] sm:$0xff] %v1344_v47 }
 0x1d7   : > { %v953_v48 = vpop.f32.mrf.mxu0  ;;  %v1346_v49 = vpop.f32.mrf.mxu1 }
 0x1d8   : > { %1642 = vst [vmem:[%s2158_s25 + $0x7c8] sm:$0xff] %v953_v48  ;;  %1644 = vst [vmem:[%s2158_s25 + $0x7d8] sm:$0xff] %v1346_v49 }
 0x1d9   : > { %v955_v50 = vpop.f32.mrf.mxu0  ;;  %v1348_v51 = vpop.f32.mrf.mxu1 }
 0x1da   : > { %1645 = vst [vmem:[%s2158_s25 + $0x7e0] sm:$0xff] %v955_v50  ;;  %1647 = vst [vmem:[%s2158_s25 + $0x7f0] sm:$0xff] %v1348_v51 }
 0x1db   : > { %v957_v52 = vpop.f32.mrf.mxu0  ;;  %v1350_v53 = vpop.f32.mrf.mxu1 }
 0x1dc   : > { %1646 = vst [vmem:[%s2158_s25 + $0x7e8] sm:$0xff] %v957_v52  ;;  %1648 = vst [vmem:[%s2158_s25 + $0x7f8] sm:$0xff] %v1350_v53 }
 0x1dd   : > { %v961_v54 = vpop.f32.mrf.mxu0  ;;  %v1354_v55 = vpop.f32.mrf.mxu1 }
 0x1de   : > { %1649 = vst [vmem:[%s2158_s25 + $0x800] sm:$0xff] %v961_v54  ;;  %1651 = vst [vmem:[%s2158_s25 + $0x810] sm:$0xff] %v1354_v55 }
 0x1df   : > { %v963_v56 = vpop.f32.mrf.mxu0  ;;  %v1356_v57 = vpop.f32.mrf.mxu1 }
 0x1e0   : > { %1650 = vst [vmem:[%s2158_s25 + $0x808] sm:$0xff] %v963_v56  ;;  %1652 = vst [vmem:[%s2158_s25 + $0x818] sm:$0xff] %v1356_v57 }
 0x1e1   : > { %v965_v58 = vpop.f32.mrf.mxu0  ;;  %v1358_v59 = vpop.f32.mrf.mxu1 }
 0x1e2   : > { %1653 = vst [vmem:[%s2158_s25 + $0x820] sm:$0xff] %v965_v58  ;;  %1655 = vst [vmem:[%s2158_s25 + $0x830] sm:$0xff] %v1358_v59 }
 0x1e3   : > { %v967_v60 = vpop.f32.mrf.mxu0  ;;  %v1360_v61 = vpop.f32.mrf.mxu1 }
 0x1e4   : > { %1654 = vst [vmem:[%s2158_s25 + $0x828] sm:$0xff] %v967_v60  ;;  %1656 = vst [vmem:[%s2158_s25 + $0x838] sm:$0xff] %v1360_v61 }
 0x1e5   : > { %v971_v62 = vpop.f32.mrf.mxu0  ;;  %v1364_v63 = vpop.f32.mrf.mxu1 }
 0x1e6   : > { %1657 = vst [vmem:[%s2158_s25 + $0x840] sm:$0xff] %v971_v62  ;;  %1659 = vst [vmem:[%s2158_s25 + $0x850] sm:$0xff] %v1364_v63 }
 0x1e7   : > { %v973_v0 = vpop.f32.mrf.mxu0  ;;  %v1366_v1 = vpop.f32.mrf.mxu1 }
 0x1e8   : > { %1658 = vst [vmem:[%s2158_s25 + $0x848] sm:$0xff] %v973_v0  ;;  %1660 = vst [vmem:[%s2158_s25 + $0x858] sm:$0xff] %v1366_v1 }
 0x1e9   : > { %v975_v3 = vpop.f32.mrf.mxu0  ;;  %v1368_v4 = vpop.f32.mrf.mxu1 }
 0x1ea   : > { %1661 = vst [vmem:[%s2158_s25 + $0x860] sm:$0xff] %v975_v3  ;;  %1663 = vst [vmem:[%s2158_s25 + $0x870] sm:$0xff] %v1368_v4 }
 0x1eb   : > { %v977_v5 = vpop.f32.mrf.mxu0  ;;  %v1370_v6 = vpop.f32.mrf.mxu1 }
 0x1ec   : > { %1662 = vst [vmem:[%s2158_s25 + $0x868] sm:$0xff] %v977_v5  ;;  %1664 = vst [vmem:[%s2158_s25 + $0x878] sm:$0xff] %v1370_v6 }
 0x1ed   : > { %v981_v7 = vpop.f32.mrf.mxu0  ;;  %v1374_v8 = vpop.f32.mrf.mxu1 }
 0x1ee   : > { %1665 = vst [vmem:[%s2158_s25 + $0x880] sm:$0xff] %v981_v7  ;;  %1667 = vst [vmem:[%s2158_s25 + $0x890] sm:$0xff] %v1374_v8 }
 0x1ef   : > { %v983_v9 = vpop.f32.mrf.mxu0  ;;  %v1376_v10 = vpop.f32.mrf.mxu1 }
 0x1f0   : > { %1666 = vst [vmem:[%s2158_s25 + $0x888] sm:$0xff] %v983_v9  ;;  %1668 = vst [vmem:[%s2158_s25 + $0x898] sm:$0xff] %v1376_v10 }
 0x1f1   : > { %v985_v11 = vpop.f32.mrf.mxu0  ;;  %v1378_v12 = vpop.f32.mrf.mxu1 }
 0x1f2   : > { %1669 = vst [vmem:[%s2158_s25 + $0x8a0] sm:$0xff] %v985_v11  ;;  %1671 = vst [vmem:[%s2158_s25 + $0x8b0] sm:$0xff] %v1378_v12 }
 0x1f3   : > { %v987_v13 = vpop.f32.mrf.mxu0  ;;  %v1380_v14 = vpop.f32.mrf.mxu1 }
 0x1f4   : > { %1670 = vst [vmem:[%s2158_s25 + $0x8a8] sm:$0xff] %v987_v13  ;;  %1672 = vst [vmem:[%s2158_s25 + $0x8b8] sm:$0xff] %v1380_v14 }
 0x1f5   : > { %v991_v2 = vpop.f32.mrf.mxu0  ;;  %v1384_v15 = vpop.f32.mrf.mxu1 }
 0x1f6   : > { %1673 = vst [vmem:[%s2158_s25 + $0x8c0] sm:$0xff] %v991_v2  ;;  %1675 = vst [vmem:[%s2158_s25 + $0x8d0] sm:$0xff] %v1384_v15 }
 0x1f7   : > { %v993_v16 = vpop.f32.mrf.mxu0  ;;  %v1386_v17 = vpop.f32.mrf.mxu1 }
 0x1f8   : > { %1674 = vst [vmem:[%s2158_s25 + $0x8c8] sm:$0xff] %v993_v16  ;;  %1676 = vst [vmem:[%s2158_s25 + $0x8d8] sm:$0xff] %v1386_v17 }
 0x1f9   : > { %v995_v18 = vpop.f32.mrf.mxu0  ;;  %v1388_v19 = vpop.f32.mrf.mxu1 }
 0x1fa   : > { %1677 = vst [vmem:[%s2158_s25 + $0x8e0] sm:$0xff] %v995_v18  ;;  %1679 = vst [vmem:[%s2158_s25 + $0x8f0] sm:$0xff] %v1388_v19 }
 0x1fb   : > { %v997_v20 = vpop.f32.mrf.mxu0  ;;  %v1390_v21 = vpop.f32.mrf.mxu1 }
 0x1fc   : > { %1678 = vst [vmem:[%s2158_s25 + $0x8e8] sm:$0xff] %v997_v20  ;;  %1680 = vst [vmem:[%s2158_s25 + $0x8f8] sm:$0xff] %v1390_v21 }
 0x1fd PF: > { %s12_s9 = sadd.s32 1, %s1949_s9  }
 0x1fe   : > { %p9_p4 = scmp.ge.s32.totalorder %s12_s9, 4  }
 0x200   :  { %11 = sbr.rel (!%p9_p4) target bundleno = 1 (0x1), region = 58 }

// kernel: tile.38
= control target key start
LH: loop header
LB: loop body
LE: loop exit
PB: predicated region body
PF: predicated region fallthrough
CT: control target
= control target key end

     0   :  { %s40_s0 = inlined_call_operand.vmem [shape: f32[3], index: 0, kind: input, shape index: {}]   ;;  %s41_s1 = inlined_call_operand.vmem [shape: f32[25,3], index: 1, kind: output, shape index: {}]  }
   0x1   :  { %v4_v0 = vld [vmem:[%s40_s0] ss:$0 sm:$0xff] }
   0x2   :  { %5 = vst [vmem:[%s41_s1] sm:$0xff] %v4_v0  ;;  %12 = vst [vmem:[%s41_s1 + $0x8] sm:$0xff] %v4_v0 }
   0x3   :  { %13 = vst [vmem:[%s41_s1 + $0x10] sm:$0xff] %v4_v0  ;;  %14 = vst [vmem:[%s41_s1 + $0x18] sm:$0xff] %v4_v0 }

// kernel: mul.83
= control target key start
LH: loop header
LB: loop body
LE: loop exit
PB: predicated region body
PF: predicated region fallthrough
CT: control target
= control target key end

     0   :  { %s205_s10 = smov 72   ;;  %s206_s11 = smov 66   ;;  %vm3_vm0 = vcmask 23552   ;;  %vm9_vm1 = vcmask 613952   ;;  %vm15_vm2 = vcmask 589352   ;;  %vm21_vm3 = vcmask 564752   ;;  %s317_s0 = inlined_call_operand.vmem [shape: f32[25,3], index: 0, kind: input, shape index: {}]   ;;  %s318_s1 = inlined_call_operand.vmem [shape: f32[75], index: 1, kind: output, shape index: {}]  }
   0x1   :  { %v157_v0 = vld [vmem:[%s317_s0 + $0x18] sm:$0x1]   ;;  %v159_v1 = vld [vmem:[%s317_s0 + $0x16] sm:$0x1]   ;;  %v158_v2 = vld [vmem:[%s317_s0 + $0x17] sm:$0x1]  }
   0x2   :  { %7 = vrot.lane.b32.xlu0 %v157_v0, %s205_s10  ;;  %19 = vrot.lane.b32.xlu1 %v159_v1, %s206_s11  ;;  %v160_v3 = vld [vmem:[%s317_s0 + $0x15] sm:$0x1]   ;;  %s207_s16 = smov 69   ;;  %s208_s17 = smov 63   ;;  %v161_v4 = vld [vmem:[%s317_s0 + $0x14] sm:$0x1]  }
   0x3   :  { %v162_v5 = vld [vmem:[%s317_s0 + $0x13] sm:$0x1]   ;;  %s209_s22 = smov 60   ;;  %s210_s23 = smov 57   ;;  %v163_v6 = vld [vmem:[%s317_s0 + $0x12] sm:$0x1]  }
   0x4   :  { %v164_v7 = vld [vmem:[%s317_s0 + $0x11] sm:$0x1]   ;;  %v2_v8 = vld [vmem:[%s317_s0] sm:$0x1]   ;;  %s211_s30 = smov 54   ;;  %s212_s2 = smov 51  }
   0x5   :  { %4 = vst.msk [vmem:[#allocation0] sm:$0x1] %vm3_vm0, %v2_v8   ;;  %v165_v9 = vld [vmem:[%s317_s0 + $0x10] sm:$0x1]   ;;  %v166_v10 = vld [vmem:[%s317_s0 + $0xf] sm:$0x1]  }
   0x6   :  { %13 = vrot.lane.b32.xlu0 %v158_v2, %s207_s16  ;;  %25 = vrot.lane.b32.xlu1 %v160_v3, %s208_s17  ;;  %s213_s7 = smov 48   ;;  %s214_s8 = smov 45   ;;  %v167_v11 = vld [vmem:[%s317_s0 + $0xe] sm:$0x1]   ;;  %v168_v12 = vld [vmem:[%s317_s0 + $0xd] sm:$0x1]  }
   0x7   :  { %s215_s13 = smov 42   ;;  %s216_s14 = smov 39   ;;  %v169_v13 = vld [vmem:[%s317_s0 + $0xc] sm:$0x1]   ;;  %v170_v14 = vld [vmem:[%s317_s0 + $0xb] sm:$0x1]  }
   0x8   :  { %s217_s19 = smov 36   ;;  %s218_s20 = smov 33   ;;  %v171_v15 = vld [vmem:[%s317_s0 + $0xa] sm:$0x1]   ;;  %v172_v16 = vld [vmem:[%s317_s0 + $0x9] sm:$0x1]  }
   0x9   :  { %s219_s25 = smov 30   ;;  %s220_s26 = smov 27   ;;  %v173_v17 = vld [vmem:[%s317_s0 + $0x8] sm:$0x1]   ;;  %v174_v18 = vld [vmem:[%s317_s0 + $0x7] sm:$0x1]  }
   0xa   :  { %31 = vrot.lane.b32.xlu0 %v161_v4, %s209_s22  ;;  %37 = vrot.lane.b32.xlu1 %v162_v5, %s210_s23  ;;  %s222_s3 = smov 21   ;;  %v175_v19 = vld [vmem:[%s317_s0 + $0x6] sm:$0x1]   ;;  %v176_v20 = vld [vmem:[%s317_s0 + $0x5] sm:$0x1]   ;;  %s224_s9 = smov 15  }
   0xb   :  { %v177_v21 = vld [vmem:[%s317_s0 + $0x4] sm:$0x1]   ;;  %v178_v22 = vld [vmem:[%s317_s0 + $0x3] sm:$0x1]   ;;  %s226_s15 = smov 9   ;;  %vm27_vm4 = vcmask 540152  }
   0xc   :  { %v179_v23 = vld [vmem:[%s317_s0 + $0x2] sm:$0x1]   ;;  %v180_v24 = vld [vmem:[%s317_s0 + $0x1] sm:$0x1]   ;;  %s227_s0 = smov 6   ;;  %vm33_vm5 = vcmask 515552  }
   0xd   :  { %vm39_vm6 = vcmask 490952   ;;  %vm45_vm7 = vcmask 466352   ;;  %vm51_vm8 = vcmask 441752   ;;  %vm57_vm9 = vcmask 417152  }
   0xe   :  { %43 = vrot.lane.b32.xlu0 %v163_v6, %s211_s30  ;;  %49 = vrot.lane.b32.xlu1 %v164_v7, %s212_s2  ;;  %s221_s2 = smov 24   ;;  %vm63_vm10 = vcmask 392552   ;;  %vm69_vm11 = vcmask 367952   ;;  %vm75_vm12 = vcmask 343352   ;;  %vm81_vm13 = vcmask 318752  }
   0xf   :  { %vm87_vm14 = vcmask 294152   ;;  %vm93_vm15 = vcmask 269552   ;;  %vm99_vm0 = vcmask 244952  }
  0x12   :  { %55 = vrot.lane.b32.xlu0 %v165_v9, %s213_s7  ;;  %61 = vrot.lane.b32.xlu1 %v166_v10, %s214_s8  ;;  %s223_s8 = smov 18  }
  0x16   :  { %67 = vrot.lane.b32.xlu0 %v167_v11, %s215_s13  ;;  %73 = vrot.lane.b32.xlu1 %v168_v12, %s216_s14  ;;  %s225_s14 = smov 12  }
  0x1a   :  { %79 = vrot.lane.b32.xlu0 %v169_v13, %s217_s19  ;;  %85 = vrot.lane.b32.xlu1 %v170_v14, %s218_s20  ;;  %s228_s20 = smov 3  }
  0x1e   :  { %91 = vrot.lane.b32.xlu0 %v171_v15, %s219_s25  ;;  %97 = vrot.lane.b32.xlu1 %v172_v16, %s220_s26 }
  0x22   :  { %103 = vrot.lane.b32.xlu0 %v173_v17, %s221_s2  ;;  %109 = vrot.lane.b32.xlu1 %v174_v18, %s222_s3 }
  0x26   :  { %115 = vrot.lane.b32.xlu0 %v175_v19, %s223_s8  ;;  %121 = vrot.lane.b32.xlu1 %v176_v20, %s224_s9 }
  0x2a   :  { %127 = vrot.lane.b32.xlu0 %v177_v21, %s225_s14  ;;  %133 = vrot.lane.b32.xlu1 %v178_v22, %s226_s15 }
  0x2e   :  { %139 = vrot.lane.b32.xlu0 %v179_v23, %s227_s0  ;;  %145 = vrot.lane.b32.xlu1 %v180_v24, %s228_s20 }
  0x74   :  { %v8_v25 = vpop.permute.xlu0 %7   ;;  %v20_v26 = vpop.permute.xlu1 %19  }
  0x75   :  { %10 = vst.msk [vmem:[#allocation0] sm:$0x1] %vm9_vm1, %v8_v25   ;;  %vm105_vm1 = vcmask 220352  }
  0x78   :  { %v14_v27 = vpop.permute.xlu0 %13   ;;  %v26_v28 = vpop.permute.xlu1 %25  }
  0x79   :  { %16 = vst.msk [vmem:[#allocation0] sm:$0x1] %vm15_vm2, %v14_v27   ;;  %vm111_vm2 = vcmask 195752  }
  0x7a   :  { %22 = vst.msk [vmem:[#allocation0] sm:$0x1] %vm21_vm3, %v20_v26   ;;  %vm117_vm3 = vcmask 171152  }
  0x7b   :  { %28 = vst.msk [vmem:[#allocation0] sm:$0x1] %vm27_vm4, %v26_v28   ;;  %vm123_vm4 = vcmask 146552  }
  0x7c   :  { %v32_v29 = vpop.permute.xlu0 %31   ;;  %v38_v30 = vpop.permute.xlu1 %37  }
  0x7d   :  { %34 = vst.msk [vmem:[#allocation0] sm:$0x1] %vm33_vm5, %v32_v29   ;;  %vm129_vm5 = vcmask 121952  }
  0x7e   :  { %40 = vst.msk [vmem:[#allocation0] sm:$0x1] %vm39_vm6, %v38_v30   ;;  %vm135_vm6 = vcmask 97352  }
  0x80   :  { %v44_v31 = vpop.permute.xlu0 %43   ;;  %v50_v32 = vpop.permute.xlu1 %49  }
  0x81   :  { %46 = vst.msk [vmem:[#allocation0] sm:$0x1] %vm45_vm7, %v44_v31   ;;  %vm141_vm7 = vcmask 72752  }
  0x82   :  { %52 = vst.msk [vmem:[#allocation0] sm:$0x1] %vm51_vm8, %v50_v32   ;;  %vm147_vm8 = vcmask 48152  }
  0x84   :  { %v56_v33 = vpop.permute.xlu0 %55   ;;  %v62_v34 = vpop.permute.xlu1 %61  }
  0x85   :  { %58 = vst.msk [vmem:[#allocation0] sm:$0x1] %vm57_vm9, %v56_v33  }
  0x86   :  { %64 = vst.msk [vmem:[#allocation0] sm:$0x1] %vm63_vm10, %v62_v34  }
  0x88   :  { %v68_v35 = vpop.permute.xlu0 %67   ;;  %v74_v36 = vpop.permute.xlu1 %73  }
  0x89   :  { %70 = vst.msk [vmem:[#allocation0] sm:$0x1] %vm69_vm11, %v68_v35  }
  0x8a   :  { %76 = vst.msk [vmem:[#allocation0] sm:$0x1] %vm75_vm12, %v74_v36  }
  0x8c   :  { %v80_v37 = vpop.permute.xlu0 %79   ;;  %v86_v38 = vpop.permute.xlu1 %85  }
  0x8d   :  { %82 = vst.msk [vmem:[#allocation0] sm:$0x1] %vm81_vm13, %v80_v37  }
  0x8e   :  { %88 = vst.msk [vmem:[#allocation0] sm:$0x1] %vm87_vm14, %v86_v38  }
  0x90   :  { %v92_v39 = vpop.permute.xlu0 %91   ;;  %v98_v40 = vpop.permute.xlu1 %97  }
  0x91   :  { %94 = vst.msk [vmem:[#allocation0] sm:$0x1] %vm93_vm15, %v92_v39  }
  0x92   :  { %100 = vst.msk [vmem:[#allocation0] sm:$0x1] %vm99_vm0, %v98_v40  }
  0x94   :  { %v104_v41 = vpop.permute.xlu0 %103   ;;  %v110_v42 = vpop.permute.xlu1 %109  }
  0x95   :  { %106 = vst.msk [vmem:[#allocation0] sm:$0x1] %vm105_vm1, %v104_v41  }
  0x96   :  { %112 = vst.msk [vmem:[#allocation0] sm:$0x1] %vm111_vm2, %v110_v42  }
  0x98   :  { %v116_v43 = vpop.permute.xlu0 %115   ;;  %v122_v44 = vpop.permute.xlu1 %121  }
  0x99   :  { %118 = vst.msk [vmem:[#allocation0] sm:$0x1] %vm117_vm3, %v116_v43  }
  0x9a   :  { %124 = vst.msk [vmem:[#allocation0] sm:$0x1] %vm123_vm4, %v122_v44  }
  0x9c   :  { %v128_v45 = vpop.permute.xlu0 %127   ;;  %v134_v46 = vpop.permute.xlu1 %133  }
  0x9d   :  { %130 = vst.msk [vmem:[#allocation0] sm:$0x1] %vm129_vm5, %v128_v45  }
  0x9e   :  { %136 = vst.msk [vmem:[#allocation0] sm:$0x1] %vm135_vm6, %v134_v46  }
  0xa0   :  { %v140_v47 = vpop.permute.xlu0 %139   ;;  %v146_v48 = vpop.permute.xlu1 %145  }
  0xa1   :  { %142 = vst.msk [vmem:[#allocation0] sm:$0x1] %vm141_vm7, %v140_v47  }
  0xa2   :  { %148 = vst.msk [vmem:[#allocation0] sm:$0x1] %vm147_vm8, %v146_v48  }
  0xa9   :  { %v153_v49 = vld [vmem:[#allocation0] sm:$0x1] }
  0xaa   :  { %156 = vst [vmem:[%s318_s1] sm:$0x1] %v153_v49 }

// kernel: basic_ae_forward.5
= control target key start
LH: loop header
LB: loop body
LE: loop exit
PB: predicated region body
PF: predicated region fallthrough
CT: control target
= control target key end

     0   :  { %s2020_s9 = smov 0   ;;  %s2421_s0 = inlined_call_operand.vmem [shape: bf16[10736,32], index: 0, kind: input, shape index: {}]   ;;  %s2422_s1 = inlined_call_operand.vmem [shape: bf16[32,128], index: 1, kind: input, shape index: {}]   ;;  %s2423_s2 = inlined_call_operand.vmem [shape: f32[10736,128], index: 2, kind: output, shape index: {}]  }
   0x1 LB: > { %s1474_s10 = sadd.s32 4294967295, %s2001_s9   ;;  %p1478_p0 = scmp.ge.s32.totalorder %s2001_s9, 1  ;;  %s2001_s9 = sphi %s2020_s9, %s12_s9  }
   0x2   : > { %p113_p1 = scmp.lt.s32.totalorder %s2001_s9, 12 }
   0x4   : > { %p114_p2 = pnand %p1478_p0, %p113_p1 }
   0x5   : > { %s135_s15 = smul.u32 (!%p114_p2), 122, %s1474_s10 }
   0x6   : > { %117 = sbr.rel (%p114_p2) target bundleno = 459 (0x1cb), region = 28 }
   0x7   : > { %p136_p3 = scmp.lt.s32.totalorder (!%p114_p2), %s135_s15, 1341 }
   0xb   : > { %v1932_v0 = vld [vmem:[%s2422_s1 + $0x8] sm:$0xff]   ;;  %v2003_v1 = vmov 0.0   ;;  %v1933_v2 = vld [vmem:[%s2422_s1] sm:$0xff]   ;;  %vm2004_vm0 = vmmov 0   ;;  %s2425_s15 = smov (!%p136_p3, %s135_s15), 1341  ;;  %vm591_vm1 = vcmask 261120  }
   0xc   : > { %1670 = vmatprep.subr.bf16.mxu0 %v2003_v1  ;;  %1918 = vmatprep.subr.bf16.mxu1 %v2003_v1  ;;  %s1479_s16 = sshll.u32 %s2425_s15, 2  ;;  %s1480_s20 = sshll.u32 %s2425_s15, 3 }
   0xd   : > { %1671 = vmatpush3.bf16.msra.mxu0 %v1932_v0  ;;  %1920 = vmatpush3.bf16.msra.mxu1 %v1932_v0  ;;  %s2048_s19 = scalar_lea.vmem %s2421_s0, %s1479_s16  ;;  %s2248_s23 = scalar_lea.vmem %s2423_s2, %s1480_s20 }
   0xe   : > { %1672 = vmatprep.subr.bf16.mxu0 %v2003_v1  ;;  %1919 = vmatprep.subr.bf16.mxu1 %v2003_v1  ;;  %v1934_v3 = vld [vmem:[%s2048_s19] sm:$0xff]   ;;  %v1935_v4 = vld [vmem:[%s2048_s19 + $0xf8] sm:$0xff]   ;;  %v1936_v5 = vld [vmem:[%s2048_s19 + $0x8] sm:$0xff]  }
   0xf   : > { %1674 = vmatprep.mubr.msk.bf16.mxu0 %vm2004_vm0, %v2003_v1  ;;  %1798 = vmatprep.mubr.msk.bf16.mxu1 %vm2004_vm0, %v2003_v1  ;;  %v1937_v6 = vld [vmem:[%s2048_s19 + $0x100] sm:$0xff]   ;;  %v1938_v7 = vld [vmem:[%s2048_s19 + $0x10] sm:$0xff]   ;;  %v1939_v8 = vld [vmem:[%s2048_s19 + $0x108] sm:$0xff]  }
  0x10   : > { %v1940_v9 = vld [vmem:[%s2048_s19 + $0x18] sm:$0xff]   ;;  %v1941_v10 = vld [vmem:[%s2048_s19 + $0x110] sm:$0xff]   ;;  %v1942_v11 = vld [vmem:[%s2048_s19 + $0x20] sm:$0xff]  }
  0x11   : > { %1673 = vmatpush3.bf16.msra.mxu0 %v1933_v2  ;;  %1921 = vmatpush3.bf16.msra.mxu1 %v1933_v2  ;;  %v1943_v12 = vld [vmem:[%s2048_s19 + $0x118] sm:$0xff]   ;;  %v1944_v13 = vld [vmem:[%s2048_s19 + $0x28] sm:$0xff]   ;;  %v1945_v14 = vld [vmem:[%s2048_s19 + $0x120] sm:$0xff]  }
  0x12   : > { %v1946_v15 = vld [vmem:[%s2048_s19 + $0x30] sm:$0xff]   ;;  %v1947_v16 = vld [vmem:[%s2048_s19 + $0x128] sm:$0xff]   ;;  %v1948_v17 = vld [vmem:[%s2048_s19 + $0x38] sm:$0xff]  }
  0x13   : > { %v1949_v18 = vld [vmem:[%s2048_s19 + $0x130] sm:$0xff]   ;;  %v1950_v19 = vld [vmem:[%s2048_s19 + $0x40] sm:$0xff]   ;;  %v1951_v20 = vld [vmem:[%s2048_s19 + $0x138] sm:$0xff]  }
  0x14   : > { %1675 = vmatmul.mubr.msk.bf16.vlgmr.msra.gmra.mxu0 %vm591_vm1, %v1934_v3  ;;  %1799 = vmatmul.mubr.msk.bf16.vlgmr.msra.gmra.mxu1 %vm591_vm1, %v1935_v4  ;;  %v1952_v21 = vld [vmem:[%s2048_s19 + $0x48] sm:$0xff]   ;;  %v1953_v22 = vld [vmem:[%s2048_s19 + $0x140] sm:$0xff]   ;;  %v1954_v23 = vld [vmem:[%s2048_s19 + $0x50] sm:$0xff]  }
  0x15   : > { %1678 = vmatprep.mubr.msk.bf16.mxu0 %vm2004_vm0, %v2003_v1  ;;  %1802 = vmatprep.mubr.msk.bf16.mxu1 %vm2004_vm0, %v2003_v1  ;;  %v1955_v24 = vld [vmem:[%s2048_s19 + $0x148] sm:$0xff]   ;;  %v1956_v25 = vld [vmem:[%s2048_s19 + $0x58] sm:$0xff]   ;;  %v1957_v26 = vld [vmem:[%s2048_s19 + $0x150] sm:$0xff]  }
  0x16   : > { %v1958_v27 = vld [vmem:[%s2048_s19 + $0x60] sm:$0xff]   ;;  %v1959_v28 = vld [vmem:[%s2048_s19 + $0x158] sm:$0xff]   ;;  %v1960_v29 = vld [vmem:[%s2048_s19 + $0x68] sm:$0xff]  }
  0x17   : > { %v1961_v30 = vld [vmem:[%s2048_s19 + $0x160] sm:$0xff]   ;;  %v1962_v31 = vld [vmem:[%s2048_s19 + $0x70] sm:$0xff]   ;;  %v1963_v32 = vld [vmem:[%s2048_s19 + $0x168] sm:$0xff]  }
  0x18   : > { %v1964_v33 = vld [vmem:[%s2048_s19 + $0x78] sm:$0xff]   ;;  %v1965_v34 = vld [vmem:[%s2048_s19 + $0x170] sm:$0xff]   ;;  %v1966_v35 = vld [vmem:[%s2048_s19 + $0x80] sm:$0xff]  }
  0x19   : > { %v1967_v36 = vld [vmem:[%s2048_s19 + $0x178] sm:$0xff]   ;;  %v1968_v37 = vld [vmem:[%s2048_s19 + $0x88] sm:$0xff]   ;;  %v1969_v38 = vld [vmem:[%s2048_s19 + $0x180] sm:$0xff]  }
  0x1a   : > { %v1970_v39 = vld [vmem:[%s2048_s19 + $0x90] sm:$0xff]   ;;  %v1971_v40 = vld [vmem:[%s2048_s19 + $0x188] sm:$0xff]   ;;  %v1972_v41 = vld [vmem:[%s2048_s19 + $0x98] sm:$0xff]  }
  0x1b   : > { %v1973_v42 = vld [vmem:[%s2048_s19 + $0x190] sm:$0xff]   ;;  %v1974_v43 = vld [vmem:[%s2048_s19 + $0xa0] sm:$0xff]   ;;  %v1975_v44 = vld [vmem:[%s2048_s19 + $0x198] sm:$0xff]  }
  0x1c   : > { %1679 = vmatmul.mubr.msk.bf16.gmra.mxu0 %vm591_vm1, %v1936_v5  ;;  %1803 = vmatmul.mubr.msk.bf16.gmra.mxu1 %vm591_vm1, %v1937_v6  ;;  %v1976_v45 = vld [vmem:[%s2048_s19 + $0xa8] sm:$0xff]   ;;  %v1977_v46 = vld [vmem:[%s2048_s19 + $0x1a0] sm:$0xff]   ;;  %v1978_v47 = vld [vmem:[%s2048_s19 + $0xb0] sm:$0xff]  }
  0x1d   : > { %1682 = vmatprep.mubr.msk.bf16.mxu0 %vm2004_vm0, %v2003_v1  ;;  %1806 = vmatprep.mubr.msk.bf16.mxu1 %vm2004_vm0, %v2003_v1  ;;  %v1979_v48 = vld [vmem:[%s2048_s19 + $0x1a8] sm:$0xff]   ;;  %v1980_v49 = vld [vmem:[%s2048_s19 + $0xb8] sm:$0xff]   ;;  %v1981_v50 = vld [vmem:[%s2048_s19 + $0x1b0] sm:$0xff]  }
  0x1e   : > { %v1982_v51 = vld [vmem:[%s2048_s19 + $0xc0] sm:$0xff]   ;;  %v1983_v52 = vld [vmem:[%s2048_s19 + $0x1b8] sm:$0xff]   ;;  %v1984_v58 = vld [vmem:[%s2048_s19 + $0xc8] sm:$0xff]  }
  0x1f   : > { %v1985_v60 = vld [vmem:[%s2048_s19 + $0x1c0] sm:$0xff]   ;;  %v1986_v5 = vld [vmem:[%s2048_s19 + $0xd0] sm:$0xff]  }
  0x24   : > { %1683 = vmatmul.mubr.msk.bf16.gmra.mxu0 %vm591_vm1, %v1938_v7  ;;  %1807 = vmatmul.mubr.msk.bf16.gmra.mxu1 %vm591_vm1, %v1939_v8  ;;  %v1987_v7 = vld [vmem:[%s2048_s19 + $0x1c8] sm:$0xff]  }
  0x25   : > { %1686 = vmatprep.mubr.msk.bf16.mxu0 %vm2004_vm0, %v2003_v1  ;;  %1810 = vmatprep.mubr.msk.bf16.mxu1 %vm2004_vm0, %v2003_v1 }
  0x2c   : > { %1687 = vmatmul.mubr.msk.bf16.gmra.mxu0 %vm591_vm1, %v1940_v9  ;;  %1811 = vmatmul.mubr.msk.bf16.gmra.mxu1 %vm591_vm1, %v1941_v10 }
  0x2d   : > { %1690 = vmatprep.mubr.msk.bf16.mxu0 %vm2004_vm0, %v2003_v1  ;;  %1814 = vmatprep.mubr.msk.bf16.mxu1 %vm2004_vm0, %v2003_v1 }
  0x34   : > { %1691 = vmatmul.mubr.msk.bf16.gmra.mxu0 %vm591_vm1, %v1942_v11  ;;  %1815 = vmatmul.mubr.msk.bf16.gmra.mxu1 %vm591_vm1, %v1943_v12 }
  0x35   : > { %1694 = vmatprep.mubr.msk.bf16.mxu0 %vm2004_vm0, %v2003_v1  ;;  %1818 = vmatprep.mubr.msk.bf16.mxu1 %vm2004_vm0, %v2003_v1 }
  0x3c   : > { %1695 = vmatmul.mubr.msk.bf16.gmra.mxu0 %vm591_vm1, %v1944_v13  ;;  %1819 = vmatmul.mubr.msk.bf16.gmra.mxu1 %vm591_vm1, %v1945_v14 }
  0x3d   : > { %1698 = vmatprep.mubr.msk.bf16.mxu0 %vm2004_vm0, %v2003_v1  ;;  %1822 = vmatprep.mubr.msk.bf16.mxu1 %vm2004_vm0, %v2003_v1 }
  0x44   : > { %1699 = vmatmul.mubr.msk.bf16.gmra.mxu0 %vm591_vm1, %v1946_v15  ;;  %1823 = vmatmul.mubr.msk.bf16.gmra.mxu1 %vm591_vm1, %v1947_v16  ;;  %v1988_v15 = vld [vmem:[%s2048_s19 + $0xd8] sm:$0xff]  }
  0x45   : > { %1702 = vmatprep.mubr.msk.bf16.mxu0 %vm2004_vm0, %v2003_v1  ;;  %1826 = vmatprep.mubr.msk.bf16.mxu1 %vm2004_vm0, %v2003_v1 }
  0x4c   : > { %1703 = vmatmul.mubr.msk.bf16.gmra.mxu0 %vm591_vm1, %v1948_v17  ;;  %1827 = vmatmul.mubr.msk.bf16.gmra.mxu1 %vm591_vm1, %v1949_v18  ;;  %v1989_v17 = vld [vmem:[%s2048_s19 + $0x1d0] sm:$0xff]  }
  0x4d   : > { %1706 = vmatprep.mubr.msk.bf16.mxu0 %vm2004_vm0, %v2003_v1  ;;  %1830 = vmatprep.mubr.msk.bf16.mxu1 %vm2004_vm0, %v2003_v1 }
  0x54   : > { %1707 = vmatmul.mubr.msk.bf16.gmra.mxu0 %vm591_vm1, %v1950_v19  ;;  %1831 = vmatmul.mubr.msk.bf16.gmra.mxu1 %vm591_vm1, %v1951_v20 }
  0x55   : > { %1710 = vmatprep.mubr.msk.bf16.mxu0 %vm2004_vm0, %v2003_v1  ;;  %1834 = vmatprep.mubr.msk.bf16.mxu1 %vm2004_vm0, %v2003_v1 }
  0x5c   : > { %1711 = vmatmul.mubr.msk.bf16.gmra.mxu0 %vm591_vm1, %v1952_v21  ;;  %1835 = vmatmul.mubr.msk.bf16.gmra.mxu1 %vm591_vm1, %v1953_v22 }
  0x5d   : > { %1714 = vmatprep.mubr.msk.bf16.mxu0 %vm2004_vm0, %v2003_v1  ;;  %1838 = vmatprep.mubr.msk.bf16.mxu1 %vm2004_vm0, %v2003_v1 }
  0x64   : > { %1715 = vmatmul.mubr.msk.bf16.gmra.mxu0 %vm591_vm1, %v1954_v23  ;;  %1839 = vmatmul.mubr.msk.bf16.gmra.mxu1 %vm591_vm1, %v1955_v24 }
  0x65   : > { %1718 = vmatprep.mubr.msk.bf16.mxu0 %vm2004_vm0, %v2003_v1  ;;  %1842 = vmatprep.mubr.msk.bf16.mxu1 %vm2004_vm0, %v2003_v1 }
  0x6c   : > { %1719 = vmatmul.mubr.msk.bf16.gmra.mxu0 %vm591_vm1, %v1956_v25  ;;  %1843 = vmatmul.mubr.msk.bf16.gmra.mxu1 %vm591_vm1, %v1957_v26  ;;  %v1990_v25 = vld [vmem:[%s2048_s19 + $0xe0] sm:$0xff]  }
  0x6d   : > { %1722 = vmatprep.mubr.msk.bf16.mxu0 %vm2004_vm0, %v2003_v1  ;;  %1846 = vmatprep.mubr.msk.bf16.mxu1 %vm2004_vm0, %v2003_v1 }
  0x74   : > { %1723 = vmatmul.mubr.msk.bf16.gmra.mxu0 %vm591_vm1, %v1958_v27  ;;  %1847 = vmatmul.mubr.msk.bf16.gmra.mxu1 %vm591_vm1, %v1959_v28  ;;  %v1991_v27 = vld [vmem:[%s2048_s19 + $0x1d8] sm:$0xff]  }
  0x75   : > { %1726 = vmatprep.mubr.msk.bf16.mxu0 %vm2004_vm0, %v2003_v1  ;;  %1850 = vmatprep.mubr.msk.bf16.mxu1 %vm2004_vm0, %v2003_v1 }
  0x7c   : > { %1727 = vmatmul.mubr.msk.bf16.gmra.mxu0 %vm591_vm1, %v1960_v29  ;;  %1851 = vmatmul.mubr.msk.bf16.gmra.mxu1 %vm591_vm1, %v1961_v30 }
  0x7d   : > { %1730 = vmatprep.mubr.msk.bf16.mxu0 %vm2004_vm0, %v2003_v1  ;;  %1854 = vmatprep.mubr.msk.bf16.mxu1 %vm2004_vm0, %v2003_v1 }
  0x84   : > { %1731 = vmatmul.mubr.msk.bf16.gmra.mxu0 %vm591_vm1, %v1962_v31  ;;  %1855 = vmatmul.mubr.msk.bf16.gmra.mxu1 %vm591_vm1, %v1963_v32 }
  0x85   : > { %1734 = vmatprep.mubr.msk.bf16.mxu0 %vm2004_vm0, %v2003_v1  ;;  %1858 = vmatprep.mubr.msk.bf16.mxu1 %vm2004_vm0, %v2003_v1 }
  0x8c   : > { %1735 = vmatmul.mubr.msk.bf16.gmra.mxu0 %vm591_vm1, %v1964_v33  ;;  %1859 = vmatmul.mubr.msk.bf16.gmra.mxu1 %vm591_vm1, %v1965_v34 }
  0x8d   : > { %1738 = vmatprep.mubr.msk.bf16.mxu0 %vm2004_vm0, %v2003_v1  ;;  %1862 = vmatprep.mubr.msk.bf16.mxu1 %vm2004_vm0, %v2003_v1 }
  0x94   : > { %1739 = vmatmul.mubr.msk.bf16.gmra.mxu0 %vm591_vm1, %v1966_v35  ;;  %1863 = vmatmul.mubr.msk.bf16.gmra.mxu1 %vm591_vm1, %v1967_v36  ;;  %v1992_v35 = vld [vmem:[%s2048_s19 + $0xe8] sm:$0xff]  }
  0x95   : > { %1742 = vmatprep.mubr.msk.bf16.mxu0 %vm2004_vm0, %v2003_v1  ;;  %1866 = vmatprep.mubr.msk.bf16.mxu1 %vm2004_vm0, %v2003_v1 }
  0x9c   : > { %1743 = vmatmul.mubr.msk.bf16.gmra.mxu0 %vm591_vm1, %v1968_v37  ;;  %1867 = vmatmul.mubr.msk.bf16.gmra.mxu1 %vm591_vm1, %v1969_v38  ;;  %v1993_v37 = vld [vmem:[%s2048_s19 + $0x1e0] sm:$0xff]  }
  0x9d   : > { %1746 = vmatprep.mubr.msk.bf16.mxu0 %vm2004_vm0, %v2003_v1  ;;  %1870 = vmatprep.mubr.msk.bf16.mxu1 %vm2004_vm0, %v2003_v1 }
  0xa4   : > { %1747 = vmatmul.mubr.msk.bf16.gmra.mxu0 %vm591_vm1, %v1970_v39  ;;  %1871 = vmatmul.mubr.msk.bf16.gmra.mxu1 %vm591_vm1, %v1971_v40 }
  0xa5   : > { %1750 = vmatprep.mubr.msk.bf16.mxu0 %vm2004_vm0, %v2003_v1  ;;  %1874 = vmatprep.mubr.msk.bf16.mxu1 %vm2004_vm0, %v2003_v1 }
  0xac   : > { %1751 = vmatmul.mubr.msk.bf16.gmra.mxu0 %vm591_vm1, %v1972_v41  ;;  %1875 = vmatmul.mubr.msk.bf16.gmra.mxu1 %vm591_vm1, %v1973_v42 }
  0xad   : > { %1754 = vmatprep.mubr.msk.bf16.mxu0 %vm2004_vm0, %v2003_v1  ;;  %1878 = vmatprep.mubr.msk.bf16.mxu1 %vm2004_vm0, %v2003_v1 }
  0xb4   : > { %1755 = vmatmul.mubr.msk.bf16.gmra.mxu0 %vm591_vm1, %v1974_v43  ;;  %1879 = vmatmul.mubr.msk.bf16.gmra.mxu1 %vm591_vm1, %v1975_v44 }
  0xb5   : > { %1758 = vmatprep.mubr.msk.bf16.mxu0 %vm2004_vm0, %v2003_v1  ;;  %1882 = vmatprep.mubr.msk.bf16.mxu1 %vm2004_vm0, %v2003_v1 }
  0xbc   : > { %1759 = vmatmul.mubr.msk.bf16.gmra.mxu0 %vm591_vm1, %v1976_v45  ;;  %1883 = vmatmul.mubr.msk.bf16.gmra.mxu1 %vm591_vm1, %v1977_v46  ;;  %v1994_v45 = vld [vmem:[%s2048_s19 + $0xf0] sm:$0xff]  }
  0xbd   : > { %1762 = vmatprep.mubr.msk.bf16.mxu0 %vm2004_vm0, %v2003_v1  ;;  %1886 = vmatprep.mubr.msk.bf16.mxu1 %vm2004_vm0, %v2003_v1 }
  0xc4   : > { %1763 = vmatmul.mubr.msk.bf16.gmra.mxu0 %vm591_vm1, %v1978_v47  ;;  %1887 = vmatmul.mubr.msk.bf16.gmra.mxu1 %vm591_vm1, %v1979_v48 }
  0xc5   : > { %1766 = vmatprep.mubr.msk.bf16.mxu0 %vm2004_vm0, %v2003_v1  ;;  %1890 = vmatprep.mubr.msk.bf16.mxu1 %vm2004_vm0, %v2003_v1 }
  0xcc   : > { %1767 = vmatmul.mubr.msk.bf16.gmra.mxu0 %vm591_vm1, %v1980_v49  ;;  %1891 = vmatmul.mubr.msk.bf16.gmra.mxu1 %vm591_vm1, %v1981_v50 }
  0xcd   : > { %1770 = vmatprep.mubr.msk.bf16.mxu0 %vm2004_vm0, %v2003_v1  ;;  %1894 = vmatprep.mubr.msk.bf16.mxu1 %vm2004_vm0, %v2003_v1 }
  0xd4   : > { %v809_v53 = vpop.f32.mrf.mxu0  ;;  %1771 = vmatmul.mubr.msk.bf16.gmra.mxu0 %vm591_vm1, %v1982_v51  ;;  %v1057_v54 = vpop.f32.mrf.mxu1  ;;  %1895 = vmatmul.mubr.msk.bf16.gmra.mxu1 %vm591_vm1, %v1983_v52 }
  0xd5   : > { %1296 = vst [vmem:[%s2248_s23] sm:$0xff] %v809_v53  ;;  %1774 = vmatprep.mubr.msk.bf16.mxu0 %vm2004_vm0, %v2003_v1  ;;  %1358 = vst [vmem:[%s2248_s23 + $0x1f0] sm:$0xff] %v1057_v54  ;;  %1898 = vmatprep.mubr.msk.bf16.mxu1 %vm2004_vm0, %v2003_v1 }
  0xd6   : > { %v1676_v55 = vpop.f32.mrf.mxu0  ;;  %v1800_v56 = vpop.f32.mrf.mxu1 }
  0xd8   : > { %v812_v57 = vpop.f32.mrf.mxu0  ;;  %v1060_v59 = vpop.f32.mrf.mxu1 }
  0xd9   : > { %1297 = vst [vmem:[%s2248_s23 + $0x8] sm:$0xff] %v812_v57  ;;  %1359 = vst [vmem:[%s2248_s23 + $0x1f8] sm:$0xff] %v1060_v59 }
  0xda   : > { %v1677_v61 = vpop.f32.mrf.mxu0  ;;  %v1801_v62 = vpop.f32.mrf.mxu1 }
  0xdc   : > { %v817_v63 = vpop.f32.mrf.mxu0  ;;  %1775 = vmatmul.mubr.msk.bf16.gmra.mxu0 %vm591_vm1, %v1984_v58  ;;  %v1065_v0 = vpop.f32.mrf.mxu1  ;;  %1899 = vmatmul.mubr.msk.bf16.gmra.mxu1 %vm591_vm1, %v1985_v60 }
  0xdd   : > { %1298 = vst [vmem:[%s2248_s23 + $0x10] sm:$0xff] %v817_v63  ;;  %1778 = vmatprep.mubr.msk.bf16.mxu0 %vm2004_vm0, %v2003_v1  ;;  %1360 = vst [vmem:[%s2248_s23 + $0x200] sm:$0xff] %v1065_v0  ;;  %1902 = vmatprep.mubr.msk.bf16.mxu1 %vm2004_vm0, %v2003_v1 }
  0xde   : > { %v1680_v2 = vpop.f32.mrf.mxu0  ;;  %v1804_v3 = vpop.f32.mrf.mxu1 }
  0xe0   : > { %v820_v4 = vpop.f32.mrf.mxu0  ;;  %v1068_v6 = vpop.f32.mrf.mxu1 }
  0xe1   : > { %1299 = vst [vmem:[%s2248_s23 + $0x18] sm:$0xff] %v820_v4  ;;  %1361 = vst [vmem:[%s2248_s23 + $0x208] sm:$0xff] %v1068_v6 }
  0xe2   : > { %v1681_v8 = vpop.f32.mrf.mxu0  ;;  %v1805_v9 = vpop.f32.mrf.mxu1 }
  0xe4   : > { %v825_v10 = vpop.f32.mrf.mxu0  ;;  %1779 = vmatmul.mubr.msk.bf16.gmra.mxu0 %vm591_vm1, %v1986_v5  ;;  %v1073_v11 = vpop.f32.mrf.mxu1  ;;  %1903 = vmatmul.mubr.msk.bf16.gmra.mxu1 %vm591_vm1, %v1987_v7 }
  0xe5   : > { %1300 = vst [vmem:[%s2248_s23 + $0x20] sm:$0xff] %v825_v10  ;;  %1782 = vmatprep.mubr.msk.bf16.mxu0 %vm2004_vm0, %v2003_v1  ;;  %1362 = vst [vmem:[%s2248_s23 + $0x210] sm:$0xff] %v1073_v11  ;;  %1906 = vmatprep.mubr.msk.bf16.mxu1 %vm2004_vm0, %v2003_v1 }
  0xe6   : > { %v1684_v12 = vpop.f32.mrf.mxu0  ;;  %v1808_v13 = vpop.f32.mrf.mxu1 }
  0xe8   : > { %v828_v14 = vpop.f32.mrf.mxu0  ;;  %v1076_v16 = vpop.f32.mrf.mxu1 }
  0xe9   : > { %1301 = vst [vmem:[%s2248_s23 + $0x28] sm:$0xff] %v828_v14  ;;  %1363 = vst [vmem:[%s2248_s23 + $0x218] sm:$0xff] %v1076_v16 }
  0xea   : > { %v1685_v18 = vpop.f32.mrf.mxu0  ;;  %v1809_v19 = vpop.f32.mrf.mxu1 }
  0xec   : > { %v833_v20 = vpop.f32.mrf.mxu0  ;;  %1783 = vmatmul.mubr.msk.bf16.gmra.mxu0 %vm591_vm1, %v1988_v15  ;;  %v1081_v21 = vpop.f32.mrf.mxu1  ;;  %1907 = vmatmul.mubr.msk.bf16.gmra.mxu1 %vm591_vm1, %v1989_v17 }
  0xed   : > { %1302 = vst [vmem:[%s2248_s23 + $0x30] sm:$0xff] %v833_v20  ;;  %1786 = vmatprep.mubr.msk.bf16.mxu0 %vm2004_vm0, %v2003_v1  ;;  %1364 = vst [vmem:[%s2248_s23 + $0x220] sm:$0xff] %v1081_v21  ;;  %1910 = vmatprep.mubr.msk.bf16.mxu1 %vm2004_vm0, %v2003_v1 }
  0xee   : > { %v1688_v22 = vpop.f32.mrf.mxu0  ;;  %v1812_v23 = vpop.f32.mrf.mxu1 }
  0xf0   : > { %v836_v24 = vpop.f32.mrf.mxu0  ;;  %v1084_v26 = vpop.f32.mrf.mxu1 }
  0xf1   : > { %1303 = vst [vmem:[%s2248_s23 + $0x38] sm:$0xff] %v836_v24  ;;  %1365 = vst [vmem:[%s2248_s23 + $0x228] sm:$0xff] %v1084_v26 }
  0xf2   : > { %v1689_v28 = vpop.f32.mrf.mxu0  ;;  %v1813_v29 = vpop.f32.mrf.mxu1 }
  0xf4   : > { %v841_v30 = vpop.f32.mrf.mxu0  ;;  %1787 = vmatmul.mubr.msk.bf16.gmra.mxu0 %vm591_vm1, %v1990_v25  ;;  %v1089_v31 = vpop.f32.mrf.mxu1  ;;  %1911 = vmatmul.mubr.msk.bf16.gmra.mxu1 %vm591_vm1, %v1991_v27 }
  0xf5   : > { %1304 = vst [vmem:[%s2248_s23 + $0x40] sm:$0xff] %v841_v30  ;;  %1790 = vmatprep.mubr.msk.bf16.mxu0 %vm2004_vm0, %v2003_v1  ;;  %1366 = vst [vmem:[%s2248_s23 + $0x230] sm:$0xff] %v1089_v31  ;;  %1914 = vmatprep.mubr.msk.bf16.mxu1 %vm2004_vm0, %v2003_v1 }
  0xf6   : > { %v1692_v32 = vpop.f32.mrf.mxu0  ;;  %v1816_v33 = vpop.f32.mrf.mxu1 }
  0xf8   : > { %v844_v34 = vpop.f32.mrf.mxu0  ;;  %v1092_v36 = vpop.f32.mrf.mxu1 }
  0xf9   : > { %1305 = vst [vmem:[%s2248_s23 + $0x48] sm:$0xff] %v844_v34  ;;  %1367 = vst [vmem:[%s2248_s23 + $0x238] sm:$0xff] %v1092_v36 }
  0xfa   : > { %v1693_v38 = vpop.f32.mrf.mxu0  ;;  %v1817_v39 = vpop.f32.mrf.mxu1 }
  0xfc   : > { %v849_v40 = vpop.f32.mrf.mxu0  ;;  %1791 = vmatmul.mubr.msk.bf16.gmra.mxu0 %vm591_vm1, %v1992_v35  ;;  %v1097_v41 = vpop.f32.mrf.mxu1  ;;  %1915 = vmatmul.mubr.msk.bf16.gmra.mxu1 %vm591_vm1, %v1993_v37 }
  0xfd   : > { %1306 = vst [vmem:[%s2248_s23 + $0x50] sm:$0xff] %v849_v40  ;;  %1794 = vmatprep.mubr.msk.bf16.mxu0 %vm2004_vm0, %v2003_v1  ;;  %1368 = vst [vmem:[%s2248_s23 + $0x240] sm:$0xff] %v1097_v41 }
  0xfe   : > { %v1696_v42 = vpop.f32.mrf.mxu0  ;;  %v1820_v43 = vpop.f32.mrf.mxu1 }
 0x100   : > { %v852_v44 = vpop.f32.mrf.mxu0  ;;  %v1100_v46 = vpop.f32.mrf.mxu1 }
 0x101   : > { %1307 = vst [vmem:[%s2248_s23 + $0x58] sm:$0xff] %v852_v44  ;;  %1369 = vst [vmem:[%s2248_s23 + $0x248] sm:$0xff] %v1100_v46 }
 0x102   : > { %v1697_v47 = vpop.f32.mrf.mxu0  ;;  %v1821_v48 = vpop.f32.mrf.mxu1 }
 0x104   : > { %v857_v49 = vpop.f32.mrf.mxu0  ;;  %1795 = vmatmul.mubr.msk.bf16.gmra.mxu0 %vm591_vm1, %v1994_v45  ;;  %v1105_v1 = vpop.f32.mrf.mxu1 }
 0x105   : > { %1308 = vst [vmem:[%s2248_s23 + $0x60] sm:$0xff] %v857_v49  ;;  %1370 = vst [vmem:[%s2248_s23 + $0x250] sm:$0xff] %v1105_v1 }
 0x106   : > { %v1700_v50 = vpop.f32.mrf.mxu0  ;;  %v1824_v51 = vpop.f32.mrf.mxu1 }
 0x108   : > { %v860_v52 = vpop.f32.mrf.mxu0  ;;  %v1108_v53 = vpop.f32.mrf.mxu1 }
 0x109   : > { %1309 = vst [vmem:[%s2248_s23 + $0x68] sm:$0xff] %v860_v52  ;;  %1371 = vst [vmem:[%s2248_s23 + $0x258] sm:$0xff] %v1108_v53 }
 0x10a   : > { %v1701_v54 = vpop.f32.mrf.mxu0  ;;  %v1825_v55 = vpop.f32.mrf.mxu1 }
 0x10c   : > { %v865_v56 = vpop.f32.mrf.mxu0  ;;  %v1113_v57 = vpop.f32.mrf.mxu1 }
 0x10d   : > { %1310 = vst [vmem:[%s2248_s23 + $0x70] sm:$0xff] %v865_v56  ;;  %1372 = vst [vmem:[%s2248_s23 + $0x260] sm:$0xff] %v1113_v57 }
 0x10e   : > { %v1704_v58 = vpop.f32.mrf.mxu0  ;;  %v1828_v59 = vpop.f32.mrf.mxu1 }
 0x110   : > { %v868_v60 = vpop.f32.mrf.mxu0  ;;  %v1116_v61 = vpop.f32.mrf.mxu1 }
 0x111   : > { %1311 = vst [vmem:[%s2248_s23 + $0x78] sm:$0xff] %v868_v60  ;;  %1373 = vst [vmem:[%s2248_s23 + $0x268] sm:$0xff] %v1116_v61 }
 0x112   : > { %v1705_v62 = vpop.f32.mrf.mxu0  ;;  %v1829_v63 = vpop.f32.mrf.mxu1 }
 0x114   : > { %v873_v0 = vpop.f32.mrf.mxu0  ;;  %v1121_v2 = vpop.f32.mrf.mxu1 }
 0x115   : > { %1312 = vst [vmem:[%s2248_s23 + $0x80] sm:$0xff] %v873_v0  ;;  %1374 = vst [vmem:[%s2248_s23 + $0x270] sm:$0xff] %v1121_v2 }
 0x116   : > { %v1708_v3 = vpop.f32.mrf.mxu0  ;;  %v1832_v4 = vpop.f32.mrf.mxu1 }
 0x118   : > { %v876_v5 = vpop.f32.mrf.mxu0  ;;  %v1124_v6 = vpop.f32.mrf.mxu1 }
 0x119   : > { %1313 = vst [vmem:[%s2248_s23 + $0x88] sm:$0xff] %v876_v5  ;;  %1375 = vst [vmem:[%s2248_s23 + $0x278] sm:$0xff] %v1124_v6 }
 0x11a   : > { %v1709_v7 = vpop.f32.mrf.mxu0  ;;  %v1833_v8 = vpop.f32.mrf.mxu1 }
 0x11c   : > { %v881_v9 = vpop.f32.mrf.mxu0  ;;  %v1129_v10 = vpop.f32.mrf.mxu1 }
 0x11d   : > { %1314 = vst [vmem:[%s2248_s23 + $0x90] sm:$0xff] %v881_v9  ;;  %1376 = vst [vmem:[%s2248_s23 + $0x280] sm:$0xff] %v1129_v10 }
 0x11e   : > { %v1712_v11 = vpop.f32.mrf.mxu0  ;;  %v1836_v12 = vpop.f32.mrf.mxu1 }
 0x120   : > { %v884_v13 = vpop.f32.mrf.mxu0  ;;  %v1132_v14 = vpop.f32.mrf.mxu1 }
 0x121   : > { %1315 = vst [vmem:[%s2248_s23 + $0x98] sm:$0xff] %v884_v13  ;;  %1377 = vst [vmem:[%s2248_s23 + $0x288] sm:$0xff] %v1132_v14 }
 0x122   : > { %v1713_v15 = vpop.f32.mrf.mxu0  ;;  %v1837_v16 = vpop.f32.mrf.mxu1 }
 0x124   : > { %v889_v17 = vpop.f32.mrf.mxu0  ;;  %v1137_v18 = vpop.f32.mrf.mxu1 }
 0x125   : > { %1316 = vst [vmem:[%s2248_s23 + $0xa0] sm:$0xff] %v889_v17  ;;  %1378 = vst [vmem:[%s2248_s23 + $0x290] sm:$0xff] %v1137_v18 }
 0x126   : > { %v1716_v19 = vpop.f32.mrf.mxu0  ;;  %v1840_v20 = vpop.f32.mrf.mxu1 }
 0x128   : > { %v892_v21 = vpop.f32.mrf.mxu0  ;;  %v1140_v22 = vpop.f32.mrf.mxu1 }
 0x129   : > { %1317 = vst [vmem:[%s2248_s23 + $0xa8] sm:$0xff] %v892_v21  ;;  %1379 = vst [vmem:[%s2248_s23 + $0x298] sm:$0xff] %v1140_v22 }
 0x12a   : > { %v1717_v23 = vpop.f32.mrf.mxu0  ;;  %v1841_v24 = vpop.f32.mrf.mxu1 }
 0x12c   : > { %v897_v25 = vpop.f32.mrf.mxu0  ;;  %v1145_v26 = vpop.f32.mrf.mxu1 }
 0x12d   : > { %1318 = vst [vmem:[%s2248_s23 + $0xb0] sm:$0xff] %v897_v25  ;;  %1380 = vst [vmem:[%s2248_s23 + $0x2a0] sm:$0xff] %v1145_v26 }
 0x12e   : > { %v1720_v27 = vpop.f32.mrf.mxu0  ;;  %v1844_v28 = vpop.f32.mrf.mxu1 }
 0x130   : > { %v900_v29 = vpop.f32.mrf.mxu0  ;;  %v1148_v30 = vpop.f32.mrf.mxu1 }
 0x131   : > { %1319 = vst [vmem:[%s2248_s23 + $0xb8] sm:$0xff] %v900_v29  ;;  %1381 = vst [vmem:[%s2248_s23 + $0x2a8] sm:$0xff] %v1148_v30 }
 0x132   : > { %v1721_v31 = vpop.f32.mrf.mxu0  ;;  %v1845_v32 = vpop.f32.mrf.mxu1 }
 0x134   : > { %v905_v33 = vpop.f32.mrf.mxu0  ;;  %v1153_v34 = vpop.f32.mrf.mxu1 }
 0x135   : > { %1320 = vst [vmem:[%s2248_s23 + $0xc0] sm:$0xff] %v905_v33  ;;  %1382 = vst [vmem:[%s2248_s23 + $0x2b0] sm:$0xff] %v1153_v34 }
 0x136   : > { %v1724_v35 = vpop.f32.mrf.mxu0  ;;  %v1848_v36 = vpop.f32.mrf.mxu1 }
 0x138   : > { %v908_v37 = vpop.f32.mrf.mxu0  ;;  %v1156_v38 = vpop.f32.mrf.mxu1 }
 0x139   : > { %1321 = vst [vmem:[%s2248_s23 + $0xc8] sm:$0xff] %v908_v37  ;;  %1383 = vst [vmem:[%s2248_s23 + $0x2b8] sm:$0xff] %v1156_v38 }
 0x13a   : > { %v1725_v39 = vpop.f32.mrf.mxu0  ;;  %v1849_v40 = vpop.f32.mrf.mxu1 }
 0x13c   : > { %v913_v41 = vpop.f32.mrf.mxu0  ;;  %v1161_v42 = vpop.f32.mrf.mxu1 }
 0x13d   : > { %1322 = vst [vmem:[%s2248_s23 + $0xd0] sm:$0xff] %v913_v41  ;;  %1384 = vst [vmem:[%s2248_s23 + $0x2c0] sm:$0xff] %v1161_v42 }
 0x13e   : > { %v1728_v43 = vpop.f32.mrf.mxu0  ;;  %v1852_v44 = vpop.f32.mrf.mxu1 }
 0x140   : > { %v916_v45 = vpop.f32.mrf.mxu0  ;;  %v1164_v46 = vpop.f32.mrf.mxu1 }
 0x141   : > { %1323 = vst [vmem:[%s2248_s23 + $0xd8] sm:$0xff] %v916_v45  ;;  %1385 = vst [vmem:[%s2248_s23 + $0x2c8] sm:$0xff] %v1164_v46 }
 0x142   : > { %v1729_v47 = vpop.f32.mrf.mxu0  ;;  %v1853_v48 = vpop.f32.mrf.mxu1 }
 0x144   : > { %v921_v49 = vpop.f32.mrf.mxu0  ;;  %v1169_v1 = vpop.f32.mrf.mxu1 }
 0x145   : > { %1324 = vst [vmem:[%s2248_s23 + $0xe0] sm:$0xff] %v921_v49  ;;  %1386 = vst [vmem:[%s2248_s23 + $0x2d0] sm:$0xff] %v1169_v1 }
 0x146   : > { %v1732_v50 = vpop.f32.mrf.mxu0  ;;  %v1856_v51 = vpop.f32.mrf.mxu1 }
 0x148   : > { %v924_v52 = vpop.f32.mrf.mxu0  ;;  %v1172_v53 = vpop.f32.mrf.mxu1 }
 0x149   : > { %1325 = vst [vmem:[%s2248_s23 + $0xe8] sm:$0xff] %v924_v52  ;;  %1387 = vst [vmem:[%s2248_s23 + $0x2d8] sm:$0xff] %v1172_v53 }
 0x14a   : > { %v1733_v54 = vpop.f32.mrf.mxu0  ;;  %v1857_v55 = vpop.f32.mrf.mxu1 }
 0x14c   : > { %v929_v56 = vpop.f32.mrf.mxu0  ;;  %v1177_v57 = vpop.f32.mrf.mxu1 }
 0x14d   : > { %1326 = vst [vmem:[%s2248_s23 + $0xf0] sm:$0xff] %v929_v56  ;;  %1388 = vst [vmem:[%s2248_s23 + $0x2e0] sm:$0xff] %v1177_v57 }
 0x14e   : > { %v1736_v58 = vpop.f32.mrf.mxu0  ;;  %v1860_v59 = vpop.f32.mrf.mxu1 }
 0x150   : > { %v932_v60 = vpop.f32.mrf.mxu0  ;;  %v1180_v61 = vpop.f32.mrf.mxu1 }
 0x151   : > { %1327 = vst [vmem:[%s2248_s23 + $0xf8] sm:$0xff] %v932_v60  ;;  %1389 = vst [vmem:[%s2248_s23 + $0x2e8] sm:$0xff] %v1180_v61 }
 0x152   : > { %v1737_v62 = vpop.f32.mrf.mxu0  ;;  %v1861_v63 = vpop.f32.mrf.mxu1 }
 0x154   : > { %v937_v0 = vpop.f32.mrf.mxu0  ;;  %v1185_v2 = vpop.f32.mrf.mxu1 }
 0x155   : > { %1328 = vst [vmem:[%s2248_s23 + $0x100] sm:$0xff] %v937_v0  ;;  %1390 = vst [vmem:[%s2248_s23 + $0x2f0] sm:$0xff] %v1185_v2 }
 0x156   : > { %v1740_v3 = vpop.f32.mrf.mxu0  ;;  %v1864_v4 = vpop.f32.mrf.mxu1 }
 0x158   : > { %v940_v5 = vpop.f32.mrf.mxu0  ;;  %v1188_v6 = vpop.f32.mrf.mxu1 }
 0x159   : > { %1329 = vst [vmem:[%s2248_s23 + $0x108] sm:$0xff] %v940_v5  ;;  %1391 = vst [vmem:[%s2248_s23 + $0x2f8] sm:$0xff] %v1188_v6 }
 0x15a   : > { %v1741_v7 = vpop.f32.mrf.mxu0  ;;  %v1865_v8 = vpop.f32.mrf.mxu1 }
 0x15c   : > { %v945_v9 = vpop.f32.mrf.mxu0  ;;  %v1193_v10 = vpop.f32.mrf.mxu1 }
 0x15d   : > { %1330 = vst [vmem:[%s2248_s23 + $0x110] sm:$0xff] %v945_v9  ;;  %1392 = vst [vmem:[%s2248_s23 + $0x300] sm:$0xff] %v1193_v10 }
 0x15e   : > { %v1744_v11 = vpop.f32.mrf.mxu0  ;;  %v1868_v12 = vpop.f32.mrf.mxu1 }
 0x160   : > { %v948_v13 = vpop.f32.mrf.mxu0  ;;  %v1196_v14 = vpop.f32.mrf.mxu1 }
 0x161   : > { %1331 = vst [vmem:[%s2248_s23 + $0x118] sm:$0xff] %v948_v13  ;;  %1393 = vst [vmem:[%s2248_s23 + $0x308] sm:$0xff] %v1196_v14 }
 0x162   : > { %v1745_v15 = vpop.f32.mrf.mxu0  ;;  %v1869_v16 = vpop.f32.mrf.mxu1 }
 0x164   : > { %v953_v17 = vpop.f32.mrf.mxu0  ;;  %v1201_v18 = vpop.f32.mrf.mxu1 }
 0x165   : > { %1332 = vst [vmem:[%s2248_s23 + $0x120] sm:$0xff] %v953_v17  ;;  %1394 = vst [vmem:[%s2248_s23 + $0x310] sm:$0xff] %v1201_v18 }
 0x166   : > { %v1748_v19 = vpop.f32.mrf.mxu0  ;;  %v1872_v20 = vpop.f32.mrf.mxu1 }
 0x168   : > { %v956_v21 = vpop.f32.mrf.mxu0  ;;  %v1204_v22 = vpop.f32.mrf.mxu1 }
 0x169   : > { %1333 = vst [vmem:[%s2248_s23 + $0x128] sm:$0xff] %v956_v21  ;;  %1395 = vst [vmem:[%s2248_s23 + $0x318] sm:$0xff] %v1204_v22 }
 0x16a   : > { %v1749_v23 = vpop.f32.mrf.mxu0  ;;  %v1873_v24 = vpop.f32.mrf.mxu1 }
 0x16c   : > { %v961_v25 = vpop.f32.mrf.mxu0  ;;  %v1209_v26 = vpop.f32.mrf.mxu1 }
 0x16d   : > { %1334 = vst [vmem:[%s2248_s23 + $0x130] sm:$0xff] %v961_v25  ;;  %1396 = vst [vmem:[%s2248_s23 + $0x320] sm:$0xff] %v1209_v26 }
 0x16e   : > { %v1752_v27 = vpop.f32.mrf.mxu0  ;;  %v1876_v28 = vpop.f32.mrf.mxu1 }
 0x170   : > { %v964_v29 = vpop.f32.mrf.mxu0  ;;  %v1212_v30 = vpop.f32.mrf.mxu1 }
 0x171   : > { %1335 = vst [vmem:[%s2248_s23 + $0x138] sm:$0xff] %v964_v29  ;;  %1397 = vst [vmem:[%s2248_s23 + $0x328] sm:$0xff] %v1212_v30 }
 0x172   : > { %v1753_v31 = vpop.f32.mrf.mxu0  ;;  %v1877_v32 = vpop.f32.mrf.mxu1 }
 0x174   : > { %v969_v33 = vpop.f32.mrf.mxu0  ;;  %v1217_v34 = vpop.f32.mrf.mxu1 }
 0x175   : > { %1336 = vst [vmem:[%s2248_s23 + $0x140] sm:$0xff] %v969_v33  ;;  %1398 = vst [vmem:[%s2248_s23 + $0x330] sm:$0xff] %v1217_v34 }
 0x176   : > { %v1756_v35 = vpop.f32.mrf.mxu0  ;;  %v1880_v36 = vpop.f32.mrf.mxu1 }
 0x178   : > { %v972_v37 = vpop.f32.mrf.mxu0  ;;  %v1220_v38 = vpop.f32.mrf.mxu1 }
 0x179   : > { %1337 = vst [vmem:[%s2248_s23 + $0x148] sm:$0xff] %v972_v37  ;;  %1399 = vst [vmem:[%s2248_s23 + $0x338] sm:$0xff] %v1220_v38 }
 0x17a   : > { %v1757_v39 = vpop.f32.mrf.mxu0  ;;  %v1881_v40 = vpop.f32.mrf.mxu1 }
 0x17c   : > { %v977_v41 = vpop.f32.mrf.mxu0  ;;  %v1225_v42 = vpop.f32.mrf.mxu1 }
 0x17d   : > { %1338 = vst [vmem:[%s2248_s23 + $0x150] sm:$0xff] %v977_v41  ;;  %1400 = vst [vmem:[%s2248_s23 + $0x340] sm:$0xff] %v1225_v42 }
 0x17e   : > { %v1760_v43 = vpop.f32.mrf.mxu0  ;;  %v1884_v44 = vpop.f32.mrf.mxu1 }
 0x180   : > { %v980_v45 = vpop.f32.mrf.mxu0  ;;  %v1228_v46 = vpop.f32.mrf.mxu1 }
 0x181   : > { %1339 = vst [vmem:[%s2248_s23 + $0x158] sm:$0xff] %v980_v45  ;;  %1401 = vst [vmem:[%s2248_s23 + $0x348] sm:$0xff] %v1228_v46 }
 0x182   : > { %v1761_v47 = vpop.f32.mrf.mxu0  ;;  %v1885_v48 = vpop.f32.mrf.mxu1 }
 0x184   : > { %v985_v49 = vpop.f32.mrf.mxu0  ;;  %v1233_v1 = vpop.f32.mrf.mxu1 }
 0x185   : > { %1340 = vst [vmem:[%s2248_s23 + $0x160] sm:$0xff] %v985_v49  ;;  %1402 = vst [vmem:[%s2248_s23 + $0x350] sm:$0xff] %v1233_v1 }
 0x186   : > { %v1764_v50 = vpop.f32.mrf.mxu0  ;;  %v1888_v51 = vpop.f32.mrf.mxu1 }
 0x188   : > { %v988_v52 = vpop.f32.mrf.mxu0  ;;  %v1236_v53 = vpop.f32.mrf.mxu1 }
 0x189   : > { %1341 = vst [vmem:[%s2248_s23 + $0x168] sm:$0xff] %v988_v52  ;;  %1403 = vst [vmem:[%s2248_s23 + $0x358] sm:$0xff] %v1236_v53 }
 0x18a   : > { %v1765_v54 = vpop.f32.mrf.mxu0  ;;  %v1889_v55 = vpop.f32.mrf.mxu1 }
 0x18c   : > { %v993_v56 = vpop.f32.mrf.mxu0  ;;  %v1241_v57 = vpop.f32.mrf.mxu1 }
 0x18d   : > { %1342 = vst [vmem:[%s2248_s23 + $0x170] sm:$0xff] %v993_v56  ;;  %1404 = vst [vmem:[%s2248_s23 + $0x360] sm:$0xff] %v1241_v57 }
 0x18e   : > { %v1768_v58 = vpop.f32.mrf.mxu0  ;;  %v1892_v59 = vpop.f32.mrf.mxu1 }
 0x190   : > { %v996_v60 = vpop.f32.mrf.mxu0  ;;  %v1244_v61 = vpop.f32.mrf.mxu1 }
 0x191   : > { %1343 = vst [vmem:[%s2248_s23 + $0x178] sm:$0xff] %v996_v60  ;;  %1405 = vst [vmem:[%s2248_s23 + $0x368] sm:$0xff] %v1244_v61 }
 0x192   : > { %v1769_v62 = vpop.f32.mrf.mxu0  ;;  %v1893_v63 = vpop.f32.mrf.mxu1 }
 0x194   : > { %v1001_v0 = vpop.f32.mrf.mxu0  ;;  %v1249_v2 = vpop.f32.mrf.mxu1 }
 0x195   : > { %1344 = vst [vmem:[%s2248_s23 + $0x180] sm:$0xff] %v1001_v0  ;;  %1406 = vst [vmem:[%s2248_s23 + $0x370] sm:$0xff] %v1249_v2 }
 0x196   : > { %v1772_v3 = vpop.f32.mrf.mxu0  ;;  %v1896_v4 = vpop.f32.mrf.mxu1 }
 0x198   : > { %v1004_v5 = vpop.f32.mrf.mxu0  ;;  %v1252_v6 = vpop.f32.mrf.mxu1 }
 0x199   : > { %1345 = vst [vmem:[%s2248_s23 + $0x188] sm:$0xff] %v1004_v5  ;;  %1407 = vst [vmem:[%s2248_s23 + $0x378] sm:$0xff] %v1252_v6 }
 0x19a   : > { %v1773_v7 = vpop.f32.mrf.mxu0  ;;  %v1897_v8 = vpop.f32.mrf.mxu1 }
 0x19c   : > { %v1009_v9 = vpop.f32.mrf.mxu0  ;;  %v1257_v10 = vpop.f32.mrf.mxu1 }
 0x19d   : > { %1346 = vst [vmem:[%s2248_s23 + $0x190] sm:$0xff] %v1009_v9  ;;  %1408 = vst [vmem:[%s2248_s23 + $0x380] sm:$0xff] %v1257_v10 }
 0x19e   : > { %v1776_v11 = vpop.f32.mrf.mxu0  ;;  %v1900_v12 = vpop.f32.mrf.mxu1 }
 0x1a0   : > { %v1012_v13 = vpop.f32.mrf.mxu0  ;;  %v1260_v14 = vpop.f32.mrf.mxu1 }
 0x1a1   : > { %1347 = vst [vmem:[%s2248_s23 + $0x198] sm:$0xff] %v1012_v13  ;;  %1409 = vst [vmem:[%s2248_s23 + $0x388] sm:$0xff] %v1260_v14 }
 0x1a2   : > { %v1777_v15 = vpop.f32.mrf.mxu0  ;;  %v1901_v16 = vpop.f32.mrf.mxu1 }
 0x1a4   : > { %v1017_v17 = vpop.f32.mrf.mxu0  ;;  %v1265_v18 = vpop.f32.mrf.mxu1 }
 0x1a5   : > { %1348 = vst [vmem:[%s2248_s23 + $0x1a0] sm:$0xff] %v1017_v17  ;;  %1410 = vst [vmem:[%s2248_s23 + $0x390] sm:$0xff] %v1265_v18 }
 0x1a6   : > { %v1780_v19 = vpop.f32.mrf.mxu0  ;;  %v1904_v20 = vpop.f32.mrf.mxu1 }
 0x1a8   : > { %v1020_v21 = vpop.f32.mrf.mxu0  ;;  %v1268_v22 = vpop.f32.mrf.mxu1 }
 0x1a9   : > { %1349 = vst [vmem:[%s2248_s23 + $0x1a8] sm:$0xff] %v1020_v21  ;;  %1411 = vst [vmem:[%s2248_s23 + $0x398] sm:$0xff] %v1268_v22 }
 0x1aa   : > { %v1781_v23 = vpop.f32.mrf.mxu0  ;;  %v1905_v24 = vpop.f32.mrf.mxu1 }
 0x1ac   : > { %v1025_v25 = vpop.f32.mrf.mxu0  ;;  %v1273_v26 = vpop.f32.mrf.mxu1 }
 0x1ad   : > { %1350 = vst [vmem:[%s2248_s23 + $0x1b0] sm:$0xff] %v1025_v25  ;;  %1412 = vst [vmem:[%s2248_s23 + $0x3a0] sm:$0xff] %v1273_v26 }
 0x1ae   : > { %v1784_v27 = vpop.f32.mrf.mxu0  ;;  %v1908_v28 = vpop.f32.mrf.mxu1 }
 0x1b0   : > { %v1028_v29 = vpop.f32.mrf.mxu0  ;;  %v1276_v30 = vpop.f32.mrf.mxu1 }
 0x1b1   : > { %1351 = vst [vmem:[%s2248_s23 + $0x1b8] sm:$0xff] %v1028_v29  ;;  %1413 = vst [vmem:[%s2248_s23 + $0x3a8] sm:$0xff] %v1276_v30 }
 0x1b2   : > { %v1785_v31 = vpop.f32.mrf.mxu0  ;;  %v1909_v32 = vpop.f32.mrf.mxu1 }
 0x1b4   : > { %v1033_v33 = vpop.f32.mrf.mxu0  ;;  %v1281_v34 = vpop.f32.mrf.mxu1 }
 0x1b5   : > { %1352 = vst [vmem:[%s2248_s23 + $0x1c0] sm:$0xff] %v1033_v33  ;;  %1414 = vst [vmem:[%s2248_s23 + $0x3b0] sm:$0xff] %v1281_v34 }
 0x1b6   : > { %v1788_v35 = vpop.f32.mrf.mxu0  ;;  %v1912_v36 = vpop.f32.mrf.mxu1 }
 0x1b8   : > { %v1036_v37 = vpop.f32.mrf.mxu0  ;;  %v1284_v38 = vpop.f32.mrf.mxu1 }
 0x1b9   : > { %1353 = vst [vmem:[%s2248_s23 + $0x1c8] sm:$0xff] %v1036_v37  ;;  %1415 = vst [vmem:[%s2248_s23 + $0x3b8] sm:$0xff] %v1284_v38 }
 0x1ba   : > { %v1789_v39 = vpop.f32.mrf.mxu0  ;;  %v1913_v40 = vpop.f32.mrf.mxu1 }
 0x1bc   : > { %v1041_v41 = vpop.f32.mrf.mxu0  ;;  %v1289_v42 = vpop.f32.mrf.mxu1 }
 0x1bd   : > { %1354 = vst [vmem:[%s2248_s23 + $0x1d0] sm:$0xff] %v1041_v41  ;;  %1416 = vst [vmem:[%s2248_s23 + $0x3c0] sm:$0xff] %v1289_v42 }
 0x1be   : > { %v1792_v43 = vpop.f32.mrf.mxu0  ;;  %v1916_v44 = vpop.f32.mrf.mxu1 }
 0x1c0   : > { %v1044_v45 = vpop.f32.mrf.mxu0  ;;  %v1292_v46 = vpop.f32.mrf.mxu1 }
 0x1c1   : > { %1355 = vst [vmem:[%s2248_s23 + $0x1d8] sm:$0xff] %v1044_v45  ;;  %1417 = vst [vmem:[%s2248_s23 + $0x3c8] sm:$0xff] %v1292_v46 }
 0x1c2   : > { %v1793_v47 = vpop.f32.mrf.mxu0  ;;  %v1917_v48 = vpop.f32.mrf.mxu1 }
 0x1c4   : > { %v1049_v49 = vpop.f32.mrf.mxu0 }
 0x1c5   : > { %1356 = vst [vmem:[%s2248_s23 + $0x1e0] sm:$0xff] %v1049_v49 }
 0x1c6   : > { %v1796_v1 = vpop.f32.mrf.mxu0 }
 0x1c8   : > { %v1052_v50 = vpop.f32.mrf.mxu0 }
 0x1c9   : > { %1357 = vst [vmem:[%s2248_s23 + $0x1e8] sm:$0xff] %v1052_v50 }
 0x1ca   : > { %v1797_v51 = vpop.f32.mrf.mxu0 }
 0x1cb PF: > { %s12_s9 = sadd.s32 1, %s2001_s9  }
 0x1cc   : > { %p9_p4 = scmp.ge.s32.totalorder %s12_s9, 13  }
 0x1ce   :  { %11 = sbr.rel (!%p9_p4) target bundleno = 1 (0x1), region = 58 }

</bundles_post_ra>
